<compile_context>
chip_gen: v7x
topology: tpu7x:2x2x1
jax: 0.10.0
libtpu: 0.0.40
codegen_flags: <defaults>
</compile_context>

<pallas_src>
import functools

import jax
import jax.numpy as jnp
from jax.experimental import pallas as pl
from jax.experimental.pallas import tpu as pltpu


# ---------------------------------------------------------------------------
# Kernel 1: fused QKV projection (+bias) and rotary embedding.
# ---------------------------------------------------------------------------
def _qkv_rope_kernel(x_ref, w_ref, b_ref, cos_ref, sin_ref,
                     q_ref, k_ref, v_ref, *,
                     num_heads, num_kv_heads, head_dim):
    # bf16 operands straight into the MXU, f32 accumulation.
    x = x_ref[...]                                            # [tm, H]    bf16
    w = w_ref[...]                                            # [H, QKV]   bf16
    qkv = jnp.dot(x, w, preferred_element_type=jnp.float32)   # [tm, QKV]  f32
    qkv = qkv + b_ref[...]                                    # bias (f32, [1, QKV])

    cos = cos_ref[...]                                        # [tm, hd] f32
    sin = sin_ref[...]                                        # [tm, hd] f32
    half = head_dim // 2

    def rope(t):                                              # t: [tm, hd] f32
        t1 = t[:, :half]
        t2 = t[:, half:]
        rot = jnp.concatenate([-t2, t1], axis=-1)
        return t * cos + rot * sin

    q_size = num_heads * head_dim
    kv_size = num_kv_heads * head_dim

    # Per-head static lane slices (head_dim-aligned); outputs are head-major so the
    # attention kernel can consume them without any relayout.
    for h in range(num_heads):
        qh = qkv[:, h * head_dim:(h + 1) * head_dim]
        q_ref[h] = rope(qh).astype(q_ref.dtype)
    for h in range(num_kv_heads):
        kh = qkv[:, q_size + h * head_dim:q_size + (h + 1) * head_dim]
        vh = qkv[:, q_size + kv_size + h * head_dim:
                 q_size + kv_size + (h + 1) * head_dim]
        k_ref[h] = rope(kh).astype(k_ref.dtype)
        v_ref[h] = vh.astype(v_ref.dtype)


def qkv_rope(x, w_qkv, b_qkv, cos, sin, *,
             num_heads, num_kv_heads, head_dim, token_tile=128):
    T, H = x.shape
    q_size = num_heads * head_dim
    kv_size = num_kv_heads * head_dim
    qkv_out = q_size + 2 * kv_size
    assert w_qkv.shape == (H, qkv_out)
    assert b_qkv.shape == (1, qkv_out)
    assert T % token_tile == 0  # TODO(synk): pad ragged token counts.

    kernel = functools.partial(
        _qkv_rope_kernel,
        num_heads=num_heads, num_kv_heads=num_kv_heads, head_dim=head_dim)

    return pl.pallas_call(
        kernel,
        out_shape=(
            jax.ShapeDtypeStruct((num_heads, T, head_dim), x.dtype),
            jax.ShapeDtypeStruct((num_kv_heads, T, head_dim), x.dtype),
            jax.ShapeDtypeStruct((num_kv_heads, T, head_dim), x.dtype),
        ),
        grid_spec=pltpu.PrefetchScalarGridSpec(
            num_scalar_prefetch=0,
            grid=(T // token_tile,),
            in_specs=[
                pl.BlockSpec((token_tile, H), lambda i: (i, 0)),        # x tile
                pl.BlockSpec((H, qkv_out), lambda i: (0, 0)),           # W_qkv (resident)
                pl.BlockSpec((1, qkv_out), lambda i: (0, 0)),           # bias
                pl.BlockSpec((token_tile, head_dim), lambda i: (i, 0)),  # cos
                pl.BlockSpec((token_tile, head_dim), lambda i: (i, 0)),  # sin
            ],
            out_specs=(
                pl.BlockSpec((num_heads, token_tile, head_dim), lambda i: (0, i, 0)),
                pl.BlockSpec((num_kv_heads, token_tile, head_dim), lambda i: (0, i, 0)),
                pl.BlockSpec((num_kv_heads, token_tile, head_dim), lambda i: (0, i, 0)),
            ),
        ),
        compiler_params=pltpu.CompilerParams(
            dimension_semantics=("parallel",),
        ),
    )(x, w_qkv, b_qkv, cos, sin)


# ---------------------------------------------------------------------------
# Kernel 2: causal flash attention with GQA (online softmax, f32 state).
# ---------------------------------------------------------------------------
def _flash_attn_kernel(q_ref, k_ref, v_ref, o_ref, m_sc, l_sc, acc_sc, *,
                       sm_scale, block_q, block_k):
    i = pl.program_id(1)   # q block
    j = pl.program_id(2)   # kv block (reduction, last grid axis)

    @pl.when(j == 0)
    def _():
        m_sc[...] = jnp.full_like(m_sc, -jnp.inf)
        l_sc[...] = jnp.zeros_like(l_sc)
        acc_sc[...] = jnp.zeros_like(acc_sc)

    # Skip kv blocks that lie entirely above the causal diagonal.
    @pl.when(j * block_k <= i * block_q + (block_q - 1))
    def _():
        q = q_ref[0]                                          # [bq, hd] bf16
        k = k_ref[0]                                          # [bk, hd] bf16
        v = v_ref[0]                                          # [bk, hd] bf16

        s = jax.lax.dot_general(
            q, k, (((1,), (1,)), ((), ())),
            preferred_element_type=jnp.float32) * sm_scale    # [bq, bk] f32

        row = i * block_q + jax.lax.broadcasted_iota(jnp.int32, s.shape, 0)
        col = j * block_k + jax.lax.broadcasted_iota(jnp.int32, s.shape, 1)
        s = jnp.where(row >= col, s, -1e30)

        m_prev = m_sc[...]
        m_new = jnp.maximum(m_prev, s.max(axis=-1, keepdims=True))
        alpha = jnp.exp(m_prev - m_new)
        p = jnp.exp(s - m_new)
        l_sc[...] = alpha * l_sc[...] + p.sum(axis=-1, keepdims=True)
        acc_sc[...] = alpha * acc_sc[...] + jnp.dot(
            p.astype(v.dtype), v, preferred_element_type=jnp.float32)
        m_sc[...] = m_new

    @pl.when(j == pl.num_programs(2) - 1)
    def _():
        o_ref[0] = (acc_sc[...] / l_sc[...]).astype(o_ref.dtype)


def flash_attention(q, k, v, *, sm_scale, block_q=128, block_k=128):
    num_heads, T, head_dim = q.shape
    num_kv_heads = k.shape[0]
    assert num_heads % num_kv_heads == 0
    assert T % block_q == 0 and T % block_k == 0
    group = num_heads // num_kv_heads

    kernel = functools.partial(
        _flash_attn_kernel, sm_scale=sm_scale, block_q=block_q, block_k=block_k)

    return pl.pallas_call(
        kernel,
        out_shape=jax.ShapeDtypeStruct((num_heads, T, head_dim), q.dtype),
        grid_spec=pltpu.PrefetchScalarGridSpec(
            num_scalar_prefetch=0,
            grid=(num_heads, T // block_q, T // block_k),
            in_specs=[
                pl.BlockSpec((1, block_q, head_dim), lambda h, i, j: (h, i, 0)),
                pl.BlockSpec((1, block_k, head_dim), lambda h, i, j: (h // group, j, 0)),
                pl.BlockSpec((1, block_k, head_dim), lambda h, i, j: (h // group, j, 0)),
            ],
            out_specs=pl.BlockSpec((1, block_q, head_dim), lambda h, i, j: (h, i, 0)),
            scratch_shapes=[
                pltpu.VMEM((block_q, 1), jnp.float32),         # running max
                pltpu.VMEM((block_q, 1), jnp.float32),         # running denom
                pltpu.VMEM((block_q, head_dim), jnp.float32),  # output accumulator
            ],
        ),
        compiler_params=pltpu.CompilerParams(
            dimension_semantics=("parallel", "parallel", "arbitrary"),
        ),
    )(q, k, v)


# ---------------------------------------------------------------------------
# Kernel 3: o_proj with the head axis as a trailing reduction (f32 accumulator).
# ---------------------------------------------------------------------------
def _o_proj_kernel(a_ref, w_ref, o_ref, acc_ref):
    h = pl.program_id(1)

    @pl.when(h == 0)
    def _():
        acc_ref[...] = jnp.zeros_like(acc_ref)

    acc_ref[...] += jnp.dot(a_ref[0], w_ref[0], preferred_element_type=jnp.float32)

    @pl.when(h == pl.num_programs(1) - 1)
    def _():
        o_ref[...] = acc_ref[...].astype(o_ref.dtype)


def o_proj(attn, w_o, *, token_tile=128):
    num_heads, T, head_dim = attn.shape
    H = w_o.shape[2]
    assert w_o.shape == (num_heads, head_dim, H)
    assert T % token_tile == 0

    return pl.pallas_call(
        _o_proj_kernel,
        out_shape=jax.ShapeDtypeStruct((T, H), attn.dtype),
        grid_spec=pltpu.PrefetchScalarGridSpec(
            num_scalar_prefetch=0,
            grid=(T // token_tile, num_heads),
            in_specs=[
                pl.BlockSpec((1, token_tile, head_dim), lambda i, h: (h, i, 0)),
                pl.BlockSpec((1, head_dim, H), lambda i, h: (h, 0, 0)),
            ],
            out_specs=pl.BlockSpec((token_tile, H), lambda i, h: (i, 0)),
            scratch_shapes=[pltpu.VMEM((token_tile, H), jnp.float32)],
        ),
        compiler_params=pltpu.CompilerParams(
            dimension_semantics=("parallel", "arbitrary"),
        ),
    )(attn, w_o)


# ---------------------------------------------------------------------------
# Full module forward.
# ---------------------------------------------------------------------------
def qwen2_moe_attention(positions, hidden_states, w_qkv, b_qkv, w_o, *,
                        num_heads, num_kv_heads, head_dim,
                        rope_theta=10000.0, token_tile=128,
                        block_q=128, block_k=128):
    """positions: [T] int32; hidden_states: [T, H] bf16.
       w_qkv: [H, (nh+2*nkv)*hd] bf16; b_qkv: [1, (nh+2*nkv)*hd] f32;
       w_o:   [nh, hd, H] bf16  ->  [T, H]"""
    # Neox-style RoPE tables (f32), shared by q and k.
    inv_freq = 1.0 / (rope_theta ** (
        jnp.arange(0, head_dim, 2, dtype=jnp.float32) / head_dim))
    freqs = positions.astype(jnp.float32)[:, None] * inv_freq[None, :]
    cos = jnp.concatenate([jnp.cos(freqs), jnp.cos(freqs)], axis=-1)
    sin = jnp.concatenate([jnp.sin(freqs), jnp.sin(freqs)], axis=-1)

    q, k, v = qkv_rope(hidden_states, w_qkv, b_qkv, cos, sin,
                       num_heads=num_heads, num_kv_heads=num_kv_heads,
                       head_dim=head_dim, token_tile=token_tile)

    attn = flash_attention(q, k, v, sm_scale=head_dim ** -0.5,
                           block_q=block_q, block_k=block_k)

    return o_proj(attn, w_o, token_tile=token_tile)


# ---------------------------------------------------------------------------
# Pure-JAX reference (f32 math, bf16 casts at the same stage boundaries).
# ---------------------------------------------------------------------------
def _reference(positions, x, w_qkv, b_qkv, w_o, *,
               num_heads, num_kv_heads, head_dim, rope_theta):
    T, H = x.shape
    f32 = jnp.float32
    qkv = x.astype(f32) @ w_qkv.astype(f32) + b_qkv.astype(f32)
    q_size = num_heads * head_dim
    kv_size = num_kv_heads * head_dim
    q = qkv[:, :q_size].reshape(T, num_heads, head_dim)
    k = qkv[:, q_size:q_size + kv_size].reshape(T, num_kv_heads, head_dim)
    v = qkv[:, q_size + kv_size:].reshape(T, num_kv_heads, head_dim)

    inv_freq = 1.0 / (rope_theta ** (jnp.arange(0, head_dim, 2, dtype=f32) / head_dim))
    freqs = positions.astype(f32)[:, None] * inv_freq[None, :]
    cos = jnp.concatenate([jnp.cos(freqs)] * 2, -1)[:, None, :]
    sin = jnp.concatenate([jnp.sin(freqs)] * 2, -1)[:, None, :]
    half = head_dim // 2

    def rope(t):
        t1, t2 = t[..., :half], t[..., half:]
        return t * cos + jnp.concatenate([-t2, t1], -1) * sin

    q = rope(q).astype(jnp.bfloat16).astype(f32)
    k = rope(k).astype(jnp.bfloat16).astype(f32)
    v = v.astype(jnp.bfloat16).astype(f32)

    group = num_heads // num_kv_heads
    k = jnp.repeat(k, group, axis=1)
    v = jnp.repeat(v, group, axis=1)

    s = jnp.einsum("qhd,khd->hqk", q, k) * (head_dim ** -0.5)
    mask = jnp.tril(jnp.ones((T, T), dtype=bool))
    s = jnp.where(mask[None, :, :], s, -jnp.inf)
    p = jax.nn.softmax(s, axis=-1)
    o = jnp.einsum("hqk,khd->qhd", p, v).reshape(T, num_heads * head_dim)
    o = o.astype(jnp.bfloat16).astype(f32)
    return o @ w_o.reshape(num_heads * head_dim, H).astype(f32)


if __name__ == "__main__":
    # Small shapes consistent with the module (head_dim 128-aligned).
    T = 256
    hidden_size = 512
    num_heads = 4
    num_kv_heads = 2
    head_dim = hidden_size // num_heads           # 128
    q_size = num_heads * head_dim
    kv_size = num_kv_heads * head_dim
    qkv_out = q_size + 2 * kv_size
    rope_theta = 10000.0

    key = jax.random.PRNGKey(0)
    kx, kw, kb, ko = jax.random.split(key, 4)

    x = jax.random.normal(kx, (T, hidden_size), dtype=jnp.float32).astype(jnp.bfloat16)
    # Kernel weight layouts (PyTorch nn.Linear [out,in] would be transposed once here).
    w_qkv = (jax.random.normal(kw, (hidden_size, qkv_out), dtype=jnp.float32)
             * hidden_size ** -0.5).astype(jnp.bfloat16)
    b_qkv = (jax.random.normal(kb, (1, qkv_out), dtype=jnp.float32) * 0.02
             ).astype(jnp.float32)
    w_o = (jax.random.normal(ko, (num_heads, head_dim, hidden_size), dtype=jnp.float32)
           * (num_heads * head_dim) ** -0.5).astype(jnp.bfloat16)

    positions = jnp.arange(T, dtype=jnp.int32)

    out = qwen2_moe_attention(
        positions, x, w_qkv, b_qkv, w_o,
        num_heads=num_heads, num_kv_heads=num_kv_heads, head_dim=head_dim,
        rope_theta=rope_theta)
    out = jax.block_until_ready(out)

    ref = _reference(positions, x, w_qkv, b_qkv, w_o,
                     num_heads=num_heads, num_kv_heads=num_kv_heads,
                     head_dim=head_dim, rope_theta=rope_theta)

    assert out.shape == (T, hidden_size)
    max_err = float(jnp.max(jnp.abs(out.astype(jnp.float32) - ref)))
    assert jnp.allclose(out.astype(jnp.float32), ref, atol=3e-2, rtol=3e-2), \
        f"mismatch vs reference, max abs err {max_err}"

    print("KERNEL_OK")
</pallas_src>

<mosaic_0001>
module attributes {stable_mosaic.version = 11 : i64} {
  func.func @_qkv_rope_kernel(%arg0: i32, %arg1: memref<128x512xbf16, #tpu.memory_space<vmem>>, %arg2: memref<512x1024xbf16, #tpu.memory_space<vmem>>, %arg3: memref<1x1024xf32, #tpu.memory_space<vmem>>, %arg4: memref<128x128xf32, #tpu.memory_space<vmem>>, %arg5: memref<128x128xf32, #tpu.memory_space<vmem>>, %arg6: memref<4x128x128xbf16, #tpu.memory_space<vmem>>, %arg7: memref<2x128x128xbf16, #tpu.memory_space<vmem>>, %arg8: memref<2x128x128xbf16, #tpu.memory_space<vmem>>) attributes {dimension_semantics = [#tpu.dimension_semantics<parallel>], iteration_bounds = array<i64: 2>, scalar_prefetch = 0 : i64, scratch_operands = 0 : i64, tpu.core_type = #tpu.core_type<tc>, window_params = [{transform_indices = @transform_0, window_bounds = array<i64: 128, 512>}, {pipeline_mode = #tpu.pipeline_mode<synchronous>, transform_indices = @transform_1, window_bounds = array<i64: 512, 1024>}, {pipeline_mode = #tpu.pipeline_mode<synchronous>, transform_indices = @transform_2, window_bounds = array<i64: 1, 1024>}, {transform_indices = @transform_3, window_bounds = array<i64: 128, 128>}, {transform_indices = @transform_4, window_bounds = array<i64: 128, 128>}, {transform_indices = @transform_5, window_bounds = array<i64: 4, 128, 128>}, {transform_indices = @transform_6, window_bounds = array<i64: 2, 128, 128>}, {transform_indices = @transform_7, window_bounds = array<i64: 2, 128, 128>}]} {
    %c0 = arith.constant 0 : index
    %c0_0 = arith.constant 0 : index
    %0 = vector.load %arg1[%c0, %c0_0] : memref<128x512xbf16, #tpu.memory_space<vmem>>, vector<128x512xbf16>
    %c0_1 = arith.constant 0 : index
    %c0_2 = arith.constant 0 : index
    %1 = vector.load %arg2[%c0_1, %c0_2] : memref<512x1024xbf16, #tpu.memory_space<vmem>>, vector<512x1024xbf16>
    %cst = arith.constant dense<0.000000e+00> : vector<128x1024xf32>
    %2 = tpu.matmul %0, %1, %cst {dimension_numbers = #tpu.dot_dimension_numbers<[1], [0], [0], [1], [0, 0, 1, 1], [], []>} : vector<128x512xbf16>, vector<512x1024xbf16>, vector<128x1024xf32> -> vector<128x1024xf32>
    %c0_3 = arith.constant 0 : index
    %c0_4 = arith.constant 0 : index
    %3 = vector.load %arg3[%c0_3, %c0_4] : memref<1x1024xf32, #tpu.memory_space<vmem>>, vector<1x1024xf32>
    %4 = vector.broadcast %3 : vector<1x1024xf32> to vector<128x1024xf32>
    %5 = arith.addf %2, %4 : vector<128x1024xf32>
    %c0_5 = arith.constant 0 : index
    %c0_6 = arith.constant 0 : index
    %6 = vector.load %arg4[%c0_5, %c0_6] : memref<128x128xf32, #tpu.memory_space<vmem>>, vector<128x128xf32>
    %c0_7 = arith.constant 0 : index
    %c0_8 = arith.constant 0 : index
    %7 = vector.load %arg5[%c0_7, %c0_8] : memref<128x128xf32, #tpu.memory_space<vmem>>, vector<128x128xf32>
    %8 = vector.extract_strided_slice %5 {offsets = [0, 0], sizes = [128, 128], strides = [1, 1]} : vector<128x1024xf32> to vector<128x128xf32>
    %9 = vector.extract_strided_slice %8 {offsets = [0, 0], sizes = [128, 64], strides = [1, 1]} : vector<128x128xf32> to vector<128x64xf32>
    %10 = vector.extract_strided_slice %8 {offsets = [0, 64], sizes = [128, 64], strides = [1, 1]} : vector<128x128xf32> to vector<128x64xf32>
    %cst_9 = arith.constant 0.000000e+00 : f32
    %11 = vector.broadcast %cst_9 : f32 to vector<128x64xf32>
    %12 = arith.subf %11, %10 : vector<128x64xf32>
    %13 = tpu.concatenate %12, %9 in 1 : vector<128x64xf32>, vector<128x64xf32> -> vector<128x128xf32>
    %14 = arith.mulf %8, %6 : vector<128x128xf32>
    %15 = arith.mulf %13, %7 : vector<128x128xf32>
    %16 = arith.addf %14, %15 : vector<128x128xf32>
    %17 = arith.truncf %16 : vector<128x128xf32> to vector<128x128xbf16>
    %c0_10 = arith.constant 0 : index
    %c0_11 = arith.constant 0 : index
    %c0_12 = arith.constant 0 : index
    %18 = vector.load %arg6[%c0_10, %c0_11, %c0_12] : memref<4x128x128xbf16, #tpu.memory_space<vmem>>, vector<1x128x128xbf16>
    %19 = vector.shape_cast %18 : vector<1x128x128xbf16> to vector<128x128xbf16>
    %20 = vector.shape_cast %17 : vector<128x128xbf16> to vector<1x128x128xbf16>
    tpu.vector_store %arg6[%c0_10, %c0_11, %c0_12], %20 {strides = array<i32>} : memref<4x128x128xbf16, #tpu.memory_space<vmem>>, vector<1x128x128xbf16>,
    %21 = vector.extract_strided_slice %5 {offsets = [0, 128], sizes = [128, 128], strides = [1, 1]} : vector<128x1024xf32> to vector<128x128xf32>
    %22 = vector.extract_strided_slice %21 {offsets = [0, 0], sizes = [128, 64], strides = [1, 1]} : vector<128x128xf32> to vector<128x64xf32>
    %23 = vector.extract_strided_slice %21 {offsets = [0, 64], sizes = [128, 64], strides = [1, 1]} : vector<128x128xf32> to vector<128x64xf32>
    %cst_13 = arith.constant 0.000000e+00 : f32
    %24 = vector.broadcast %cst_13 : f32 to vector<128x64xf32>
    %25 = arith.subf %24, %23 : vector<128x64xf32>
    %26 = tpu.concatenate %25, %22 in 1 : vector<128x64xf32>, vector<128x64xf32> -> vector<128x128xf32>
    %27 = arith.mulf %21, %6 : vector<128x128xf32>
    %28 = arith.mulf %26, %7 : vector<128x128xf32>
    %29 = arith.addf %27, %28 : vector<128x128xf32>
    %30 = arith.truncf %29 : vector<128x128xf32> to vector<128x128xbf16>
    %c1 = arith.constant 1 : index
    %c0_14 = arith.constant 0 : index
    %c0_15 = arith.constant 0 : index
    %31 = vector.load %arg6[%c1, %c0_14, %c0_15] : memref<4x128x128xbf16, #tpu.memory_space<vmem>>, vector<1x128x128xbf16>
    %32 = vector.shape_cast %31 : vector<1x128x128xbf16> to vector<128x128xbf16>
    %33 = vector.shape_cast %30 : vector<128x128xbf16> to vector<1x128x128xbf16>
    tpu.vector_store %arg6[%c1, %c0_14, %c0_15], %33 {strides = array<i32>} : memref<4x128x128xbf16, #tpu.memory_space<vmem>>, vector<1x128x128xbf16>,
    %34 = vector.extract_strided_slice %5 {offsets = [0, 256], sizes = [128, 128], strides = [1, 1]} : vector<128x1024xf32> to vector<128x128xf32>
    %35 = vector.extract_strided_slice %34 {offsets = [0, 0], sizes = [128, 64], strides = [1, 1]} : vector<128x128xf32> to vector<128x64xf32>
    %36 = vector.extract_strided_slice %34 {offsets = [0, 64], sizes = [128, 64], strides = [1, 1]} : vector<128x128xf32> to vector<128x64xf32>
    %cst_16 = arith.constant 0.000000e+00 : f32
    %37 = vector.broadcast %cst_16 : f32 to vector<128x64xf32>
    %38 = arith.subf %37, %36 : vector<128x64xf32>
    %39 = tpu.concatenate %38, %35 in 1 : vector<128x64xf32>, vector<128x64xf32> -> vector<128x128xf32>
    %40 = arith.mulf %34, %6 : vector<128x128xf32>
    %41 = arith.mulf %39, %7 : vector<128x128xf32>
    %42 = arith.addf %40, %41 : vector<128x128xf32>
    %43 = arith.truncf %42 : vector<128x128xf32> to vector<128x128xbf16>
    %c2 = arith.constant 2 : index
    %c0_17 = arith.constant 0 : index
    %c0_18 = arith.constant 0 : index
    %44 = vector.load %arg6[%c2, %c0_17, %c0_18] : memref<4x128x128xbf16, #tpu.memory_space<vmem>>, vector<1x128x128xbf16>
    %45 = vector.shape_cast %44 : vector<1x128x128xbf16> to vector<128x128xbf16>
    %46 = vector.shape_cast %43 : vector<128x128xbf16> to vector<1x128x128xbf16>
    tpu.vector_store %arg6[%c2, %c0_17, %c0_18], %46 {strides = array<i32>} : memref<4x128x128xbf16, #tpu.memory_space<vmem>>, vector<1x128x128xbf16>,
    %47 = vector.extract_strided_slice %5 {offsets = [0, 384], sizes = [128, 128], strides = [1, 1]} : vector<128x1024xf32> to vector<128x128xf32>
    %48 = vector.extract_strided_slice %47 {offsets = [0, 0], sizes = [128, 64], strides = [1, 1]} : vector<128x128xf32> to vector<128x64xf32>
    %49 = vector.extract_strided_slice %47 {offsets = [0, 64], sizes = [128, 64], strides = [1, 1]} : vector<128x128xf32> to vector<128x64xf32>
    %cst_19 = arith.constant 0.000000e+00 : f32
    %50 = vector.broadcast %cst_19 : f32 to vector<128x64xf32>
    %51 = arith.subf %50, %49 : vector<128x64xf32>
    %52 = tpu.concatenate %51, %48 in 1 : vector<128x64xf32>, vector<128x64xf32> -> vector<128x128xf32>
    %53 = arith.mulf %47, %6 : vector<128x128xf32>
    %54 = arith.mulf %52, %7 : vector<128x128xf32>
    %55 = arith.addf %53, %54 : vector<128x128xf32>
    %56 = arith.truncf %55 : vector<128x128xf32> to vector<128x128xbf16>
    %c3 = arith.constant 3 : index
    %c0_20 = arith.constant 0 : index
    %c0_21 = arith.constant 0 : index
    %57 = vector.load %arg6[%c3, %c0_20, %c0_21] : memref<4x128x128xbf16, #tpu.memory_space<vmem>>, vector<1x128x128xbf16>
    %58 = vector.shape_cast %57 : vector<1x128x128xbf16> to vector<128x128xbf16>
    %59 = vector.shape_cast %56 : vector<128x128xbf16> to vector<1x128x128xbf16>
    tpu.vector_store %arg6[%c3, %c0_20, %c0_21], %59 {strides = array<i32>} : memref<4x128x128xbf16, #tpu.memory_space<vmem>>, vector<1x128x128xbf16>,
    %60 = vector.extract_strided_slice %5 {offsets = [0, 512], sizes = [128, 128], strides = [1, 1]} : vector<128x1024xf32> to vector<128x128xf32>
    %61 = vector.extract_strided_slice %5 {offsets = [0, 768], sizes = [128, 128], strides = [1, 1]} : vector<128x1024xf32> to vector<128x128xf32>
    %62 = vector.extract_strided_slice %60 {offsets = [0, 0], sizes = [128, 64], strides = [1, 1]} : vector<128x128xf32> to vector<128x64xf32>
    %63 = vector.extract_strided_slice %60 {offsets = [0, 64], sizes = [128, 64], strides = [1, 1]} : vector<128x128xf32> to vector<128x64xf32>
    %cst_22 = arith.constant 0.000000e+00 : f32
    %64 = vector.broadcast %cst_22 : f32 to vector<128x64xf32>
    %65 = arith.subf %64, %63 : vector<128x64xf32>
    %66 = tpu.concatenate %65, %62 in 1 : vector<128x64xf32>, vector<128x64xf32> -> vector<128x128xf32>
    %67 = arith.mulf %60, %6 : vector<128x128xf32>
    %68 = arith.mulf %66, %7 : vector<128x128xf32>
    %69 = arith.addf %67, %68 : vector<128x128xf32>
    %70 = arith.truncf %69 : vector<128x128xf32> to vector<128x128xbf16>
    %c0_23 = arith.constant 0 : index
    %c0_24 = arith.constant 0 : index
    %c0_25 = arith.constant 0 : index
    %71 = vector.load %arg7[%c0_23, %c0_24, %c0_25] : memref<2x128x128xbf16, #tpu.memory_space<vmem>>, vector<1x128x128xbf16>
    %72 = vector.shape_cast %71 : vector<1x128x128xbf16> to vector<128x128xbf16>
    %73 = vector.shape_cast %70 : vector<128x128xbf16> to vector<1x128x128xbf16>
    tpu.vector_store %arg7[%c0_23, %c0_24, %c0_25], %73 {strides = array<i32>} : memref<2x128x128xbf16, #tpu.memory_space<vmem>>, vector<1x128x128xbf16>,
    %74 = arith.truncf %61 : vector<128x128xf32> to vector<128x128xbf16>
    %c0_26 = arith.constant 0 : index
    %c0_27 = arith.constant 0 : index
    %c0_28 = arith.constant 0 : index
    %75 = vector.load %arg8[%c0_26, %c0_27, %c0_28] : memref<2x128x128xbf16, #tpu.memory_space<vmem>>, vector<1x128x128xbf16>
    %76 = vector.shape_cast %75 : vector<1x128x128xbf16> to vector<128x128xbf16>
    %77 = vector.shape_cast %74 : vector<128x128xbf16> to vector<1x128x128xbf16>
    tpu.vector_store %arg8[%c0_26, %c0_27, %c0_28], %77 {strides = array<i32>} : memref<2x128x128xbf16, #tpu.memory_space<vmem>>, vector<1x128x128xbf16>,
    %78 = vector.extract_strided_slice %5 {offsets = [0, 640], sizes = [128, 128], strides = [1, 1]} : vector<128x1024xf32> to vector<128x128xf32>
    %79 = vector.extract_strided_slice %5 {offsets = [0, 896], sizes = [128, 128], strides = [1, 1]} : vector<128x1024xf32> to vector<128x128xf32>
    %80 = vector.extract_strided_slice %78 {offsets = [0, 0], sizes = [128, 64], strides = [1, 1]} : vector<128x128xf32> to vector<128x64xf32>
    %81 = vector.extract_strided_slice %78 {offsets = [0, 64], sizes = [128, 64], strides = [1, 1]} : vector<128x128xf32> to vector<128x64xf32>
    %cst_29 = arith.constant 0.000000e+00 : f32
    %82 = vector.broadcast %cst_29 : f32 to vector<128x64xf32>
    %83 = arith.subf %82, %81 : vector<128x64xf32>
    %84 = tpu.concatenate %83, %80 in 1 : vector<128x64xf32>, vector<128x64xf32> -> vector<128x128xf32>
    %85 = arith.mulf %78, %6 : vector<128x128xf32>
    %86 = arith.mulf %84, %7 : vector<128x128xf32>
    %87 = arith.addf %85, %86 : vector<128x128xf32>
    %88 = arith.truncf %87 : vector<128x128xf32> to vector<128x128xbf16>
    %c1_30 = arith.constant 1 : index
    %c0_31 = arith.constant 0 : index
    %c0_32 = arith.constant 0 : index
    %89 = vector.load %arg7[%c1_30, %c0_31, %c0_32] : memref<2x128x128xbf16, #tpu.memory_space<vmem>>, vector<1x128x128xbf16>
    %90 = vector.shape_cast %89 : vector<1x128x128xbf16> to vector<128x128xbf16>
    %91 = vector.shape_cast %88 : vector<128x128xbf16> to vector<1x128x128xbf16>
    tpu.vector_store %arg7[%c1_30, %c0_31, %c0_32], %91 {strides = array<i32>} : memref<2x128x128xbf16, #tpu.memory_space<vmem>>, vector<1x128x128xbf16>,
    %92 = arith.truncf %79 : vector<128x128xf32> to vector<128x128xbf16>
    %c1_33 = arith.constant 1 : index
    %c0_34 = arith.constant 0 : index
    %c0_35 = arith.constant 0 : index
    %93 = vector.load %arg8[%c1_33, %c0_34, %c0_35] : memref<2x128x128xbf16, #tpu.memory_space<vmem>>, vector<1x128x128xbf16>
    %94 = vector.shape_cast %93 : vector<1x128x128xbf16> to vector<128x128xbf16>
    %95 = vector.shape_cast %92 : vector<128x128xbf16> to vector<1x128x128xbf16>
    tpu.vector_store %arg8[%c1_33, %c0_34, %c0_35], %95 {strides = array<i32>} : memref<2x128x128xbf16, #tpu.memory_space<vmem>>, vector<1x128x128xbf16>,
    return
  }
  func.func @transform_0(%arg0: i32) -> (i32, i32) {
    %c0_i32 = arith.constant 0 : i32
    %c0_i32_0 = arith.constant 0 : i32
    return %arg0, %c0_i32 : i32, i32
  }
  func.func @transform_1(%arg0: i32) -> (i32, i32) {
    %c0_i32 = arith.constant 0 : i32
    %c0_i32_0 = arith.constant 0 : i32
    %c0_i32_1 = arith.constant 0 : i32
    return %c0_i32, %c0_i32_0 : i32, i32
  }
  func.func @transform_2(%arg0: i32) -> (i32, i32) {
    %c0_i32 = arith.constant 0 : i32
    %c0_i32_0 = arith.constant 0 : i32
    %c0_i32_1 = arith.constant 0 : i32
    return %c0_i32, %c0_i32_0 : i32, i32
  }
  func.func @transform_3(%arg0: i32) -> (i32, i32) {
    %c0_i32 = arith.constant 0 : i32
    %c0_i32_0 = arith.constant 0 : i32
    return %arg0, %c0_i32 : i32, i32
  }
  func.func @transform_4(%arg0: i32) -> (i32, i32) {
    %c0_i32 = arith.constant 0 : i32
    %c0_i32_0 = arith.constant 0 : i32
    return %arg0, %c0_i32 : i32, i32
  }
  func.func @transform_5(%arg0: i32) -> (i32, i32, i32) {
    %c0_i32 = arith.constant 0 : i32
    %c0_i32_0 = arith.constant 0 : i32
    %c0_i32_1 = arith.constant 0 : i32
    return %c0_i32, %arg0, %c0_i32_0 : i32, i32, i32
  }
  func.func @transform_6(%arg0: i32) -> (i32, i32, i32) {
    %c0_i32 = arith.constant 0 : i32
    %c0_i32_0 = arith.constant 0 : i32
    %c0_i32_1 = arith.constant 0 : i32
    return %c0_i32, %arg0, %c0_i32_0 : i32, i32, i32
  }
  func.func @transform_7(%arg0: i32) -> (i32, i32, i32) {
    %c0_i32 = arith.constant 0 : i32
    %c0_i32_0 = arith.constant 0 : i32
    %c0_i32_1 = arith.constant 0 : i32
    return %c0_i32, %arg0, %c0_i32_0 : i32, i32, i32
  }
}

</mosaic_0001>

<bundles_post_ra>
// kernel: tpu_custom_call.1
= control target key start
LH: loop header
LB: loop body
LE: loop exit
PB: predicated region body
PF: predicated region fallthrough
CT: control target
= control target key end

     0   :  { %s9076_s0 = inlined_call_operand.hbm [shape: bf16[256,512], index: 0, kind: input, shape index: {}]   ;;  %s9077_s1 = inlined_call_operand.hbm [shape: bf16[512,1024], index: 1, kind: input, shape index: {}]   ;;  %s9078_s2 = inlined_call_operand.hbm [shape: f32[1,1024], index: 2, kind: input, shape index: {}]   ;;  %s9079_s3 = inlined_call_operand.hbm [shape: f32[256,128], index: 3, kind: input, shape index: {}]   ;;  %s9080_s4 = inlined_call_operand.hbm [shape: f32[256,128], index: 4, kind: input, shape index: {}]   ;;  %s9081_s5 = inlined_call_operand.hbm [shape: bf16[4,256,128], index: 5, kind: output, shape index: {0}]   ;;  %s9082_s6 = inlined_call_operand.hbm [shape: bf16[2,256,128], index: 6, kind: output, shape index: {1}]   ;;  %s9083_s7 = inlined_call_operand.hbm [shape: bf16[2,256,128], index: 7, kind: output, shape index: {2}]  }
   0x1   :  { %9158 = sst [smem:[#allocation80_spill]] %s9077_s1 }
   0x2   :  { %9159 = sst [smem:[#allocation81_spill]] %s9079_s3 }
   0x3   :  { %9160 = sst [smem:[#allocation82_spill]] %s9081_s5 }
   0x4   :  { %9161 = sst [smem:[#allocation83_spill]] %s9082_s6 }
   0x5   :  { %9162 = sst [smem:[#allocation84_spill]] %s9083_s7 }
   0x6   :  { %13 = vsyncpa [#allocation3], 0 }
   0x7   :  { %15 = vsyncpa [#allocation3 + $0x1], 0 }
   0x8   :  { %16 = vsyncpa [#allocation6], 0 }
   0x9   :  { %17 = vsyncpa [#allocation9], 0 }
   0xa   :  { %19 = vsyncpa [#allocation9 + $0x1], 0 }
   0xb   :  { %20 = vsyncpa [#allocation4], 0 }
   0xc   :  { %22 = vsyncpa [#allocation4 + $0x1], 0 }
   0xd   :  { %23 = vsyncpa [#allocation13], 0 }
   0xe   :  { %25 = vsyncpa [#allocation13 + $0x1], 0  ;;  %s7173_s24 = smov 0   ;;  %s7175_s25 = smov 0  }
   0xf   :  { %s7177_s26 = smov 0   ;;  %s7179_s27 = smov 0  }
  0x10 LB: > { %9163 = sst [smem:[#allocation26_spill]] %s7086_s24  ;;  %s7194_s28 = sadd.s32 4294967295, %s7098_s27   ;;  %s7098_s27 = sphi %s7179_s27, %s9315_s27   ;;  %s7094_s26 = sphi %s7177_s26, %s9317_s26   ;;  %s7090_s25 = sphi %s7175_s25, %s9319_s25   ;;  %s7086_s24 = sphi %s7173_s24, %s9318_s24  }
  0x11   : > { %9164 = sst [smem:[#allocation27_spill]] %s7094_s26  ;;  %s9084_s29 = sadd.s32 4294967294, %s7098_s27  }
  0x12   : > { %s7198_s30 = sadd.s32 1, %s7098_s27   ;;  %s38_s8 = sadd.s32 1, %s7094_s26 }
  0x13   : > { %9165 = sst [smem:[#allocation28_spill]] %s7198_s30  ;;  %s35_s9 = ssub.s32 %s7098_s27, %s7198_s30 }
  0x14   : > { %p45_p0 = scmp.ne.s32.totalorder %s7094_s26, %s7090_s25  ;;  %p36_p1 = scmp.eq.s32.totalorder %s35_s9, 0 }
  0x15   : > { %p46_p2 = scmp.eq.s32.totalorder %s7098_s27, 0  ;;  %p51_p3 = scmp.ne.s32.totalorder %s7090_s25, %s7086_s24 }
  0x16   : > { %p9085_p4 = scmp.eq.s32.totalorder %s7194_s28, 0  ;;  %p169_p7 = scmp.eq.s32.totalorder %s7194_s28, 1 }
  0x17   : > { %s7210_s10 = scalar_select %p36_p1, %s7094_s26, %s38_s8  }
  0x18   : > { %p7212_p5 = por %p46_p2, %p45_p0  ;;  %p7218_p6 = por %p9085_p4, %p51_p3 }
  0x19   : > { %9166 = sst [smem:[#allocation29_spill]] %s7210_s10  ;;  %p175_p8 = scmp.eq.s32.totalorder %s9084_s29, 1 }
  0x1a   : > { %s9167_s11 = scalar_select %p7212_p5, 1, 0 }
  0x1b   : > { %s9168_s12 = scalar_select %p7218_p6, 1, 0 }
  0x1c   : > { %p5366_p9 = scmp.ge.s32.totalorder %s7098_s27, 1  ;;  %p234_p10 = scmp.lt.s32.totalorder %s7098_s27, 3 }
  0x1d   : > { %p7227_p11 = por %p169_p7, %p45_p0  ;;  %p7231_p12 = por %p175_p8, %p51_p3 }
  0x1e   : > { %p7235_p13 = pnand %p5366_p9, %p234_p10  ;;  %s7100_s16 = smov [#allocation5]  }
  0x1f   : > { %s9169_s13 = scalar_select %p7227_p11, 1, 0 }
  0x20   : > { %s9170_s14 = scalar_select %p7231_p12, 1, 0 }
  0x21   : > { %s9172_s15 = scalar_select %p7235_p13, 1, 0 }
  0x22   : > { %9171 = sst [smem:[#allocation30_spill]] %s9170_s14  ;;  %p6706_p1 = pneg %p7235_p13 }
  0x23   : > { %s246_s17 = sshll.u32 %s7100_s16, 4  ;;  %s7250_s19 = sand.u32 1, %s7094_s26   ;;  %s247_s17 = int_to_ptr.vmem [resolvable:$true] %s246_s17 }
  0x24   : > { %p7243_p2 = pnand %p6706_p1, %p9085_p4  ;;  %s293_s20 = sand.u32 1, %s7098_s27  }
  0x25   : > { %s9174_s1 = sld [smem:[#allocation80_spill]] }
  0x26   : > { %s9173_s18 = scalar_select %p7243_p2, 1, 0 }
  0x27   : > { %p9093_p8 = pneg %p7243_p2 }
  0x2b   : > { %s6902_s23 = scalar_lea.hbm %s9174_s1, 32768 }
  0x2c   : > { %p6903_p7 = scmp.ne.s32.totalorder %s9174_s1, %s6902_s23  ;;  %p6909_p1 = scmp.lt.u32.totalorder %s6902_s23, %s9174_s1 }
  0x2e   : > { %p6905_p9 = pnand %p9093_p8, %p6903_p7 }
  0x30   : > { %p6906_p10 = pneg %p6905_p9 }
  0x32   : > { %p6911_p0 = pnand %p6909_p1, %p6906_p10 }
  0x34   : > { %6914 = shalt.err (!%p6911_p0)
}
  0x35   : > { %s6915_s10 = scalar_lea.vmem %s247_s17, 32768  ;;  %p6923_p11 = scmp.lt.s32.totalorder %s247_s17, %s247_s17 }
  0x36   : > { %p6916_p4 = scmp.ne.s32.totalorder %s247_s17, %s6915_s10  ;;  %p6924_p6 = scmp.lt.s32.totalorder %s6915_s10, %s6915_s10 }
  0x38   : > { %p6918_p3 = pnand %p6916_p4, %p9093_p8  ;;  %p6925_p13 = por %p6924_p6, %p6923_p11 }
  0x3a   : > { %p6919_p12 = pneg %p6918_p3 }
  0x3c   : > { %p6926_p5 = pnand %p6925_p13, %p6919_p12 }
  0x3e   : > { %6929 = shalt.err (!%p6926_p5)
}
  0x3f   : > { %s7101_s21 = smov 512   ;;  %s7102_s29 = smov 32  }
  0x40   : > { %6709 = dma.hbm_to_vmem [thread:$0]  (!%p7243_p2), %s9174_s1, 32768, %s247_s17, [#allocation6], %s7101_s21, %s7101_s21, %s7102_s29  }
  0x41   : > { %p9175_p4 = scmp.ne.s32.totalorder %s9167_s11, 0  ;;  %p9176_p0 = scmp.lt.s32.totalorder %s7098_s27, 2 }
  0x42   : > { %s9092_s8 = sshll.u32 %s7250_s19, 7  ;;  %s5898_s9 = sshll.u32 %s7098_s27, 11 }
  0x43   : > { %p7279_p3 = pnand %p9176_p0, %p9175_p4  ;;  %s9178_s3 = sld [smem:[#allocation81_spill]] }
  0x44   : > { %s297_s11 = scalar_lea.vmem [#allocation8], %s9092_s8  ;;  %s7296_s21 = scalar_lea.sflag [#allocation9], %s293_s20 }
  0x45   : > { %s9177_s10 = scalar_select %p7279_p3, 1, 0 }
  0x46   : > { %s304_s17 = sshll.u32 %s297_s11, 4  ;;  %p7302_p6 = pneg %p7279_p3  ;;  %s7294_s17 = int_to_ptr.vmem [resolvable:$true] %s304_s17 }
  0x48   : > { %s9179_s22 = scalar_select %p7302_p6, 1, 0 }
  0x49   : > { %s7290_s30 = scalar_lea.hbm %s9178_s3, %s5898_s9  ;;  %s6935_s16 = scalar_lea.hbm %s9178_s3, 4096 }
  0x4a   : > { %s6930_s29 = scalar_lea.hbm %s7290_s30, 2048  ;;  %p6936_p13 = scmp.lt.u32.totalorder %s7290_s30, %s9178_s3 }
  0x4b   : > { %p6931_p5 = scmp.ne.s32.totalorder %s7290_s30, %s6930_s29  ;;  %p6937_p7 = scmp.lt.u32.totalorder %s6935_s16, %s6930_s29 }
  0x4c   : > { %p6939_p10 = scmp.lt.u32.totalorder %s6930_s29, %s7290_s30 }
  0x4d   : > { %p6933_p11 = pnand %p7302_p6, %p6931_p5  ;;  %p6938_p9 = por %p6937_p7, %p6936_p13 }
  0x4f   : > { %p6934_p12 = pneg %p6933_p11  ;;  %p6940_p1 = por %p6939_p10, %p6938_p9 }
  0x51   : > { %p6941_p4 = pnand %p6940_p1, %p6934_p12 }
  0x53   : > { %6944 = shalt.err (!%p6941_p4)
}
  0x54   : > { %s6945_s20 = scalar_lea.vmem %s7294_s17, 2048  ;;  %s7103_s26 = smov [#allocation8]  }
  0x55   : > { %p6946_p0 = scmp.ne.s32.totalorder %s7294_s17, %s6945_s20  ;;  %s6950_s23 = sshll.u32 %s7103_s26, 4  ;;  %s6951_s23 = int_to_ptr.vmem [resolvable:$false] %s6950_s23 }
  0x56   : > { %s6952_s8 = scalar_lea.vmem %s6951_s23, 4096  ;;  %p6953_p8 = scmp.lt.s32.totalorder %s7294_s17, %s6951_s23 }
  0x57   : > { %p6948_p5 = pnand %p6946_p0, %p7302_p6  ;;  %p6954_p2 = scmp.lt.s32.totalorder %s6952_s8, %s6945_s20 }
  0x59   : > { %p6949_p11 = pneg %p6948_p5  ;;  %p6955_p13 = por %p6954_p2, %p6953_p8 }
  0x5b   : > { %p6956_p7 = pnand %p6955_p13, %p6949_p11 }
  0x5d   : > { %6959 = shalt.err (!%p6956_p7)
}
  0x5e   : > { %s7104_s29 = smov 128   ;;  %s7105_s16 = smov 8  }
  0x5f   : > { %6719 = dma.hbm_to_vmem [thread:$0]  (!%p7279_p3), %s7290_s30, 2048, %s7294_s17, %s7296_s21, %s7104_s29, %s7104_s29, %s7105_s16  }
  0x60   : > { %s7334_s26 = scalar_lea.hbm %s9080_s4, %s5898_s9  ;;  %s9180_s23 = sshll.u32 %s7250_s19, 7 }
  0x61   : > { %s318_s8 = scalar_lea.vmem [#allocation10], %s9180_s23  ;;  %s7106_s3 = smov [#allocation7]  }
  0x62   : > { %s325_s1 = sshll.u32 %s318_s8, 4  ;;  %s260_s14 = sshll.u32 %s7106_s3, 4  ;;  %s7338_s1 = int_to_ptr.vmem [resolvable:$true] %s325_s1  ;;  %s261_s14 = int_to_ptr.vmem [resolvable:$true] %s260_s14 }
  0x63   : > { %s5370_s24 = sshll.u32 %s7250_s19, 8  ;;  %s6960_s5 = scalar_lea.hbm %s9078_s2, 128 }
  0x64   : > { %p6961_p2 = scmp.ne.s32.totalorder %s9078_s2, %s6960_s5  ;;  %p9181_p8 = scmp.ne.s32.totalorder %s9173_s18, 0 }
  0x65   : > { %p6967_p1 = scmp.lt.u32.totalorder %s6960_s5, %s9078_s2 }
  0x66   : > { %p9182_p12 = pneg %p9181_p8 }
  0x68   : > { %p6963_p9 = pnand %p6961_p2, %p9182_p12 }
  0x6a   : > { %p6964_p10 = pneg %p6963_p9 }
  0x6c   : > { %p6969_p4 = pnand %p6967_p1, %p6964_p10 }
  0x6e   : > { %6972 = shalt.err (!%p6969_p4)
}
  0x6f   : > { %s6973_s3 = scalar_lea.vmem %s261_s14, 128  ;;  %p9183_p5 = pmov %p9182_p12 }
  0x70   : > { %p6974_p0 = scmp.ne.s32.totalorder %s261_s14, %s6973_s3  ;;  %p6981_p7 = scmp.lt.s32.totalorder %s261_s14, %s261_s14 }
  0x71   : > { %p6982_p3 = scmp.lt.s32.totalorder %s6973_s3, %s6973_s3 }
  0x72   : > { %p6976_p11 = pnand %p6974_p0, %p9183_p5 }
  0x73   : > { %p6983_p6 = por %p6982_p3, %p6981_p7 }
  0x74   : > { %p6977_p13 = pneg %p6976_p11 }
  0x76   : > { %p6984_p2 = pnand %p6983_p6, %p6977_p13 }
  0x78   : > { %6987 = shalt.err (!%p6984_p2)
}
  0x79   : > { %6712 = dma.hbm_to_vmem [thread:$0]  (!%p9181_p8), %s9078_s2, 128, %s261_s14, [#allocation6]  }
  0x7a   : > { %s5897_s5 = sshll.u32 %s7098_s27, 12  ;;  %s275_s30 = scalar_lea.vmem [#allocation2], %s5370_s24 }
  0x7b   : > { %s7365_s8 = scalar_lea.hbm %s9076_s0, %s5897_s5  ;;  %s283_s17 = sshll.u32 %s275_s30, 4  ;;  %s7367_s17 = int_to_ptr.vmem [resolvable:$true] %s283_s17 }
  0x7c   : > { %s272_s18 = scalar_lea.sflag [#allocation3], %s7250_s19  ;;  %s6988_s9 = scalar_lea.hbm %s7365_s8, 4096 }
  0x7d   : > { %p6989_p3 = scmp.ne.s32.totalorder %s7365_s8, %s6988_s9  ;;  %p9184_p6 = scmp.ne.s32.totalorder %s9179_s22, 0 }
  0x7e   : > { %s6993_s3 = scalar_lea.hbm %s9076_s0, 8192  ;;  %p6994_p9 = scmp.lt.u32.totalorder %s7365_s8, %s9076_s0 }
  0x7f   : > { %p6991_p12 = pnand %p6989_p3, %p9184_p6  ;;  %p6995_p10 = scmp.lt.u32.totalorder %s6993_s3, %s6988_s9 }
  0x80   : > { %p6997_p4 = scmp.lt.u32.totalorder %s6988_s9, %s7365_s8 }
  0x81   : > { %p6992_p8 = pneg %p6991_p12  ;;  %p6996_p1 = por %p6995_p10, %p6994_p9 }
  0x83   : > { %p6998_p0 = por %p6997_p4, %p6996_p1 }
  0x85   : > { %p6999_p5 = pnand %p6998_p0, %p6992_p8 }
  0x87   : > { %7002 = shalt.err (!%p6999_p5)
}
  0x88   : > { %s7003_s24 = scalar_lea.vmem %s7367_s17, 4096  ;;  %s7107_s5 = smov [#allocation2]  }
  0x89   : > { %p7004_p11 = scmp.ne.s32.totalorder %s7367_s17, %s7003_s24  ;;  %s7008_s20 = sshll.u32 %s7107_s5, 4  ;;  %s7009_s20 = int_to_ptr.vmem [resolvable:$false] %s7008_s20 }
  0x8a   : > { %s7010_s23 = scalar_lea.vmem %s7009_s20, 8192  ;;  %p7011_p2 = scmp.lt.s32.totalorder %s7367_s17, %s7009_s20 }
  0x8b   : > { %p7006_p13 = pnand %p7004_p11, %p9184_p6  ;;  %p7012_p3 = scmp.lt.s32.totalorder %s7010_s23, %s7003_s24 }
  0x8d   : > { %p7007_p7 = pneg %p7006_p13  ;;  %p7013_p12 = por %p7012_p3, %p7011_p2 }
  0x8f   : > { %p7014_p9 = pnand %p7013_p12, %p7007_p7 }
  0x91   : > { %7017 = shalt.err (!%p7014_p9)
}
  0x92   : > { %s7108_s30 = smov 256   ;;  %s7109_s9 = smov 16  }
  0x93   : > { %p9185_p8 = scmp.ne.s32.totalorder %s9177_s10, 0  ;;  %s7018_s14 = scalar_lea.hbm %s7334_s26, 2048 }
  0x94   : > { %p7019_p10 = scmp.ne.s32.totalorder %s7334_s26, %s7018_s14  ;;  %s7023_s6 = scalar_lea.hbm %s9080_s4, 4096 }
  0x95   : > { %6716 = dma.hbm_to_vmem [thread:$0]  (!%p9185_p8), %s7365_s8, 4096, %s7367_s17, %s272_s18, %s7108_s30, %s7108_s30, %s7109_s9  }
  0x96   : > { %p7021_p1 = pnand %p7019_p10, %p9184_p6  ;;  %p7024_p0 = scmp.lt.u32.totalorder %s7334_s26, %s9080_s4 }
  0x97   : > { %p7025_p5 = scmp.lt.u32.totalorder %s7023_s6, %s7018_s14  ;;  %p7027_p13 = scmp.lt.u32.totalorder %s7018_s14, %s7334_s26 }
  0x98   : > { %p7022_p4 = pneg %p7021_p1 }
  0x99   : > { %p7026_p11 = por %p7025_p5, %p7024_p0 }
  0x9b   : > { %p7028_p7 = por %p7027_p13, %p7026_p11 }
  0x9d   : > { %p7029_p2 = pnand %p7028_p7, %p7022_p4 }
  0x9f   : > { %7032 = shalt.err (!%p7029_p2)
}
  0xa0   : > { %s7033_s19 = scalar_lea.vmem %s7338_s1, 2048  ;;  %s7110_s8 = smov [#allocation10]  }
  0xa1   : > { %p7034_p3 = scmp.ne.s32.totalorder %s7338_s1, %s7033_s19  ;;  %s7038_s17 = sshll.u32 %s7110_s8, 4  ;;  %s7039_s17 = int_to_ptr.vmem [resolvable:$false] %s7038_s17 }
  0xa2   : > { %s7040_s18 = scalar_lea.vmem %s7039_s17, 4096  ;;  %p7041_p10 = scmp.lt.s32.totalorder %s7338_s1, %s7039_s17 }
  0xa3   : > { %p7036_p12 = pnand %p7034_p3, %p9184_p6  ;;  %p7042_p1 = scmp.lt.s32.totalorder %s7040_s18, %s7033_s19 }
  0xa5   : > { %p7037_p9 = pneg %p7036_p12  ;;  %p7043_p0 = por %p7042_p1, %p7041_p10 }
  0xa7   : > { %p7044_p5 = pnand %p7043_p0, %p7037_p9 }
  0xa9   : > { %7047 = shalt.err (!%p7044_p5)
}
  0xaa   : > { %6722 = dma.hbm_to_vmem [thread:$0]  (!%p9185_p8), %s7334_s26, 2048, %s7338_s1, %s7296_s21, %s7104_s29, %s7104_s29, %s7105_s16  }
  0xab   : > { %p9186_p6 = scmp.ne.s32.totalorder %s9172_s15, 0 }
  0xad   : > { %337 = sbr.rel (%p9186_p6) target bundleno = 1070 (0x42e), region = 40 }
  0xb4   : > { %s7421_s22 = sand.u32 1, %s7090_s25   ;;  %p9187_p4 = scmp.ne.s32.totalorder %s9168_s12, 0 }
  0xb5   : > { %s5381_s5 = sshll.u32 %s7421_s22, 8  ;;  %s340_s20 = scalar_lea.sflag [#allocation3], %s7421_s22 }
  0xb6   : > { %s7427_s10 = scalar_lea.vmem [#allocation2], %s5381_s5 }
  0xb7   : > { %7065 = dma.done.wait (%p9187_p4), %s340_s20, 4096  }
  0xb8   : > { %7067 = vsyncadd (%p9187_p4), %s340_s20, 4294963200  ;;  %p9188_p8 = scmp.eq.s32.totalorder %s7194_s28, 0 }
  0xba   : > { %7069 = dma.done.wait (%p9188_p8), [#allocation6], 32896   ;;  %p9189_p11 = pmov %p9188_p8 }
  0xbb   : > { %s356_s1 = sand.u32 1, %s7194_s28   ;;  %s7439_s15 = sshll.u32 %s7421_s22, 7 }
  0xbc   : > { %7071 = vsyncadd (%p9189_p11), [#allocation6], 4294934400  ;;  %s357_s21 = scalar_lea.sflag [#allocation9], %s356_s1  ;;  %s7444_s29 = scalar_lea.vmem [#allocation8], %s7439_s15 }
  0xbd   : > { %7073 = dma.done.wait (%p9187_p4), %s357_s21, 4096  }
  0xbe   : > { %7075 = vsyncadd (%p9187_p4), %s357_s21, 4294963200  ;;  %v458_v0 = vld [vmem:[#allocation5] sm:$0xff]  ;;  %v459_v2 = vld [vmem:[#allocation5 + $0x8] sm:$0xff]  ;;  %s7111_s12 = smov 64   ;;  %s8050_s16 = scalar_lea.vmem [#allocation10], %s7439_s15  ;;  %vm3276_vm0 = vcmask 523264  }
  0xbf   : > { %v462_v1 = vld [vmem:[#allocation5 + $0x20] sm:$0xff]  ;;  %v463_v4 = vld [vmem:[#allocation5 + $0x28] sm:$0xff]  ;;  %s8089_s26 = scalar_lea.vmem [#allocation11], %s5381_s5  ;;  %s8445_s23 = scalar_lea.vmem [#allocation14], %s7439_s15 }
  0xc0   : > { %v5422_v3 = vcombine.high %v458_v0, %v462_v1  ;;  %v5421_v5 = vcombine.low %v458_v0, %v462_v1  ;;  %v466_v6 = vld [vmem:[#allocation5 + $0x40] sm:$0xff]  ;;  %v5424_v8 = vcombine.high %v459_v2, %v463_v4  ;;  %v5423_v9 = vcombine.low %v459_v2, %v463_v4  ;;  %v467_v11 = vld [vmem:[#allocation5 + $0x48] sm:$0xff]  ;;  %s8875_s30 = scalar_lea.vmem [#allocation12], %s7439_s15  ;;  %s5027_s9 = scalar_lea.sflag [#allocation4], %s7421_s22 }
  0xc1   : > { %v470_v7 = vld [vmem:[#allocation5 + $0x60] sm:$0xff]  ;;  %v471_v12 = vld [vmem:[#allocation5 + $0x68] sm:$0xff]  ;;  %s8992_s14 = scalar_lea.sflag [#allocation13], %s356_s1 }
  0xc2   : > { %v5430_v10 = vcombine.high %v466_v6, %v470_v7  ;;  %v474_v13 = vld [vmem:[#allocation5 + $0x80] sm:$0xff]  ;;  %2196 = vmatprep.subr.bf16.mxu0 %v5422_v3  ;;  %v5432_v14 = vcombine.high %v467_v11, %v471_v12  ;;  %v475_v16 = vld [vmem:[#allocation5 + $0x88] sm:$0xff]  ;;  %2422 = vmatprep.subr.bf16.mxu1 %v5424_v8  ;;  %v5429_v18 = vcombine.low %v466_v6, %v470_v7 }
  0xc3   : > { %v478_v15 = vld [vmem:[#allocation5 + $0xa0] sm:$0xff]  ;;  %v479_v17 = vld [vmem:[#allocation5 + $0xa8] sm:$0xff]  ;;  %2197 = vmatpush1.bf16.msra.mxu0 %v5421_v5  ;;  %2423 = vmatpush1.bf16.msra.mxu1 %v5423_v9  ;;  %v5431_v19 = vcombine.low %v467_v11, %v471_v12 }
  0xc4   : > { %2198 = vmatprep.subr.bf16.mxu0 %v5430_v10  ;;  %v5438_v20 = vcombine.high %v474_v13, %v478_v15  ;;  %2424 = vmatprep.subr.bf16.mxu1 %v5432_v14  ;;  %v5440_v21 = vcombine.high %v475_v16, %v479_v17  ;;  %v482_v22 = vld [vmem:[#allocation5 + $0xc0] sm:$0xff]  ;;  %v483_v24 = vld [vmem:[#allocation5 + $0xc8] sm:$0xff]  ;;  %v5437_v26 = vcombine.low %v474_v13, %v478_v15 }
  0xc5   : > { %v486_v23 = vld [vmem:[#allocation5 + $0xe0] sm:$0xff]  ;;  %v487_v25 = vld [vmem:[#allocation5 + $0xe8] sm:$0xff]  ;;  %v5439_v27 = vcombine.low %v475_v16, %v479_v17 }
  0xc6   : > { %v5446_v28 = vcombine.high %v482_v22, %v486_v23  ;;  %v5448_v29 = vcombine.high %v483_v24, %v487_v25  ;;  %v490_v30 = vld [vmem:[#allocation5 + $0x100] sm:$0xff]  ;;  %v491_v32 = vld [vmem:[#allocation5 + $0x108] sm:$0xff]  ;;  %v5445_v34 = vcombine.low %v482_v22, %v486_v23  ;;  %v5447_v35 = vcombine.low %v483_v24, %v487_v25 }
  0xc7   : > { %2199 = vmatpush1.bf16.msra.mxu0 %v5429_v18  ;;  %2425 = vmatpush1.bf16.msra.mxu1 %v5431_v19  ;;  %v494_v31 = vld [vmem:[#allocation5 + $0x120] sm:$0xff]  ;;  %v495_v33 = vld [vmem:[#allocation5 + $0x128] sm:$0xff] }
  0xc8   : > { %2200 = vmatprep.subr.bf16.mxu0 %v5438_v20  ;;  %2426 = vmatprep.subr.bf16.mxu1 %v5440_v21  ;;  %v5454_v36 = vcombine.high %v490_v30, %v494_v31  ;;  %v5456_v37 = vcombine.high %v491_v32, %v495_v33  ;;  %v498_v38 = vld [vmem:[#allocation5 + $0x140] sm:$0xff]  ;;  %v499_v40 = vld [vmem:[#allocation5 + $0x148] sm:$0xff]  ;;  %v5453_v42 = vcombine.low %v490_v30, %v494_v31 }
  0xc9   : > { %v502_v39 = vld [vmem:[#allocation5 + $0x160] sm:$0xff]  ;;  %v503_v41 = vld [vmem:[#allocation5 + $0x168] sm:$0xff]  ;;  %v5455_v43 = vcombine.low %v491_v32, %v495_v33 }
  0xca   : > { %v5462_v44 = vcombine.high %v498_v38, %v502_v39  ;;  %v5464_v45 = vcombine.high %v499_v40, %v503_v41  ;;  %v506_v46 = vld [vmem:[#allocation5 + $0x180] sm:$0xff]  ;;  %v507_v48 = vld [vmem:[#allocation5 + $0x188] sm:$0xff]  ;;  %v5461_v50 = vcombine.low %v498_v38, %v502_v39  ;;  %v5463_v51 = vcombine.low %v499_v40, %v503_v41 }
  0xcb   : > { %2201 = vmatpush1.bf16.msra.mxu0 %v5437_v26  ;;  %2427 = vmatpush1.bf16.msra.mxu1 %v5439_v27  ;;  %v510_v47 = vld [vmem:[#allocation5 + $0x1a0] sm:$0xff]  ;;  %v511_v49 = vld [vmem:[#allocation5 + $0x1a8] sm:$0xff] }
  0xcc   : > { %2202 = vmatprep.subr.bf16.mxu0 %v5446_v28  ;;  %2428 = vmatprep.subr.bf16.mxu1 %v5448_v29  ;;  %v5470_v52 = vcombine.high %v506_v46, %v510_v47  ;;  %v5472_v53 = vcombine.high %v507_v48, %v511_v49  ;;  %v514_v54 = vld [vmem:[#allocation5 + $0x1c0] sm:$0xff]  ;;  %v515_v57 = vld [vmem:[#allocation5 + $0x1c8] sm:$0xff]  ;;  %v5469_v59 = vcombine.low %v506_v46, %v510_v47 }
  0xcd   : > { %v518_v55 = vld [vmem:[#allocation5 + $0x1e0] sm:$0xff]  ;;  %v519_v58 = vld [vmem:[#allocation5 + $0x1e8] sm:$0xff]  ;;  %v5471_v60 = vcombine.low %v507_v48, %v511_v49 }
  0xce   : > { %v6801_v56 = vld [vmem:[%s7427_s10 + $0x4] ss:$16 sps:$4 sm:$0xff]   ;;  %v5478_v61 = vcombine.high %v514_v54, %v518_v55  ;;  %v5480_v62 = vcombine.high %v515_v57, %v519_v58  ;;  %v523_v1 = vld [vmem:[#allocation5 + $0x208] sm:$0xff]  ;;  %v5477_v3 = vcombine.low %v514_v54, %v518_v55  ;;  %v5479_v4 = vcombine.low %v515_v57, %v519_v58 }
  0xcf   : > { %2203 = vmatpush1.bf16.msra.mxu0 %v5445_v34  ;;  %2429 = vmatpush1.bf16.msra.mxu1 %v5447_v35  ;;  %v522_v63 = vld [vmem:[#allocation5 + $0x200] sm:$0xff]  ;;  %v527_v2 = vld [vmem:[#allocation5 + $0x228] sm:$0xff] }
  0xd0   : > { %2204 = vmatprep.subr.bf16.mxu0 %v5454_v36  ;;  %2430 = vmatprep.subr.bf16.mxu1 %v5456_v37  ;;  %v526_v0 = vld [vmem:[#allocation5 + $0x220] sm:$0xff]  ;;  %v5488_v6 = vcombine.high %v523_v1, %v527_v2  ;;  %v531_v9 = vld [vmem:[#allocation5 + $0x248] sm:$0xff]  ;;  %v5487_v12 = vcombine.low %v523_v1, %v527_v2 }
  0xd1   : > { %2228 = vmatprep.mubr.bf16.mxu0 %v6801_v56  ;;  %2454 = vmatprep.mubr.bf16.mxu1 %v6801_v56  ;;  %v5486_v5 = vcombine.high %v522_v63, %v526_v0  ;;  %v530_v7 = vld [vmem:[#allocation5 + $0x240] sm:$0xff]  ;;  %v535_v10 = vld [vmem:[#allocation5 + $0x268] sm:$0xff]  ;;  %v5485_v11 = vcombine.low %v522_v63, %v526_v0 }
  0xd2   : > { %v534_v8 = vld [vmem:[#allocation5 + $0x260] sm:$0xff]  ;;  %v5496_v14 = vcombine.high %v531_v9, %v535_v10  ;;  %v539_v17 = vld [vmem:[#allocation5 + $0x288] sm:$0xff]  ;;  %v5495_v20 = vcombine.low %v531_v9, %v535_v10 }
  0xd3   : > { %2205 = vmatpush1.bf16.msra.mxu0 %v5453_v42  ;;  %2431 = vmatpush1.bf16.msra.mxu1 %v5455_v43  ;;  %v5494_v13 = vcombine.high %v530_v7, %v534_v8  ;;  %v538_v15 = vld [vmem:[#allocation5 + $0x280] sm:$0xff]  ;;  %v543_v18 = vld [vmem:[#allocation5 + $0x2a8] sm:$0xff]  ;;  %v5493_v19 = vcombine.low %v530_v7, %v534_v8 }
  0xd4   : > { %2206 = vmatprep.subr.bf16.mxu0 %v5462_v44  ;;  %2432 = vmatprep.subr.bf16.mxu1 %v5464_v45  ;;  %v542_v16 = vld [vmem:[#allocation5 + $0x2a0] sm:$0xff]  ;;  %v5504_v22 = vcombine.high %v539_v17, %v543_v18  ;;  %v547_v25 = vld [vmem:[#allocation5 + $0x2c8] sm:$0xff]  ;;  %v5503_v28 = vcombine.low %v539_v17, %v543_v18 }
  0xd5   : > { %v5502_v21 = vcombine.high %v538_v15, %v542_v16  ;;  %v546_v23 = vld [vmem:[#allocation5 + $0x2c0] sm:$0xff]  ;;  %v551_v26 = vld [vmem:[#allocation5 + $0x2e8] sm:$0xff]  ;;  %v5501_v27 = vcombine.low %v538_v15, %v542_v16 }
  0xd6   : > { %v550_v24 = vld [vmem:[#allocation5 + $0x2e0] sm:$0xff]  ;;  %v5512_v30 = vcombine.high %v547_v25, %v551_v26  ;;  %v555_v33 = vld [vmem:[#allocation5 + $0x308] sm:$0xff]  ;;  %v5511_v36 = vcombine.low %v547_v25, %v551_v26 }
  0xd7   : > { %2207 = vmatpush1.bf16.msra.mxu0 %v5461_v50  ;;  %2433 = vmatpush1.bf16.msra.mxu1 %v5463_v51  ;;  %v5510_v29 = vcombine.high %v546_v23, %v550_v24  ;;  %v554_v31 = vld [vmem:[#allocation5 + $0x300] sm:$0xff]  ;;  %v559_v34 = vld [vmem:[#allocation5 + $0x328] sm:$0xff]  ;;  %v5509_v35 = vcombine.low %v546_v23, %v550_v24 }
  0xd8   : > { %2208 = vmatprep.subr.bf16.mxu0 %v5470_v52  ;;  %2434 = vmatprep.subr.bf16.mxu1 %v5472_v53  ;;  %v558_v32 = vld [vmem:[#allocation5 + $0x320] sm:$0xff]  ;;  %v5520_v38 = vcombine.high %v555_v33, %v559_v34  ;;  %v563_v41 = vld [vmem:[#allocation5 + $0x348] sm:$0xff]  ;;  %v5519_v44 = vcombine.low %v555_v33, %v559_v34 }
  0xd9   : > { %v5518_v37 = vcombine.high %v554_v31, %v558_v32  ;;  %v562_v39 = vld [vmem:[#allocation5 + $0x340] sm:$0xff]  ;;  %v567_v42 = vld [vmem:[#allocation5 + $0x368] sm:$0xff]  ;;  %v5517_v43 = vcombine.low %v554_v31, %v558_v32 }
  0xda   : > { %v566_v40 = vld [vmem:[#allocation5 + $0x360] sm:$0xff]  ;;  %v5528_v46 = vcombine.high %v563_v41, %v567_v42  ;;  %v571_v49 = vld [vmem:[#allocation5 + $0x388] sm:$0xff]  ;;  %v5527_v52 = vcombine.low %v563_v41, %v567_v42 }
  0xdb   : > { %2209 = vmatpush1.bf16.msra.mxu0 %v5469_v59  ;;  %2435 = vmatpush1.bf16.msra.mxu1 %v5471_v60  ;;  %v5526_v45 = vcombine.high %v562_v39, %v566_v40  ;;  %v570_v47 = vld [vmem:[#allocation5 + $0x380] sm:$0xff]  ;;  %v575_v50 = vld [vmem:[#allocation5 + $0x3a8] sm:$0xff]  ;;  %v5525_v51 = vcombine.low %v562_v39, %v566_v40 }
  0xdc   : > { %2210 = vmatprep.subr.bf16.mxu0 %v5478_v61  ;;  %2436 = vmatprep.subr.bf16.mxu1 %v5480_v62  ;;  %v574_v48 = vld [vmem:[#allocation5 + $0x3a0] sm:$0xff]  ;;  %v5536_v54 = vcombine.high %v571_v49, %v575_v50  ;;  %v579_v57 = vld [vmem:[#allocation5 + $0x3c8] sm:$0xff]  ;;  %v5535_v60 = vcombine.low %v571_v49, %v575_v50 }
  0xdd   : > { %v5534_v53 = vcombine.high %v570_v47, %v574_v48  ;;  %v578_v55 = vld [vmem:[#allocation5 + $0x3c0] sm:$0xff]  ;;  %v583_v58 = vld [vmem:[#allocation5 + $0x3e8] sm:$0xff]  ;;  %v5533_v59 = vcombine.low %v570_v47, %v574_v48 }
  0xde   : > { %v582_v56 = vld [vmem:[#allocation5 + $0x3e0] sm:$0xff]  ;;  %v5544_v62 = vcombine.high %v579_v57, %v583_v58  ;;  %v587_v1 = vld [vmem:[#allocation5 + $0x408] sm:$0xff] }
  0xdf   : > { %2211 = vmatpush1.bf16.msra.mxu0 %v5477_v3  ;;  %2437 = vmatpush1.bf16.msra.mxu1 %v5479_v4  ;;  %v5542_v61 = vcombine.high %v578_v55, %v582_v56  ;;  %v586_v63 = vld [vmem:[#allocation5 + $0x400] sm:$0xff]  ;;  %v591_v2 = vld [vmem:[#allocation5 + $0x428] sm:$0xff]  ;;  %v5541_v3 = vcombine.low %v578_v55, %v582_v56  ;;  %v5543_v4 = vcombine.low %v579_v57, %v583_v58 }
  0xe0   : > { %2212 = vmatprep.subr.bf16.mxu0 %v5486_v5  ;;  %2438 = vmatprep.subr.bf16.mxu1 %v5488_v6  ;;  %v590_v0 = vld [vmem:[#allocation5 + $0x420] sm:$0xff]  ;;  %v5552_v7 = vcombine.high %v587_v1, %v591_v2  ;;  %v595_v10 = vld [vmem:[#allocation5 + $0x448] sm:$0xff] }
  0xe1   : > { %v7452_v5 = vld [vmem:[%s7427_s10] ss:$16 sps:$4 sm:$0xff]   ;;  %v5550_v6 = vcombine.high %v586_v63, %v590_v0  ;;  %v7455_v16 = vld [vmem:[%s7427_s10 + $0x24] ss:$16 sps:$4 sm:$0xff]   ;;  %v631_v47 = vld [vmem:[#allocation5 + $0x568] sm:$0xff] }
  0xe2   : > { %v594_v8 = vld [vmem:[#allocation5 + $0x440] sm:$0xff]  ;;  %v635_v55 = vld [vmem:[#allocation5 + $0x588] sm:$0xff] }
  0xe3   : > { %2213 = vmatpush1.bf16.msra.mxu0 %v5485_v11  ;;  %2439 = vmatpush1.bf16.msra.mxu1 %v5487_v12  ;;  %v598_v9 = vld [vmem:[#allocation5 + $0x460] sm:$0xff]  ;;  %v599_v11 = vld [vmem:[#allocation5 + $0x468] sm:$0xff]  ;;  %v5549_v12 = vcombine.low %v586_v63, %v590_v0 }
  0xe4   : > { %2214 = vmatprep.subr.bf16.mxu0 %v5494_v13  ;;  %2440 = vmatprep.subr.bf16.mxu1 %v5496_v14  ;;  %v5551_v13 = vcombine.low %v587_v1, %v591_v2  ;;  %v5558_v14 = vcombine.high %v594_v8, %v598_v9  ;;  %v5560_v15 = vcombine.high %v595_v10, %v599_v11  ;;  %v602_v17 = vld [vmem:[#allocation5 + $0x480] sm:$0xff]  ;;  %v639_v56 = vld [vmem:[#allocation5 + $0x5a8] sm:$0xff] }
  0xe5   : > { %v606_v18 = vld [vmem:[#allocation5 + $0x4a0] sm:$0xff]  ;;  %v643_v0 = vld [vmem:[#allocation5 + $0x5c8] sm:$0xff] }
  0xe6   : > { %v5566_v23 = vcombine.high %v602_v17, %v606_v18  ;;  %v610_v25 = vld [vmem:[#allocation5 + $0x4c0] sm:$0xff]  ;;  %v647_v1 = vld [vmem:[#allocation5 + $0x5e8] sm:$0xff] }
  0xe7   : > { %2215 = vmatpush1.bf16.msra.mxu0 %v5493_v19  ;;  %2441 = vmatpush1.bf16.msra.mxu1 %v5495_v20  ;;  %v603_v19 = vld [vmem:[#allocation5 + $0x488] sm:$0xff]  ;;  %v614_v26 = vld [vmem:[#allocation5 + $0x4e0] sm:$0xff] }
  0xe8   : > { %2216 = vmatprep.subr.bf16.mxu0 %v5502_v21  ;;  %2442 = vmatprep.subr.bf16.mxu1 %v5504_v22  ;;  %v607_v20 = vld [vmem:[#allocation5 + $0x4a8] sm:$0xff]  ;;  %v5557_v21 = vcombine.low %v594_v8, %v598_v9  ;;  %v5559_v22 = vcombine.low %v595_v10, %v599_v11  ;;  %v5574_v32 = vcombine.high %v610_v25, %v614_v26  ;;  %v7465_v34 = vld [vmem:[%s7427_s10 + $0x44] ss:$16 sps:$4 sm:$0xff]   ;;  %v7482_v63 = vld [vmem:[%s7427_s10 + $0x60] ss:$16 sps:$4 sm:$0xff]  }
  0xe9   : > { %v5568_v24 = vcombine.high %v603_v19, %v607_v20  ;;  %v5567_v31 = vcombine.low %v603_v19, %v607_v20  ;;  %v5573_v39 = vcombine.low %v610_v25, %v614_v26  ;;  %v650_v8 = vld [vmem:[#allocation5 + $0x600] sm:$0xff]  ;;  %v651_v10 = vld [vmem:[#allocation5 + $0x608] sm:$0xff] }
  0xea   : > { %v654_v9 = vld [vmem:[#allocation5 + $0x620] sm:$0xff]  ;;  %v655_v11 = vld [vmem:[#allocation5 + $0x628] sm:$0xff] }
  0xeb   : > { %2217 = vmatpush1.bf16.msra.mxu0 %v5501_v27  ;;  %2443 = vmatpush1.bf16.msra.mxu1 %v5503_v28  ;;  %v7462_v27 = vld [vmem:[%s7427_s10 + $0x20] ss:$16 sps:$4 sm:$0xff]   ;;  %v611_v28 = vld [vmem:[#allocation5 + $0x4c8] sm:$0xff]  ;;  %v7495_v26 = vld [vmem:[%s7427_s10 + $0xa4] ss:$16 sps:$4 sm:$0xff]  }
  0xec   : > { %2218 = vmatprep.subr.bf16.mxu0 %v5510_v29  ;;  %2444 = vmatprep.subr.bf16.mxu1 %v5512_v30  ;;  %v615_v29 = vld [vmem:[#allocation5 + $0x4e8] sm:$0xff]  ;;  %v5565_v30 = vcombine.low %v602_v17, %v606_v18  ;;  %v658_v17 = vld [vmem:[#allocation5 + $0x640] sm:$0xff] }
  0xed   : > { %v5576_v33 = vcombine.high %v611_v28, %v615_v29  ;;  %v5575_v40 = vcombine.low %v611_v28, %v615_v29  ;;  %v662_v18 = vld [vmem:[#allocation5 + $0x660] sm:$0xff]  ;;  %v659_v20 = vld [vmem:[#allocation5 + $0x648] sm:$0xff] }
  0xee   : > { %v7492_v19 = vld [vmem:[%s7427_s10 + $0x80] ss:$16 sps:$4 sm:$0xff]  }
  0xef   : > { %2219 = vmatpush1.bf16.msra.mxu0 %v5509_v35  ;;  %2445 = vmatpush1.bf16.msra.mxu1 %v5511_v36  ;;  %v618_v35 = vld [vmem:[#allocation5 + $0x500] sm:$0xff] }
  0xf0   : > { %2220 = vmatprep.subr.bf16.mxu0 %v5518_v37  ;;  %2446 = vmatprep.subr.bf16.mxu1 %v5520_v38  ;;  %v622_v36 = vld [vmem:[#allocation5 + $0x520] sm:$0xff]  ;;  %v619_v37 = vld [vmem:[#allocation5 + $0x508] sm:$0xff] }
  0xf1   : > { %v623_v38 = vld [vmem:[#allocation5 + $0x528] sm:$0xff]  ;;  %v5582_v41 = vcombine.high %v618_v35, %v622_v36  ;;  %v5581_v48 = vcombine.low %v618_v35, %v622_v36  ;;  %v666_v28 = vld [vmem:[#allocation5 + $0x680] sm:$0xff] }
  0xf2   : > { %v5584_v42 = vcombine.high %v619_v37, %v623_v38  ;;  %v5583_v49 = vcombine.low %v619_v37, %v623_v38  ;;  %v670_v29 = vld [vmem:[#allocation5 + $0x6a0] sm:$0xff] }
  0xf3   : > { %2221 = vmatpush1.bf16.msra.mxu0 %v5517_v43  ;;  %2447 = vmatpush1.bf16.msra.mxu1 %v5519_v44  ;;  %v626_v43 = vld [vmem:[#allocation5 + $0x540] sm:$0xff]  ;;  %v5630_v35 = vcombine.high %v666_v28, %v670_v29 }
  0xf4   : > { %2222 = vmatprep.subr.bf16.mxu0 %v5526_v45  ;;  %2448 = vmatprep.subr.bf16.mxu1 %v5528_v46  ;;  %v630_v44 = vld [vmem:[#allocation5 + $0x560] sm:$0xff]  ;;  %v627_v46 = vld [vmem:[#allocation5 + $0x548] sm:$0xff] }
  0xf5   : > { %v7472_v45 = vld [vmem:[%s7427_s10 + $0x40] ss:$16 sps:$4 sm:$0xff]   ;;  %v5590_v50 = vcombine.high %v626_v43, %v630_v44  ;;  %v5589_v57 = vcombine.low %v626_v43, %v630_v44  ;;  %v5591_v58 = vcombine.low %v627_v46, %v631_v47 }
  0xf6   : > { %v674_v37 = vld [vmem:[#allocation5 + $0x6c0] sm:$0xff] }
  0xf7   : > { %2223 = vmatpush1.bf16.msra.mxu0 %v5525_v51  ;;  %2449 = vmatpush1.bf16.msra.mxu1 %v5527_v52  ;;  %v5592_v51 = vcombine.high %v627_v46, %v631_v47  ;;  %v7475_v52 = vld [vmem:[%s7427_s10 + $0x64] ss:$16 sps:$4 sm:$0xff]  }
  0xf8   : > { %2224 = vmatprep.subr.bf16.mxu0 %v5534_v53  ;;  %2450 = vmatprep.subr.bf16.mxu1 %v5536_v54  ;;  %v634_v53 = vld [vmem:[#allocation5 + $0x580] sm:$0xff] }
  0xf9   : > { %v638_v54 = vld [vmem:[#allocation5 + $0x5a0] sm:$0xff] }
  0xfa   : > { %v5597_v2 = vcombine.low %v634_v53, %v638_v54  ;;  %v678_v38 = vld [vmem:[#allocation5 + $0x6e0] sm:$0xff] }
  0xfb   : > { %2225 = vmatpush1.bf16.msra.mxu0 %v5533_v59  ;;  %2451 = vmatpush1.bf16.msra.mxu1 %v5535_v60  ;;  %v5598_v59 = vcombine.high %v634_v53, %v638_v54  ;;  %v5600_v60 = vcombine.high %v635_v55, %v639_v56  ;;  %v5638_v44 = vcombine.high %v674_v37, %v678_v38  ;;  %v7505_v47 = vld [vmem:[%s7427_s10 + $0xc4] ss:$16 sps:$4 sm:$0xff]  }
  0xfc   : > { %2226 = vmatprep.subr.bf16.mxu0 %v5542_v61  ;;  %2452 = vmatprep.subr.bf16.mxu1 %v5544_v62  ;;  %v642_v61 = vld [vmem:[#allocation5 + $0x5c0] sm:$0xff]  ;;  %v5637_v53 = vcombine.low %v674_v37, %v678_v38  ;;  %v7535_v37 = vld [vmem:[%s7427_s10 + $0x2c] ss:$16 sps:$4 sm:$0xff]  }
  0xfd   : > { %v646_v62 = vld [vmem:[#allocation5 + $0x5e0] sm:$0xff] }
  0xff   : > { %2227 = vmatpush1.bf16.msra.mxu0 %v5541_v3  ;;  %2453 = vmatpush1.bf16.msra.mxu1 %v5543_v4  ;;  %v5599_v3 = vcombine.low %v635_v55, %v639_v56  ;;  %v5606_v4 = vcombine.high %v642_v61, %v646_v62 }
 0x100   : > { %2309 = vmatprep.subr.bf16.mxu0 %v5550_v6  ;;  %2535 = vmatprep.subr.bf16.mxu1 %v5552_v7  ;;  %v5608_v6 = vcombine.high %v643_v0, %v647_v1  ;;  %v7485_v7 = vld [vmem:[%s7427_s10 + $0x84] ss:$16 sps:$4 sm:$0xff]  }
 0x102   : > { %2229 = vmatmul.mubr.bf16.vlgmr.msra.gmra.mrb[0].mxu0 %v7452_v5  ;;  %2455 = vmatmul.mubr.bf16.vlgmr.msra.gmra.mrb[0].mxu1 %v7452_v5 }
 0x103   : > { %2310 = vmatpush1.bf16.msra.mxu0 %v5549_v12  ;;  %2536 = vmatpush1.bf16.msra.mxu1 %v5551_v13  ;;  %v5605_v12 = vcombine.low %v642_v61, %v646_v62  ;;  %v5607_v13 = vcombine.low %v643_v0, %v647_v1  ;;  %v695_v61 = vld [vmem:[#allocation5 + $0x768] sm:$0xff] }
 0x104   : > { %2311 = vmatprep.subr.bf16.mxu0 %v5558_v14  ;;  %2537 = vmatprep.subr.bf16.mxu1 %v5560_v15  ;;  %v5614_v14 = vcombine.high %v650_v8, %v654_v9  ;;  %v5616_v15 = vcombine.high %v651_v10, %v655_v11 }
 0x105   : > { %2238 = vmatprep.mubr.bf16.mxu0 %v7455_v16  ;;  %2464 = vmatprep.mubr.bf16.mxu1 %v7455_v16 }
 0x107   : > { %2312 = vmatpush1.bf16.msra.mxu0 %v5557_v21  ;;  %2538 = vmatpush1.bf16.msra.mxu1 %v5559_v22  ;;  %v663_v21 = vld [vmem:[#allocation5 + $0x668] sm:$0xff]  ;;  %v5613_v22 = vcombine.low %v650_v8, %v654_v9 }
 0x108   : > { %2313 = vmatprep.subr.bf16.mxu0 %v5566_v23  ;;  %2539 = vmatprep.subr.bf16.mxu1 %v5568_v24  ;;  %v5615_v23 = vcombine.low %v651_v10, %v655_v11  ;;  %v5622_v24 = vcombine.high %v658_v17, %v662_v18  ;;  %v5624_v25 = vcombine.high %v659_v20, %v663_v21  ;;  %v699_v8 = vld [vmem:[#allocation5 + $0x788] sm:$0xff] }
 0x109   : > { %v703_v9 = vld [vmem:[#allocation5 + $0x7a8] sm:$0xff] }
 0x10a   : > { %2239 = vmatmul.mubr.bf16.gmra.mrb[4].mxu0 %v7462_v27  ;;  %2465 = vmatmul.mubr.bf16.gmra.mrb[4].mxu1 %v7462_v27 }
 0x10b   : > { %2314 = vmatpush1.bf16.msra.mxu0 %v5565_v30  ;;  %2540 = vmatpush1.bf16.msra.mxu1 %v5567_v31  ;;  %v667_v30 = vld [vmem:[#allocation5 + $0x688] sm:$0xff] }
 0x10c   : > { %2315 = vmatprep.subr.bf16.mxu0 %v5574_v32  ;;  %2541 = vmatprep.subr.bf16.mxu1 %v5576_v33  ;;  %v671_v31 = vld [vmem:[#allocation5 + $0x6a8] sm:$0xff]  ;;  %v5621_v32 = vcombine.low %v658_v17, %v662_v18  ;;  %v5623_v33 = vcombine.low %v659_v20, %v663_v21  ;;  %v7522_v17 = vld [vmem:[%s7427_s10 + $0xe0] ss:$16 sps:$4 sm:$0xff]  }
 0x10d   : > { %2248 = vmatprep.mubr.bf16.mxu0 %v7465_v34  ;;  %2474 = vmatprep.mubr.bf16.mxu1 %v7465_v34  ;;  %v5632_v36 = vcombine.high %v667_v30, %v671_v31  ;;  %v5631_v43 = vcombine.low %v667_v30, %v671_v31  ;;  %v707_v18 = vld [vmem:[#allocation5 + $0x7c8] sm:$0xff] }
 0x10e   : > { %v711_v20 = vld [vmem:[#allocation5 + $0x7e8] sm:$0xff] }
 0x10f   : > { %2316 = vmatpush1.bf16.msra.mxu0 %v5573_v39  ;;  %2542 = vmatpush1.bf16.msra.mxu1 %v5575_v40  ;;  %v7502_v39 = vld [vmem:[%s7427_s10 + $0xa0] ss:$16 sps:$4 sm:$0xff]   ;;  %v675_v40 = vld [vmem:[#allocation5 + $0x6c8] sm:$0xff]  ;;  %v5671_v31 = vcombine.low %v707_v18, %v711_v20 }
 0x110   : > { %2317 = vmatprep.subr.bf16.mxu0 %v5582_v41  ;;  %2543 = vmatprep.subr.bf16.mxu1 %v5584_v42  ;;  %v679_v41 = vld [vmem:[#allocation5 + $0x6e8] sm:$0xff]  ;;  %v5629_v42 = vcombine.low %v666_v28, %v670_v29  ;;  %v460_v28 = vld [vmem:[#allocation5 + $0x10] sm:$0xff] }
 0x111   : > { %v5640_v46 = vcombine.high %v675_v40, %v679_v41  ;;  %v5639_v54 = vcombine.low %v675_v40, %v679_v41  ;;  %v464_v29 = vld [vmem:[#allocation5 + $0x30] sm:$0xff] }
 0x112   : > { %2249 = vmatmul.mubr.bf16.gmra.mrb[8].mxu0 %v7472_v45  ;;  %2475 = vmatmul.mubr.bf16.gmra.mrb[8].mxu1 %v7472_v45  ;;  %v5425_v38 = vcombine.low %v460_v28, %v464_v29  ;;  %v476_v41 = vld [vmem:[#allocation5 + $0x90] sm:$0xff] }
 0x113   : > { %2318 = vmatpush1.bf16.msra.mxu0 %v5581_v48  ;;  %2544 = vmatpush1.bf16.msra.mxu1 %v5583_v49  ;;  %v682_v48 = vld [vmem:[#allocation5 + $0x700] sm:$0xff] }
 0x114   : > { %2319 = vmatprep.subr.bf16.mxu0 %v5590_v50  ;;  %2545 = vmatprep.subr.bf16.mxu1 %v5592_v51  ;;  %v686_v49 = vld [vmem:[#allocation5 + $0x720] sm:$0xff]  ;;  %v683_v50 = vld [vmem:[#allocation5 + $0x708] sm:$0xff] }
 0x115   : > { %2258 = vmatprep.mubr.bf16.mxu0 %v7475_v52  ;;  %2484 = vmatprep.mubr.bf16.mxu1 %v7475_v52  ;;  %v687_v51 = vld [vmem:[#allocation5 + $0x728] sm:$0xff]  ;;  %v5646_v55 = vcombine.high %v682_v48, %v686_v49  ;;  %v5645_v62 = vcombine.low %v682_v48, %v686_v49  ;;  %v484_v48 = vld [vmem:[#allocation5 + $0xd0] sm:$0xff] }
 0x116   : > { %v5648_v56 = vcombine.high %v683_v50, %v687_v51  ;;  %v5647_v0 = vcombine.low %v683_v50, %v687_v51  ;;  %v488_v49 = vld [vmem:[#allocation5 + $0xf0] sm:$0xff]  ;;  %v7545_v50 = vld [vmem:[%s7427_s10 + $0x4c] ss:$16 sps:$4 sm:$0xff]  }
 0x117   : > { %2320 = vmatpush1.bf16.msra.mxu0 %v5589_v57  ;;  %2546 = vmatpush1.bf16.msra.mxu1 %v5591_v58  ;;  %v690_v57 = vld [vmem:[#allocation5 + $0x740] sm:$0xff] }
 0x118   : > { %2321 = vmatprep.subr.bf16.mxu0 %v5598_v59  ;;  %2547 = vmatprep.subr.bf16.mxu1 %v5600_v60  ;;  %v694_v58 = vld [vmem:[#allocation5 + $0x760] sm:$0xff]  ;;  %v691_v60 = vld [vmem:[#allocation5 + $0x748] sm:$0xff] }
 0x119   : > { %v7512_v59 = vld [vmem:[%s7427_s10 + $0xc0] ss:$16 sps:$4 sm:$0xff]   ;;  %v5654_v1 = vcombine.high %v690_v57, %v694_v58  ;;  %v5653_v10 = vcombine.low %v690_v57, %v694_v58  ;;  %v5655_v11 = vcombine.low %v691_v60, %v695_v61  ;;  %v7552_v58 = vld [vmem:[%s7427_s10 + $0x48] ss:$16 sps:$4 sm:$0xff]  }
 0x11a   : > { %2259 = vmatmul.mubr.bf16.gmra.mrb[12].mxu0 %v7482_v63  ;;  %2485 = vmatmul.mubr.bf16.gmra.mrb[12].mxu1 %v7482_v63 }
 0x11b   : > { %2322 = vmatpush1.bf16.msra.mxu0 %v5597_v2  ;;  %2548 = vmatpush1.bf16.msra.mxu1 %v5599_v3  ;;  %v5656_v2 = vcombine.high %v691_v60, %v695_v61  ;;  %v7515_v3 = vld [vmem:[%s7427_s10 + $0xe4] ss:$16 sps:$4 sm:$0xff]  }
 0x11c   : > { %2323 = vmatprep.subr.bf16.mxu0 %v5606_v4  ;;  %2549 = vmatprep.subr.bf16.mxu1 %v5608_v6  ;;  %v698_v4 = vld [vmem:[#allocation5 + $0x780] sm:$0xff]  ;;  %v500_v60 = vld [vmem:[#allocation5 + $0x150] sm:$0xff] }
 0x11d   : > { %2268 = vmatprep.mubr.bf16.mxu0 %v7485_v7  ;;  %2494 = vmatprep.mubr.bf16.mxu1 %v7485_v7  ;;  %v702_v6 = vld [vmem:[#allocation5 + $0x7a0] sm:$0xff]  ;;  %v504_v61 = vld [vmem:[#allocation5 + $0x170] sm:$0xff] }
 0x11e   : > { %v5661_v21 = vcombine.low %v698_v4, %v702_v6 }
 0x11f   : > { %2324 = vmatpush1.bf16.msra.mxu0 %v5605_v12  ;;  %2550 = vmatpush1.bf16.msra.mxu1 %v5607_v13  ;;  %v5662_v12 = vcombine.high %v698_v4, %v702_v6  ;;  %v5664_v13 = vcombine.high %v699_v8, %v703_v9  ;;  %v512_v4 = vld [vmem:[#allocation5 + $0x1b0] sm:$0xff]  ;;  %v5465_v6 = vcombine.low %v500_v60, %v504_v61 }
 0x120   : > { %2325 = vmatprep.subr.bf16.mxu0 %v5614_v14  ;;  %2551 = vmatprep.subr.bf16.mxu1 %v5616_v15  ;;  %v706_v14 = vld [vmem:[#allocation5 + $0x7c0] sm:$0xff] }
 0x121   : > { %v710_v15 = vld [vmem:[#allocation5 + $0x7e0] sm:$0xff] }
 0x122   : > { %2269 = vmatmul.mubr.bf16.gmra.mrb[16].mxu0 %v7492_v19  ;;  %2495 = vmatmul.mubr.bf16.gmra.mrb[16].mxu1 %v7492_v19  ;;  %v5669_v30 = vcombine.low %v706_v14, %v710_v15 }
 0x123   : > { %2326 = vmatpush1.bf16.msra.mxu0 %v5613_v22  ;;  %2552 = vmatpush1.bf16.msra.mxu1 %v5615_v23  ;;  %v5663_v22 = vcombine.low %v699_v8, %v703_v9  ;;  %v5670_v23 = vcombine.high %v706_v14, %v710_v15  ;;  %v7562_v9 = vld [vmem:[%s7427_s10 + $0x68] ss:$16 sps:$4 sm:$0xff]   ;;  %v524_v15 = vld [vmem:[#allocation5 + $0x210] sm:$0xff] }
 0x124   : > { %2327 = vmatprep.subr.bf16.mxu0 %v5622_v24  ;;  %2553 = vmatprep.subr.bf16.mxu1 %v5624_v25  ;;  %v5672_v24 = vcombine.high %v707_v18, %v711_v20  ;;  %v7525_v25 = vld [vmem:[%s7427_s10 + $0xc] ss:$16 sps:$4 sm:$0xff]   ;;  %v528_v18 = vld [vmem:[#allocation5 + $0x230] sm:$0xff] }
 0x125   : > { %2278 = vmatprep.mubr.bf16.mxu0 %v7495_v26  ;;  %2504 = vmatprep.mubr.bf16.mxu1 %v7495_v26 }
 0x127   : > { %2328 = vmatpush1.bf16.msra.mxu0 %v5621_v32  ;;  %2554 = vmatpush1.bf16.msra.mxu1 %v5623_v33  ;;  %v5426_v32 = vcombine.high %v460_v28, %v464_v29  ;;  %v7531_v33 = vld [vmem:[%s7427_s10 + $0x8] ss:$16 sps:$4 sm:$0xff]   ;;  %v7575_v28 = vld [vmem:[%s7427_s10 + $0xac] ss:$16 sps:$4 sm:$0xff]   ;;  %v5489_v29 = vcombine.low %v524_v15, %v528_v18 }
 0x128   : > { %2329 = vmatprep.subr.bf16.mxu0 %v5630_v35  ;;  %2555 = vmatprep.subr.bf16.mxu1 %v5632_v36  ;;  %v468_v35 = vld [vmem:[#allocation5 + $0x50] sm:$0xff] }
 0x129   : > { %v472_v36 = vld [vmem:[#allocation5 + $0x70] sm:$0xff] }
 0x12a   : > { %2279 = vmatmul.mubr.bf16.gmra.mrb[20].mxu0 %v7502_v39  ;;  %2505 = vmatmul.mubr.bf16.gmra.mrb[20].mxu1 %v7502_v39  ;;  %v5434_v40 = vcombine.high %v468_v35, %v472_v36 }
 0x12b   : > { %2330 = vmatpush1.bf16.msra.mxu0 %v5629_v42  ;;  %2556 = vmatpush1.bf16.msra.mxu1 %v5631_v43  ;;  %v480_v42 = vld [vmem:[#allocation5 + $0xb0] sm:$0xff]  ;;  %v5433_v43 = vcombine.low %v468_v35, %v472_v36 }
 0x12c   : > { %2331 = vmatprep.subr.bf16.mxu0 %v5638_v44  ;;  %2557 = vmatprep.subr.bf16.mxu1 %v5640_v46  ;;  %v5442_v44 = vcombine.high %v476_v41, %v480_v42  ;;  %v7542_v46 = vld [vmem:[%s7427_s10 + $0x28] ss:$16 sps:$4 sm:$0xff]   ;;  %v5441_v51 = vcombine.low %v476_v41, %v480_v42  ;;  %v552_v41 = vld [vmem:[#allocation5 + $0x2f0] sm:$0xff]  ;;  %v7585_v42 = vld [vmem:[%s7427_s10 + $0xcc] ss:$16 sps:$4 sm:$0xff]  }
 0x12d   : > { %2288 = vmatprep.mubr.bf16.mxu0 %v7505_v47  ;;  %2514 = vmatprep.mubr.bf16.mxu1 %v7505_v47 }
 0x12f   : > { %2332 = vmatpush1.bf16.msra.mxu0 %v5637_v53  ;;  %2558 = vmatpush1.bf16.msra.mxu1 %v5639_v54  ;;  %v5450_v53 = vcombine.high %v484_v48, %v488_v49  ;;  %v492_v54 = vld [vmem:[#allocation5 + $0x110] sm:$0xff] }
 0x130   : > { %2333 = vmatprep.subr.bf16.mxu0 %v5646_v55  ;;  %2559 = vmatprep.subr.bf16.mxu1 %v5648_v56  ;;  %v496_v55 = vld [vmem:[#allocation5 + $0x130] sm:$0xff]  ;;  %v5449_v56 = vcombine.low %v484_v48, %v488_v49 }
 0x131   : > { %v5458_v57 = vcombine.high %v492_v54, %v496_v55  ;;  %v556_v48 = vld [vmem:[#allocation5 + $0x310] sm:$0xff] }
 0x132   : > { %2289 = vmatmul.mubr.bf16.gmra.mrb[24].mxu0 %v7512_v59  ;;  %2515 = vmatmul.mubr.bf16.gmra.mrb[24].mxu1 %v7512_v59  ;;  %v560_v49 = vld [vmem:[#allocation5 + $0x330] sm:$0xff] }
 0x133   : > { %2334 = vmatpush1.bf16.msra.mxu0 %v5645_v62  ;;  %2560 = vmatpush1.bf16.msra.mxu1 %v5647_v0  ;;  %v7555_v62 = vld [vmem:[%s7427_s10 + $0x6c] ss:$16 sps:$4 sm:$0xff]   ;;  %v5457_v0 = vcombine.low %v492_v54, %v496_v55  ;;  %v7592_v54 = vld [vmem:[%s7427_s10 + $0xc8] ss:$16 sps:$4 sm:$0xff]   ;;  %v564_v55 = vld [vmem:[#allocation5 + $0x350] sm:$0xff] }
 0x134   : > { %2335 = vmatprep.subr.bf16.mxu0 %v5654_v1  ;;  %2561 = vmatprep.subr.bf16.mxu1 %v5656_v2  ;;  %v5466_v1 = vcombine.high %v500_v60, %v504_v61  ;;  %v508_v2 = vld [vmem:[#allocation5 + $0x190] sm:$0xff]  ;;  %v5521_v60 = vcombine.low %v556_v48, %v560_v49 }
 0x135   : > { %2298 = vmatprep.mubr.bf16.mxu0 %v7515_v3  ;;  %2524 = vmatprep.mubr.bf16.mxu1 %v7515_v3  ;;  %v5474_v8 = vcombine.high %v508_v2, %v512_v4 }
 0x137   : > { %2336 = vmatpush1.bf16.msra.mxu0 %v5653_v10  ;;  %2562 = vmatpush1.bf16.msra.mxu1 %v5655_v11  ;;  %v516_v10 = vld [vmem:[#allocation5 + $0x1d0] sm:$0xff] }
 0x138   : > { %2337 = vmatprep.subr.bf16.mxu0 %v5662_v12  ;;  %2563 = vmatprep.subr.bf16.mxu1 %v5664_v13  ;;  %v520_v11 = vld [vmem:[#allocation5 + $0x1f0] sm:$0xff]  ;;  %v7565_v12 = vld [vmem:[%s7427_s10 + $0x8c] ss:$16 sps:$4 sm:$0xff]   ;;  %v5473_v13 = vcombine.low %v508_v2, %v512_v4 }
 0x139   : > { %v5482_v14 = vcombine.high %v516_v10, %v520_v11  ;;  %v5481_v20 = vcombine.low %v516_v10, %v520_v11  ;;  %v584_v10 = vld [vmem:[#allocation5 + $0x3f0] sm:$0xff] }
 0x13a   : > { %2299 = vmatmul.mubr.bf16.gmra.mrb[28].mxu0 %v7522_v17  ;;  %2525 = vmatmul.mubr.bf16.gmra.mrb[28].mxu1 %v7522_v17 }
 0x13b   : > { %2338 = vmatpush1.bf16.msra.mxu0 %v5661_v21  ;;  %2564 = vmatpush1.bf16.msra.mxu1 %v5663_v22  ;;  %v5490_v21 = vcombine.high %v524_v15, %v528_v18  ;;  %v7572_v22 = vld [vmem:[%s7427_s10 + $0x88] ss:$16 sps:$4 sm:$0xff]   ;;  %v592_v15 = vld [vmem:[#allocation5 + $0x430] sm:$0xff] }
 0x13c   : > { %2339 = vmatprep.subr.bf16.mxu0 %v5670_v23  ;;  %2565 = vmatprep.subr.bf16.mxu1 %v5672_v24  ;;  %v532_v23 = vld [vmem:[#allocation5 + $0x250] sm:$0xff] }
 0x13d   : > { %2341 = vmatprep.mubr.bf16.mxu0 %v7525_v25  ;;  %2567 = vmatprep.mubr.bf16.mxu1 %v7525_v25  ;;  %v536_v24 = vld [vmem:[#allocation5 + $0x270] sm:$0xff] }
 0x13e   : > { %v5497_v35 = vcombine.low %v532_v23, %v536_v24  ;;  %v6849_v18 = vld [vmem:[%s7427_s10 + $0x4] ss:$16 sps:$4 sm:$0xff]  }
 0x13f   : > { %2340 = vmatpush1.bf16.msra.mxu0 %v5669_v30  ;;  %2566 = vmatpush1.bf16.msra.mxu1 %v5671_v31  ;;  %v5498_v30 = vcombine.high %v532_v23, %v536_v24  ;;  %v540_v31 = vld [vmem:[#allocation5 + $0x290] sm:$0xff] }
 0x140   : > { %2648 = vmatprep.subr.bf16.mxu0 %v5426_v32  ;;  %v544_v32 = vld [vmem:[#allocation5 + $0x2b0] sm:$0xff] }
 0x141   : > { %v5506_v36 = vcombine.high %v540_v31, %v544_v32  ;;  %v596_v23 = vld [vmem:[#allocation5 + $0x450] sm:$0xff] }
 0x142   : > { %2342 = vmatmul.mubr.bf16.vlgmr.msra.gmra.mrb[0].mxu0 %v7531_v33  ;;  %2568 = vmatmul.mubr.bf16.vlgmr.msra.gmra.mrb[0].mxu1 %v7531_v33  ;;  %v600_v24 = vld [vmem:[#allocation5 + $0x470] sm:$0xff] }
 0x143   : > { %2351 = vmatprep.mubr.bf16.mxu0 %v7535_v37  ;;  %2577 = vmatprep.mubr.bf16.mxu1 %v7535_v37 }
 0x144   : > { %2649 = vmatpush1.bf16.msra.mxu0 %v5425_v38  ;;  %v7582_v38 = vld [vmem:[%s7427_s10 + $0xa8] ss:$16 sps:$4 sm:$0xff]  }
 0x145   : > { %2650 = vmatprep.subr.bf16.mxu0 %v5434_v40  ;;  %v548_v40 = vld [vmem:[#allocation5 + $0x2d0] sm:$0xff] }
 0x148   : > { %2651 = vmatpush1.bf16.msra.mxu0 %v5433_v43  ;;  %v5505_v43 = vcombine.low %v540_v31, %v544_v32  ;;  %v604_v31 = vld [vmem:[#allocation5 + $0x490] sm:$0xff] }
 0x149   : > { %2652 = vmatprep.subr.bf16.mxu0 %v5442_v44  ;;  %v5514_v44 = vcombine.high %v548_v40, %v552_v41  ;;  %v608_v32 = vld [vmem:[#allocation5 + $0x4b0] sm:$0xff] }
 0x14a   : > { %2352 = vmatmul.mubr.bf16.gmra.mrb[4].mxu0 %v7542_v46  ;;  %2578 = vmatmul.mubr.bf16.gmra.mrb[4].mxu1 %v7542_v46 }
 0x14b   : > { %2361 = vmatprep.mubr.bf16.mxu0 %v7545_v50  ;;  %2587 = vmatprep.mubr.bf16.mxu1 %v7545_v50 }
 0x14c   : > { %2653 = vmatpush1.bf16.msra.mxu0 %v5441_v51  ;;  %v5513_v51 = vcombine.low %v548_v40, %v552_v41  ;;  %v612_v40 = vld [vmem:[#allocation5 + $0x4d0] sm:$0xff] }
 0x14d   : > { %2654 = vmatprep.subr.bf16.mxu0 %v5450_v53  ;;  %v5522_v53 = vcombine.high %v556_v48, %v560_v49  ;;  %v616_v41 = vld [vmem:[#allocation5 + $0x4f0] sm:$0xff] }
 0x14e   : > { %v620_v48 = vld [vmem:[#allocation5 + $0x510] sm:$0xff] }
 0x14f   : > { %v624_v49 = vld [vmem:[#allocation5 + $0x530] sm:$0xff] }
 0x150   : > { %2655 = vmatpush1.bf16.msra.mxu0 %v5449_v56  ;;  %v568_v56 = vld [vmem:[#allocation5 + $0x370] sm:$0xff] }
 0x151   : > { %2656 = vmatprep.subr.bf16.mxu0 %v5458_v57  ;;  %v7595_v57 = vld [vmem:[%s7427_s10 + $0xec] ss:$16 sps:$4 sm:$0xff]   ;;  %v5530_v61 = vcombine.high %v564_v55, %v568_v56  ;;  %v5529_v2 = vcombine.low %v564_v55, %v568_v56  ;;  %v5585_v55 = vcombine.low %v620_v48, %v624_v49 }
 0x152   : > { %2362 = vmatmul.mubr.bf16.gmra.mrb[8].mxu0 %v7552_v58  ;;  %2588 = vmatmul.mubr.bf16.gmra.mrb[8].mxu1 %v7552_v58 }
 0x153   : > { %2371 = vmatprep.mubr.bf16.mxu0 %v7555_v62  ;;  %2597 = vmatprep.mubr.bf16.mxu1 %v7555_v62 }
 0x154   : > { %2657 = vmatpush1.bf16.msra.mxu0 %v5457_v0  ;;  %v572_v0 = vld [vmem:[#allocation5 + $0x390] sm:$0xff] }
 0x155   : > { %2658 = vmatprep.subr.bf16.mxu0 %v5466_v1  ;;  %v576_v1 = vld [vmem:[#allocation5 + $0x3b0] sm:$0xff] }
 0x156   : > { %v5538_v4 = vcombine.high %v572_v0, %v576_v1  ;;  %v5537_v11 = vcombine.low %v572_v0, %v576_v1  ;;  %v644_v1 = vld [vmem:[#allocation5 + $0x5d0] sm:$0xff] }
 0x158   : > { %2659 = vmatpush1.bf16.msra.mxu0 %v5465_v6  ;;  %v7602_v6 = vld [vmem:[%s7427_s10 + $0xe8] ss:$16 sps:$4 sm:$0xff]  }
 0x159   : > { %2660 = vmatprep.subr.bf16.mxu0 %v5474_v8  ;;  %v580_v8 = vld [vmem:[#allocation5 + $0x3d0] sm:$0xff] }
 0x15a   : > { %2372 = vmatmul.mubr.bf16.gmra.mrb[12].mxu0 %v7562_v9  ;;  %2598 = vmatmul.mubr.bf16.gmra.mrb[12].mxu1 %v7562_v9 }
 0x15b   : > { %2381 = vmatprep.mubr.bf16.mxu0 %v7565_v12  ;;  %2607 = vmatprep.mubr.bf16.mxu1 %v7565_v12 }
 0x15c   : > { %2661 = vmatpush1.bf16.msra.mxu0 %v5473_v13  ;;  %v5546_v13 = vcombine.high %v580_v8, %v584_v10 }
 0x15d   : > { %2662 = vmatprep.subr.bf16.mxu0 %v5482_v14  ;;  %v588_v14 = vld [vmem:[#allocation5 + $0x410] sm:$0xff] }
 0x160   : > { %2663 = vmatpush1.bf16.msra.mxu0 %v5481_v20  ;;  %v5545_v20 = vcombine.low %v580_v8, %v584_v10  ;;  %v652_v8 = vld [vmem:[#allocation5 + $0x610] sm:$0xff] }
 0x161   : > { %2664 = vmatprep.subr.bf16.mxu0 %v5490_v21  ;;  %v5554_v21 = vcombine.high %v588_v14, %v592_v15  ;;  %v656_v10 = vld [vmem:[#allocation5 + $0x630] sm:$0xff] }
 0x162   : > { %2382 = vmatmul.mubr.bf16.gmra.mrb[16].mxu0 %v7572_v22  ;;  %2608 = vmatmul.mubr.bf16.gmra.mrb[16].mxu1 %v7572_v22 }
 0x163   : > { %2391 = vmatprep.mubr.bf16.mxu0 %v7575_v28  ;;  %2617 = vmatprep.mubr.bf16.mxu1 %v7575_v28 }
 0x164   : > { %2665 = vmatpush1.bf16.msra.mxu0 %v5489_v29  ;;  %v5553_v29 = vcombine.low %v588_v14, %v592_v15  ;;  %v5617_v14 = vcombine.low %v652_v8, %v656_v10 }
 0x165   : > { %2666 = vmatprep.subr.bf16.mxu0 %v5498_v30  ;;  %v5562_v30 = vcombine.high %v596_v23, %v600_v24 }
 0x168   : > { %2667 = vmatpush1.bf16.msra.mxu0 %v5497_v35  ;;  %v5561_v35 = vcombine.low %v596_v23, %v600_v24  ;;  %v676_v23 = vld [vmem:[#allocation5 + $0x6d0] sm:$0xff] }
 0x169   : > { %2668 = vmatprep.subr.bf16.mxu0 %v5506_v36  ;;  %v5570_v36 = vcombine.high %v604_v31, %v608_v32 }
 0x16a   : > { %2392 = vmatmul.mubr.bf16.gmra.mrb[20].mxu0 %v7582_v38  ;;  %2618 = vmatmul.mubr.bf16.gmra.mrb[20].mxu1 %v7582_v38 }
 0x16b   : > { %2401 = vmatprep.mubr.bf16.mxu0 %v7585_v42  ;;  %2627 = vmatprep.mubr.bf16.mxu1 %v7585_v42 }
 0x16c   : > { %2669 = vmatpush1.bf16.msra.mxu0 %v5505_v43  ;;  %v5569_v43 = vcombine.low %v604_v31, %v608_v32  ;;  %v688_v31 = vld [vmem:[#allocation5 + $0x730] sm:$0xff] }
 0x16d   : > { %2670 = vmatprep.subr.bf16.mxu0 %v5514_v44  ;;  %v5578_v44 = vcombine.high %v612_v40, %v616_v41 }
 0x170   : > { %2671 = vmatpush1.bf16.msra.mxu0 %v5513_v51  ;;  %v5577_v51 = vcombine.low %v612_v40, %v616_v41  ;;  %v700_v41 = vld [vmem:[#allocation5 + $0x790] sm:$0xff] }
 0x171   : > { %2672 = vmatprep.subr.bf16.mxu0 %v5522_v53  ;;  %v628_v53 = vld [vmem:[#allocation5 + $0x550] sm:$0xff] }
 0x172   : > { %2402 = vmatmul.mubr.bf16.gmra.mrb[24].mxu0 %v7592_v54  ;;  %2628 = vmatmul.mubr.bf16.gmra.mrb[24].mxu1 %v7592_v54 }
 0x173   : > { %2411 = vmatprep.mubr.bf16.mxu0 %v7595_v57  ;;  %2637 = vmatprep.mubr.bf16.mxu1 %v7595_v57 }
 0x174   : > { %2673 = vmatpush1.bf16.msra.mxu0 %v5521_v60  ;;  %v636_v60 = vld [vmem:[#allocation5 + $0x590] sm:$0xff] }
 0x175   : > { %2674 = vmatprep.subr.bf16.mxu0 %v5530_v61  ;;  %v640_v61 = vld [vmem:[#allocation5 + $0x5b0] sm:$0xff] }
 0x178   : > { %2675 = vmatpush1.bf16.msra.mxu0 %v5529_v2  ;;  %v5601_v2 = vcombine.low %v636_v60, %v640_v61 }
 0x179   : > { %2676 = vmatprep.subr.bf16.mxu0 %v5538_v4 }
 0x17a   : > { %2412 = vmatmul.mubr.bf16.gmra.mrb[28].mxu0 %v7602_v6  ;;  %2638 = vmatmul.mubr.bf16.gmra.mrb[28].mxu1 %v7602_v6 }
 0x17b   : > { %2680 = vmatprep.mubr.bf16.mxu0 %v6849_v18  ;;  %2906 = vmatprep.mubr.bf16.mxu1 %v6849_v18  ;;  %v668_v18 = vld [vmem:[#allocation5 + $0x690] sm:$0xff] }
 0x17c   : > { %2677 = vmatpush1.bf16.msra.mxu0 %v5537_v11 }
 0x17d   : > { %2678 = vmatprep.subr.bf16.mxu0 %v5546_v13  ;;  %v660_v13 = vld [vmem:[#allocation5 + $0x650] sm:$0xff] }
 0x180   : > { %2679 = vmatpush1.bf16.msra.mxu0 %v5545_v20  ;;  %v672_v20 = vld [vmem:[#allocation5 + $0x6b0] sm:$0xff] }
 0x181   : > { %2761 = vmatprep.subr.bf16.mxu0 %v5554_v21  ;;  %v5633_v24 = vcombine.low %v668_v18, %v672_v20 }
 0x183   : > { %2681 = vmatmul.mubr.bf16.vlgmr.msra.gmra.mrb[32].mxu0 %v7452_v5  ;;  %v5586_v5 = vcombine.high %v620_v48, %v624_v49  ;;  %v708_v48 = vld [vmem:[#allocation5 + $0x7d0] sm:$0xff] }
 0x184   : > { %2762 = vmatpush1.bf16.msra.mxu0 %v5553_v29  ;;  %2690 = vmatprep.mubr.bf16.mxu0 %v7455_v16  ;;  %v632_v16 = vld [vmem:[#allocation5 + $0x570] sm:$0xff] }
 0x185   : > { %2763 = vmatprep.subr.bf16.mxu0 %v5562_v30  ;;  %v5594_v56 = vcombine.high %v628_v53, %v632_v16  ;;  %v5593_v0 = vcombine.low %v628_v53, %v632_v16  ;;  %v684_v30 = vld [vmem:[#allocation5 + $0x710] sm:$0xff]  ;;  %v465_v53 = vld [vmem:[#allocation5 + $0x38] sm:$0xff] }
 0x188   : > { %2764 = vmatpush1.bf16.msra.mxu0 %v5561_v35  ;;  %v692_v35 = vld [vmem:[#allocation5 + $0x750] sm:$0xff] }
 0x189   : > { %2765 = vmatprep.subr.bf16.mxu0 %v5570_v36  ;;  %v5649_v36 = vcombine.low %v684_v30, %v688_v31 }
 0x18b   : > { %2691 = vmatmul.mubr.bf16.gmra.mrb[36].mxu0 %v7462_v27  ;;  %v5602_v27 = vcombine.high %v636_v60, %v640_v61 }
 0x18c   : > { %2766 = vmatpush1.bf16.msra.mxu0 %v5569_v43  ;;  %2700 = vmatprep.mubr.bf16.mxu0 %v7465_v34  ;;  %v648_v34 = vld [vmem:[#allocation5 + $0x5f0] sm:$0xff] }
 0x18d   : > { %2767 = vmatprep.subr.bf16.mxu0 %v5578_v44  ;;  %v5610_v4 = vcombine.high %v644_v1, %v648_v34  ;;  %v5609_v11 = vcombine.low %v644_v1, %v648_v34  ;;  %v704_v43 = vld [vmem:[#allocation5 + $0x7b0] sm:$0xff]  ;;  %v489_v34 = vld [vmem:[#allocation5 + $0xf8] sm:$0xff] }
 0x18e   : > { %v5665_v49 = vcombine.low %v700_v41, %v704_v43 }
 0x190   : > { %2768 = vmatpush1.bf16.msra.mxu0 %v5577_v51 }
 0x191   : > { %2769 = vmatprep.subr.bf16.mxu0 %v5586_v5  ;;  %v461_v5 = vld [vmem:[#allocation5 + $0x18] sm:$0xff] }
 0x192   : > { %v5428_v16 = vcombine.high %v461_v5, %v465_v53 }
 0x193   : > { %2701 = vmatmul.mubr.bf16.gmra.mrb[40].mxu0 %v7472_v45  ;;  %v5618_v45 = vcombine.high %v652_v8, %v656_v10  ;;  %v493_v8 = vld [vmem:[#allocation5 + $0x118] sm:$0xff] }
 0x194   : > { %2770 = vmatpush1.bf16.msra.mxu0 %v5585_v55  ;;  %2710 = vmatprep.mubr.bf16.mxu0 %v7475_v52  ;;  %v664_v52 = vld [vmem:[#allocation5 + $0x670] sm:$0xff]  ;;  %v497_v10 = vld [vmem:[#allocation5 + $0x138] sm:$0xff] }
 0x195   : > { %2771 = vmatprep.subr.bf16.mxu0 %v5594_v56  ;;  %v5626_v15 = vcombine.high %v660_v13, %v664_v52  ;;  %v5625_v21 = vcombine.low %v660_v13, %v664_v52  ;;  %2874 = vmatprep.subr.bf16.mxu1 %v5428_v16  ;;  %v473_v56 = vld [vmem:[#allocation5 + $0x78] sm:$0xff] }
 0x198   : > { %2772 = vmatpush1.bf16.msra.mxu0 %v5593_v0  ;;  %v477_v0 = vld [vmem:[#allocation5 + $0x98] sm:$0xff] }
 0x199   : > { %2773 = vmatprep.subr.bf16.mxu0 %v5602_v27  ;;  %v481_v27 = vld [vmem:[#allocation5 + $0xb8] sm:$0xff] }
 0x19a   : > { %v5443_v1 = vcombine.low %v477_v0, %v481_v27 }
 0x19b   : > { %2711 = vmatmul.mubr.bf16.gmra.mrb[44].mxu0 %v7482_v63  ;;  %v5634_v63 = vcombine.high %v668_v18, %v672_v20  ;;  %v521_v20 = vld [vmem:[#allocation5 + $0x1f8] sm:$0xff] }
 0x19c   : > { %2774 = vmatpush1.bf16.msra.mxu0 %v5601_v2  ;;  %2720 = vmatprep.mubr.bf16.mxu0 %v7485_v7  ;;  %v680_v7 = vld [vmem:[#allocation5 + $0x6f0] sm:$0xff] }
 0x19d   : > { %2775 = vmatprep.subr.bf16.mxu0 %v5610_v4  ;;  %v5642_v29 = vcombine.high %v676_v23, %v680_v7  ;;  %v5641_v32 = vcombine.low %v676_v23, %v680_v7  ;;  %v525_v23 = vld [vmem:[#allocation5 + $0x218] sm:$0xff] }
 0x19e   : > { %v529_v7 = vld [vmem:[#allocation5 + $0x238] sm:$0xff] }
 0x1a0   : > { %2776 = vmatpush1.bf16.msra.mxu0 %v5609_v11  ;;  %v5460_v11 = vcombine.high %v493_v8, %v497_v10 }
 0x1a1   : > { %2777 = vmatprep.subr.bf16.mxu0 %v5618_v45  ;;  %v505_v45 = vld [vmem:[#allocation5 + $0x178] sm:$0xff] }
 0x1a3   : > { %2721 = vmatmul.mubr.bf16.gmra.mrb[48].mxu0 %v7492_v19  ;;  %v5650_v19 = vcombine.high %v684_v30, %v688_v31 }
 0x1a4   : > { %2778 = vmatpush1.bf16.msra.mxu0 %v5617_v14  ;;  %2730 = vmatprep.mubr.bf16.mxu0 %v7495_v26  ;;  %v696_v26 = vld [vmem:[#allocation5 + $0x770] sm:$0xff]  ;;  %v509_v14 = vld [vmem:[#allocation5 + $0x198] sm:$0xff] }
 0x1a5   : > { %2779 = vmatprep.subr.bf16.mxu0 %v5626_v15  ;;  %v5658_v40 = vcombine.high %v692_v35, %v696_v26  ;;  %v5657_v44 = vcombine.low %v692_v35, %v696_v26  ;;  %v513_v15 = vld [vmem:[#allocation5 + $0x1b8] sm:$0xff] }
 0x1a6   : > { %v5476_v18 = vcombine.high %v509_v14, %v513_v15 }
 0x1a8   : > { %2780 = vmatpush1.bf16.msra.mxu0 %v5625_v21 }
 0x1a9   : > { %2781 = vmatprep.subr.bf16.mxu0 %v5634_v63 }
 0x1ab   : > { %2731 = vmatmul.mubr.bf16.gmra.mrb[52].mxu0 %v7502_v39  ;;  %v5666_v39 = vcombine.high %v700_v41, %v704_v43  ;;  %v557_v41 = vld [vmem:[#allocation5 + $0x318] sm:$0xff] }
 0x1ac   : > { %2782 = vmatpush1.bf16.msra.mxu0 %v5633_v24  ;;  %2740 = vmatprep.mubr.bf16.mxu0 %v7505_v47  ;;  %v712_v47 = vld [vmem:[#allocation5 + $0x7f0] sm:$0xff]  ;;  %v5491_v24 = vcombine.low %v525_v23, %v529_v7  ;;  %v561_v43 = vld [vmem:[#allocation5 + $0x338] sm:$0xff] }
 0x1ad   : > { %2783 = vmatprep.subr.bf16.mxu0 %v5642_v29  ;;  %v5674_v51 = vcombine.high %v708_v48, %v712_v47  ;;  %v5673_v55 = vcombine.low %v708_v48, %v712_v47  ;;  %v5492_v29 = vcombine.high %v525_v23, %v529_v7 }
 0x1b0   : > { %2784 = vmatpush1.bf16.msra.mxu0 %v5641_v32  ;;  %v541_v32 = vld [vmem:[#allocation5 + $0x298] sm:$0xff] }
 0x1b1   : > { %2785 = vmatprep.subr.bf16.mxu0 %v5650_v19  ;;  %v545_v19 = vld [vmem:[#allocation5 + $0x2b8] sm:$0xff] }
 0x1b2   : > { %v5507_v35 = vcombine.low %v541_v32, %v545_v19  ;;  %v5508_v26 = vcombine.high %v541_v32, %v545_v19  ;;  %v6856_v19 = vld [vmem:[%s7427_s10 + $0x60] ss:$16 sps:$4 sm:$0xff]  }
 0x1b3   : > { %2741 = vmatmul.mubr.bf16.gmra.mrb[56].mxu0 %v7512_v59  ;;  %v5427_v59 = vcombine.low %v461_v5, %v465_v53 }
 0x1b4   : > { %2786 = vmatpush1.bf16.msra.mxu0 %v5649_v36  ;;  %2750 = vmatprep.mubr.bf16.mxu0 %v7515_v3  ;;  %v469_v3 = vld [vmem:[#allocation5 + $0x58] sm:$0xff] }
 0x1b5   : > { %2787 = vmatprep.subr.bf16.mxu0 %v5658_v40  ;;  %2875 = vmatpush1.bf16.msra.mxu1 %v5427_v59  ;;  %v5436_v60 = vcombine.high %v469_v3, %v473_v56  ;;  %v5435_v61 = vcombine.low %v469_v3, %v473_v56  ;;  %v589_v59 = vld [vmem:[#allocation5 + $0x418] sm:$0xff] }
 0x1b6   : > { %v593_v3 = vld [vmem:[#allocation5 + $0x438] sm:$0xff] }
 0x1b7   : > { %2876 = vmatprep.subr.bf16.mxu1 %v5436_v60  ;;  %v5555_v56 = vcombine.low %v589_v59, %v593_v3  ;;  %v6850_v60 = vld [vmem:[%s7427_s10] ss:$16 sps:$4 sm:$0xff]  }
 0x1b8   : > { %2788 = vmatpush1.bf16.msra.mxu0 %v5657_v44  ;;  %v5523_v44 = vcombine.low %v557_v41, %v561_v43 }
 0x1b9   : > { %2789 = vmatprep.subr.bf16.mxu0 %v5666_v39  ;;  %2877 = vmatpush1.bf16.msra.mxu1 %v5435_v61  ;;  %v5524_v39 = vcombine.high %v557_v41, %v561_v43  ;;  %v601_v61 = vld [vmem:[#allocation5 + $0x478] sm:$0xff]  ;;  %v6857_v43 = vld [vmem:[%s7427_s10 + $0x84] ss:$16 sps:$4 sm:$0xff]  }
 0x1ba   : > { %v649_v41 = vld [vmem:[#allocation5 + $0x5f8] sm:$0xff] }
 0x1bb   : > { %2751 = vmatmul.mubr.bf16.gmra.mrb[60].mxu0 %v7522_v17  ;;  %v5444_v17 = vcombine.high %v477_v0, %v481_v27  ;;  %v6851_v0 = vld [vmem:[%s7427_s10 + $0x24] ss:$16 sps:$4 sm:$0xff]  }
 0x1bc   : > { %2790 = vmatpush1.bf16.msra.mxu0 %v5665_v49  ;;  %2793 = vmatprep.mubr.bf16.mxu0 %v7525_v25  ;;  %v485_v25 = vld [vmem:[#allocation5 + $0xd8] sm:$0xff] }
 0x1bd   : > { %2791 = vmatprep.subr.bf16.mxu0 %v5674_v51  ;;  %2878 = vmatprep.subr.bf16.mxu1 %v5444_v17  ;;  %v5452_v2 = vcombine.high %v485_v25, %v489_v34  ;;  %v5451_v4 = vcombine.low %v485_v25, %v489_v34  ;;  %v573_v49 = vld [vmem:[#allocation5 + $0x398] sm:$0xff] }
 0x1be   : > { %2879 = vmatpush1.bf16.msra.mxu1 %v5443_v1  ;;  %v577_v51 = vld [vmem:[#allocation5 + $0x3b8] sm:$0xff] }
 0x1bf   : > { %2880 = vmatprep.subr.bf16.mxu1 %v5452_v2  ;;  %v5539_v5 = vcombine.low %v573_v49, %v577_v51  ;;  %v5540_v53 = vcombine.high %v573_v49, %v577_v51  ;;  %v605_v1 = vld [vmem:[#allocation5 + $0x498] sm:$0xff]  ;;  %v6852_v2 = vld [vmem:[%s7427_s10 + $0x20] ss:$16 sps:$4 sm:$0xff]  }
 0x1c0   : > { %2792 = vmatpush1.bf16.msra.mxu0 %v5673_v55  ;;  %v609_v25 = vld [vmem:[#allocation5 + $0x4b8] sm:$0xff] }
 0x1c1   : > { %v5571_v34 = vcombine.low %v605_v1, %v609_v25 }
 0x1c2   : > { %2881 = vmatpush1.bf16.msra.mxu1 %v5451_v4  ;;  %v716_v4 = vlaneseq }
 0x1c3   : > { %2794 = vmatmul.mubr.bf16.vlgmr.msra.gmra.mrb[32].mxu0 %v7531_v33  ;;  %v5459_v33 = vcombine.low %v493_v8, %v497_v10  ;;  %2882 = vmatprep.subr.bf16.mxu1 %v5460_v11  ;;  %v613_v8 = vld [vmem:[#allocation5 + $0x4d8] sm:$0xff]  ;;  %v6853_v11 = vld [vmem:[%s7427_s10 + $0x44] ss:$16 sps:$4 sm:$0xff]  }
 0x1c4   : > { %2803 = vmatprep.mubr.bf16.mxu0 %v7535_v37  ;;  %v501_v37 = vld [vmem:[#allocation5 + $0x158] sm:$0xff] }
 0x1c5   : > { %v5468_v13 = vcombine.high %v501_v37, %v505_v45  ;;  %v5467_v52 = vcombine.low %v501_v37, %v505_v45  ;;  %v617_v10 = vld [vmem:[#allocation5 + $0x4f8] sm:$0xff]  ;;  %v7642_v45 = vshrl.u32 %v716_v4, 7 }
 0x1c6   : > { %2883 = vmatpush1.bf16.msra.mxu1 %v5459_v33  ;;  %v5579_v33 = vcombine.low %v613_v8, %v617_v10  ;;  %v5580_v37 = vcombine.high %v613_v8, %v617_v10 }
 0x1c7   : > { %2884 = vmatprep.subr.bf16.mxu1 %v5468_v13  ;;  %v621_v13 = vld [vmem:[#allocation5 + $0x518] sm:$0xff] }
 0x1ca   : > { %2885 = vmatpush1.bf16.msra.mxu1 %v5467_v52  ;;  %v625_v52 = vld [vmem:[#allocation5 + $0x538] sm:$0xff] }
 0x1cb   : > { %2804 = vmatmul.mubr.bf16.gmra.mrb[36].mxu0 %v7542_v46  ;;  %v5475_v46 = vcombine.low %v509_v14, %v513_v15  ;;  %2886 = vmatprep.subr.bf16.mxu1 %v5476_v18  ;;  %v5587_v14 = vcombine.low %v621_v13, %v625_v52  ;;  %v5588_v15 = vcombine.high %v621_v13, %v625_v52  ;;  %v6854_v18 = vld [vmem:[%s7427_s10 + $0x40] ss:$16 sps:$4 sm:$0xff]  }
 0x1cc   : > { %2813 = vmatprep.mubr.bf16.mxu0 %v7545_v50  ;;  %v517_v50 = vld [vmem:[#allocation5 + $0x1d8] sm:$0xff] }
 0x1cd   : > { %v5483_v21 = vcombine.low %v517_v50, %v521_v20  ;;  %v5484_v63 = vcombine.high %v517_v50, %v521_v20  ;;  %v629_v50 = vld [vmem:[#allocation5 + $0x558] sm:$0xff] }
 0x1ce   : > { %2887 = vmatpush1.bf16.msra.mxu1 %v5475_v46  ;;  %v718_v46 = vsub.s32 0, %v7642_v45  ;;  %v633_v20 = vld [vmem:[#allocation5 + $0x578] sm:$0xff] }
 0x1cf   : > { %2888 = vmatprep.subr.bf16.mxu1 %v5484_v63  ;;  %v7647_v63 = vld [vmem:[#allocation7] sm:$0xff]  ;;  %v5595_v23 = vcombine.low %v629_v50, %v633_v20  ;;  %v5596_v7 = vcombine.high %v629_v50, %v633_v20 }
 0x1d2   : > { %2889 = vmatpush1.bf16.msra.mxu1 %v5483_v21  ;;  %v6855_v21 = vld [vmem:[%s7427_s10 + $0x64] ss:$16 sps:$4 sm:$0xff]  }
 0x1d3   : > { %2814 = vmatmul.mubr.bf16.gmra.mrb[40].mxu0 %v7552_v58  ;;  %2890 = vmatprep.subr.bf16.mxu1 %v5492_v29  ;;  %v533_v58 = vld [vmem:[#allocation5 + $0x258] sm:$0xff]  ;;  %v726_v29 = vsub.s32 2, %v7642_v45 }
 0x1d4   : > { %2823 = vmatprep.mubr.bf16.mxu0 %v7555_v62  ;;  %v537_v62 = vld [vmem:[#allocation5 + $0x278] sm:$0xff] }
 0x1d5   : > { %v5499_v30 = vcombine.low %v533_v58, %v537_v62  ;;  %v5500_v31 = vcombine.high %v533_v58, %v537_v62  ;;  %v637_v58 = vld [vmem:[#allocation5 + $0x598] sm:$0xff] }
 0x1d6   : > { %2891 = vmatpush1.bf16.msra.mxu1 %v5491_v24  ;;  %v7650_v24 = vrot.slane %v7647_v63, %v718_v46  ;;  %v641_v62 = vld [vmem:[#allocation5 + $0x5b8] sm:$0xff] }
 0x1d7   : > { %2892 = vmatprep.subr.bf16.mxu1 %v5500_v31  ;;  %v5604_v31 = vcombine.high %v637_v58, %v641_v62 }
 0x1da   : > { %2893 = vmatpush1.bf16.msra.mxu1 %v5499_v30  ;;  %v5603_v30 = vcombine.low %v637_v58, %v641_v62 }
 0x1db   : > { %2824 = vmatmul.mubr.bf16.gmra.mrb[44].mxu0 %v7562_v9  ;;  %2894 = vmatprep.subr.bf16.mxu1 %v5508_v26  ;;  %v549_v9 = vld [vmem:[#allocation5 + $0x2d8] sm:$0xff]  ;;  %v7658_v26 = vrot.slane %v7647_v63, %v726_v29  ;;  %v6861_v29 = vld [vmem:[%s7427_s10 + $0xc4] ss:$16 sps:$4 sm:$0xff]  }
 0x1dc   : > { %2833 = vmatprep.mubr.bf16.mxu0 %v7565_v12  ;;  %v553_v12 = vld [vmem:[#allocation5 + $0x2f8] sm:$0xff] }
 0x1dd   : > { %v5515_v36 = vcombine.low %v549_v9, %v553_v12  ;;  %v5516_v40 = vcombine.high %v549_v9, %v553_v12  ;;  %v722_v12 = vsub.s32 1, %v7642_v45 }
 0x1de   : > { %2895 = vmatpush1.bf16.msra.mxu1 %v5507_v35 }
 0x1df   : > { %2896 = vmatprep.subr.bf16.mxu1 %v5516_v40  ;;  %v645_v40 = vld [vmem:[#allocation5 + $0x5d8] sm:$0xff] }
 0x1e2   : > { %2897 = vmatpush1.bf16.msra.mxu1 %v5515_v36 }
 0x1e3   : > { %2834 = vmatmul.mubr.bf16.gmra.mrb[48].mxu0 %v7572_v22  ;;  %2898 = vmatprep.subr.bf16.mxu1 %v5524_v39  ;;  %v565_v22 = vld [vmem:[#allocation5 + $0x358] sm:$0xff] }
 0x1e4   : > { %2843 = vmatprep.mubr.bf16.mxu0 %v7575_v28  ;;  %v569_v28 = vld [vmem:[#allocation5 + $0x378] sm:$0xff] }
 0x1e5   : > { %v5531_v48 = vcombine.low %v565_v22, %v569_v28  ;;  %v5532_v47 = vcombine.high %v565_v22, %v569_v28  ;;  %v5611_v22 = vcombine.low %v645_v40, %v649_v41  ;;  %v5612_v28 = vcombine.high %v645_v40, %v649_v41 }
 0x1e6   : > { %2899 = vmatpush1.bf16.msra.mxu1 %v5523_v44 }
 0x1e7   : > { %2900 = vmatprep.subr.bf16.mxu1 %v5532_v47 }
 0x1ea   : > { %2901 = vmatpush1.bf16.msra.mxu1 %v5531_v48 }
 0x1eb   : > { %2844 = vmatmul.mubr.bf16.gmra.mrb[52].mxu0 %v7582_v38  ;;  %2902 = vmatprep.subr.bf16.mxu1 %v5540_v53  ;;  %v581_v38 = vld [vmem:[#allocation5 + $0x3d8] sm:$0xff]  ;;  %v7671_v53 = vrot.slane %v7647_v63, %v722_v12 }
 0x1ec   : > { %2853 = vmatprep.mubr.bf16.mxu0 %v7585_v42  ;;  %v585_v42 = vld [vmem:[#allocation5 + $0x3f8] sm:$0xff] }
 0x1ed   : > { %v5547_v16 = vcombine.low %v581_v38, %v585_v42  ;;  %v5548_v55 = vcombine.high %v581_v38, %v585_v42  ;;  %v730_v38 = vsub.s32 3, %v7642_v45  ;;  %v653_v42 = vld [vmem:[#allocation5 + $0x618] sm:$0xff] }
 0x1ee   : > { %2903 = vmatpush1.bf16.msra.mxu1 %v5539_v5 }
 0x1ef   : > { %2904 = vmatprep.subr.bf16.mxu1 %v5548_v55 }
 0x1f2   : > { %2905 = vmatpush1.bf16.msra.mxu1 %v5547_v16  ;;  %v657_v16 = vld [vmem:[#allocation5 + $0x638] sm:$0xff] }
 0x1f3   : > { %2854 = vmatmul.mubr.bf16.gmra.mrb[56].mxu0 %v7592_v54  ;;  %v5556_v54 = vcombine.high %v589_v59, %v593_v3  ;;  %v6858_v3 = vld [vmem:[%s7427_s10 + $0x80] ss:$16 sps:$4 sm:$0xff]  }
 0x1f4   : > { %2863 = vmatprep.mubr.bf16.mxu0 %v7595_v57  ;;  %v597_v57 = vld [vmem:[#allocation5 + $0x458] sm:$0xff] }
 0x1f5   : > { %2907 = vmatmul.mubr.bf16.vlgmr.msra.gmra.mrb[32].mxu1 %v6850_v60  ;;  %2987 = vmatprep.subr.bf16.mxu1 %v5556_v54  ;;  %v5563_v27 = vcombine.low %v597_v57, %v601_v61  ;;  %v5564_v17 = vcombine.high %v597_v57, %v601_v61  ;;  %v5620_v54 = vcombine.high %v653_v42, %v657_v16 }
 0x1f6   : > { %2988 = vmatpush1.bf16.msra.mxu1 %v5555_v56  ;;  %2916 = vmatprep.mubr.bf16.mxu1 %v6851_v0  ;;  %v5619_v56 = vcombine.low %v653_v42, %v657_v16  ;;  %v7688_v57 = vrot.slane %v7647_v63, %v730_v38  ;;  %v6862_v16 = vld [vmem:[%s7427_s10 + $0xc0] ss:$16 sps:$4 sm:$0xff]  }
 0x1f7   : > { %2989 = vmatprep.subr.bf16.mxu1 %v5564_v17  ;;  %v665_v17 = vld [vmem:[#allocation5 + $0x678] sm:$0xff] }
 0x1fa   : > { %2990 = vmatpush1.bf16.msra.mxu1 %v5563_v27  ;;  %v661_v27 = vld [vmem:[#allocation5 + $0x658] sm:$0xff] }
 0x1fb   : > { %2864 = vmatmul.mubr.bf16.gmra.mrb[60].mxu0 %v7602_v6  ;;  %v5572_v6 = vcombine.high %v605_v1, %v609_v25  ;;  %v6859_v1 = vld [vmem:[%s7427_s10 + $0xa4] ss:$16 sps:$4 sm:$0xff]  }
 0x1fd   : > { %2917 = vmatmul.mubr.bf16.gmra.mrb[36].mxu1 %v6852_v2  ;;  %2991 = vmatprep.subr.bf16.mxu1 %v5572_v6  ;;  %v5628_v6 = vcombine.high %v661_v27, %v665_v17 }
 0x1fe   : > { %2992 = vmatpush1.bf16.msra.mxu1 %v5571_v34  ;;  %2926 = vmatprep.mubr.bf16.mxu1 %v6853_v11 }
 0x1ff   : > { %2993 = vmatprep.subr.bf16.mxu1 %v5580_v37  ;;  %v673_v37 = vld [vmem:[#allocation5 + $0x6b8] sm:$0xff] }
 0x202   : > { %2994 = vmatpush1.bf16.msra.mxu1 %v5579_v33  ;;  %v669_v33 = vld [vmem:[#allocation5 + $0x698] sm:$0xff] }
 0x203   : > { %2995 = vmatprep.subr.bf16.mxu1 %v5588_v15  ;;  %v6860_v15 = vld [vmem:[%s7427_s10 + $0xa0] ss:$16 sps:$4 sm:$0xff]  }
 0x205   : > { %2927 = vmatmul.mubr.bf16.gmra.mrb[40].mxu1 %v6854_v18  ;;  %v5636_v18 = vcombine.high %v669_v33, %v673_v37 }
 0x206   : > { %2996 = vmatpush1.bf16.msra.mxu1 %v5587_v14  ;;  %2936 = vmatprep.mubr.bf16.mxu1 %v6855_v21  ;;  %v5627_v14 = vcombine.low %v661_v27, %v665_v17 }
 0x207   : > { %2997 = vmatprep.subr.bf16.mxu1 %v5596_v7  ;;  %v681_v7 = vld [vmem:[#allocation5 + $0x6f8] sm:$0xff] }
 0x20a   : > { %2998 = vmatpush1.bf16.msra.mxu1 %v5595_v23  ;;  %v677_v23 = vld [vmem:[#allocation5 + $0x6d8] sm:$0xff] }
 0x20b   : > { %2999 = vmatprep.subr.bf16.mxu1 %v5604_v31  ;;  %v5644_v41 = vcombine.high %v677_v23, %v681_v7  ;;  %v5643_v42 = vcombine.low %v677_v23, %v681_v7 }
 0x20d   : > { %2937 = vmatmul.mubr.bf16.gmra.mrb[44].mxu1 %v6856_v19 }
 0x20e   : > { %3000 = vmatpush1.bf16.msra.mxu1 %v5603_v30  ;;  %2946 = vmatprep.mubr.bf16.mxu1 %v6857_v43 }
 0x20f   : > { %3001 = vmatprep.subr.bf16.mxu1 %v5612_v28 }
 0x212   : > { %3002 = vmatpush1.bf16.msra.mxu1 %v5611_v22 }
 0x213   : > { %3003 = vmatprep.subr.bf16.mxu1 %v5620_v54 }
 0x215   : > { %v2343_v32 = vpop.f32.mrb[0].mxu0  ;;  %v2569_v9 = vpop.f32.mrb[0].mxu1  ;;  %2947 = vmatmul.mubr.bf16.gmra.mrb[48].mxu1 %v6858_v3 }
 0x216   : > { %v7655_v35 = vadd.f32 %v2343_v32, %v7650_v24  ;;  %v2345_v36 = vpop.f32.mrb[1].mxu0  ;;  %v2571_v44 = vpop.f32.mrb[1].mxu1  ;;  %v7668_v5 = vadd.f32 %v2569_v9, %v7658_v26  ;;  %2956 = vmatprep.mubr.bf16.mxu1 %v6859_v1  ;;  %3004 = vmatpush1.bf16.msra.mxu1 %v5619_v56  ;;  %v5635_v32 = vcombine.low %v669_v33, %v673_v37  ;;  %v693_v1 = vld [vmem:[#allocation5 + $0x758] sm:$0xff]  ;;  %v6863_v33 = vld [vmem:[%s7427_s10 + $0xe4] ss:$16 sps:$4 sm:$0xff]  }
 0x217   : > { %v2347_v39 = vpop.f32.mrb[2].mxu0  ;;  %v2573_v47 = vpop.f32.mrb[2].mxu1  ;;  %v7685_v60 = vadd.f32 %v2345_v36, %v7671_v53  ;;  %3005 = vmatprep.subr.bf16.mxu1 %v5628_v6  ;;  %v7713_v11 = vadd.f32 %v2571_v44, %v7688_v57  ;;  %v697_v6 = vld [vmem:[#allocation5 + $0x778] sm:$0xff] }
 0x218   : > { %v7663_v48 = vadd.f32 %v2347_v39, %v7650_v24  ;;  %v2349_v49 = vpop.f32.mrb[3].mxu0  ;;  %3228 = vrot.lane.b32.xlu0 %v7655_v35, %s7111_s12  ;;  %v2575_v51 = vpop.f32.mrb[3].mxu1  ;;  %v7677_v55 = vadd.f32 %v2573_v47, %v7658_v26  ;;  %v3132_v21 = vsub.f32 0.0, %v7655_v35  ;;  %v3710_v28 = vsub.f32 0.0, %v7668_v5  ;;  %v685_v47 = vld [vmem:[#allocation5 + $0x718] sm:$0xff] }
 0x219   : > { %v7702_v2 = vadd.f32 %v2349_v49, %v7671_v53  ;;  %v7718_v13 = vadd.f32 %v2575_v51, %v7688_v57  ;;  %v689_v49 = vld [vmem:[#allocation5 + $0x738] sm:$0xff]  ;;  %v3421_v17 = vsub.f32 0.0, %v7685_v60 }
 0x21a   : > { %3230 = vrot.lane.b32.xlu1 %v7663_v48, %s7111_s12  ;;  %3006 = vmatpush1.bf16.msra.mxu1 %v5627_v14  ;;  %v3711_v40 = vsub.f32 0.0, %v7677_v55  ;;  %v5652_v3 = vcombine.high %v685_v47, %v689_v49 }
 0x21b   : > { %3007 = vmatprep.subr.bf16.mxu1 %v5636_v18  ;;  %v3422_v51 = vsub.f32 0.0, %v7702_v2 }
 0x21c   : > { %3806 = vrot.lane.b32.xlu0 %v7668_v5, %s7111_s12 }
 0x21d   : > { %v7681_v59 = vpop.f32.mrb[4].mxu0  ;;  %v7690_v61 = vpop.f32.mrb[4].mxu1  ;;  %2957 = vmatmul.mubr.bf16.gmra.mrb[52].mxu1 %v6860_v15 }
 0x21e   : > { %v7692_v0 = vpop.f32.mrb[5].mxu0  ;;  %3808 = vrot.lane.b32.xlu1 %v7677_v55, %s7111_s12  ;;  %v7697_v25 = vpop.f32.mrb[5].mxu1  ;;  %2966 = vmatprep.mubr.bf16.mxu1 %v6861_v29  ;;  %v7766_v37 = vadd.f32 %v7681_v59, %v7650_v24  ;;  %v4000_v59 = vsub.f32 0.0, %v7718_v13  ;;  %v5660_v29 = vcombine.high %v693_v1, %v697_v6 }
 0x21f   : > { %v7699_v34 = vpop.f32.mrb[6].mxu0  ;;  %v7704_v4 = vpop.f32.mrb[6].mxu1  ;;  %3008 = vmatpush1.bf16.msra.mxu1 %v5635_v32 }
 0x220   : > { %v7706_v8 = vpop.f32.mrb[7].mxu0  ;;  %3517 = vrot.lane.b32.xlu0 %v7685_v60, %s7111_s12  ;;  %v7710_v10 = vpop.f32.mrb[7].mxu1  ;;  %3009 = vmatprep.subr.bf16.mxu1 %v5644_v41  ;;  %v705_v41 = vld [vmem:[#allocation5 + $0x7b8] sm:$0xff] }
 0x222   : > { %3519 = vrot.lane.b32.xlu1 %v7702_v2, %s7111_s12 }
 0x223   : > { %3010 = vmatpush1.bf16.msra.mxu1 %v5643_v42 }
 0x224   : > { %4095 = vrot.lane.b32.xlu0 %v7713_v11, %s7111_s12  ;;  %3011 = vmatprep.subr.bf16.mxu1 %v5652_v3  ;;  %v3133_v3 = vsub.f32 0.0, %v7663_v48 }
 0x225   : > { %v2363_v52 = vpop.f32.mrb[8].mxu0  ;;  %v2589_v50 = vpop.f32.mrb[8].mxu1  ;;  %2967 = vmatmul.mubr.bf16.gmra.mrb[56].mxu1 %v6862_v16 }
 0x226   : > { %v7724_v46 = vadd.f32 %v2363_v52, %v7650_v24  ;;  %v2365_v20 = vpop.f32.mrb[9].mxu0  ;;  %4097 = vrot.lane.b32.xlu1 %v7718_v13, %s7111_s12  ;;  %v7731_v58 = vadd.f32 %v2589_v50, %v7658_v26  ;;  %v2591_v30 = vpop.f32.mrb[9].mxu1  ;;  %2976 = vmatprep.mubr.bf16.mxu1 %v6863_v33  ;;  %v5651_v50 = vcombine.low %v685_v47, %v689_v49  ;;  %v6864_v49 = vld [vmem:[%s7427_s10 + $0xe0] ss:$16 sps:$4 sm:$0xff]  }
 0x227   : > { %v7734_v62 = vadd.f32 %v2365_v20, %v7671_v53  ;;  %v2367_v31 = vpop.f32.mrb[10].mxu0  ;;  %v7737_v19 = vadd.f32 %v2591_v30, %v7688_v57  ;;  %v2593_v12 = vpop.f32.mrb[10].mxu1  ;;  %v5659_v47 = vcombine.low %v693_v1, %v697_v6  ;;  %v7804_v33 = vadd.f32 %v7699_v34, %v7650_v24 }
 0x228   : > { %v7740_v9 = vadd.f32 %v2367_v31, %v7650_v24  ;;  %v2369_v36 = vpop.f32.mrb[11].mxu0  ;;  %3164 = vrot.lane.b32.xlu0 %v3132_v21, %s7111_s12  ;;  %v7745_v43 = vadd.f32 %v2593_v12, %v7658_v26  ;;  %v2595_v39 = vpop.f32.mrb[11].mxu1  ;;  %3012 = vmatpush1.bf16.msra.mxu1 %v5651_v50 }
 0x229   : > { %9190 = vst [vmem:[#allocation31_spill] sm:$0xff] %v7737_v19  ;;  %v7748_v44 = vadd.f32 %v2369_v36, %v7671_v53  ;;  %v7751_v22 = vadd.f32 %v2595_v39, %v7688_v57  ;;  %v3999_v36 = vsub.f32 0.0, %v7713_v11  ;;  %v3134_v39 = vsub.f32 0.0, %v7766_v37  ;;  %3013 = vmatprep.subr.bf16.mxu1 %v5660_v29 }
 0x22a   : > { %3744 = vrot.lane.b32.xlu1 %v3711_v40, %s7111_s12  ;;  %v701_v40 = vld [vmem:[#allocation5 + $0x798] sm:$0xff] }
 0x22b   : > { %9191 = vst [vmem:[#allocation32_spill] sm:$0xff] %v7751_v22  ;;  %v5667_v50 = vcombine.low %v701_v40, %v705_v41 }
 0x22c   : > { %3742 = vrot.lane.b32.xlu0 %v3710_v28, %s7111_s12  ;;  %3014 = vmatpush1.bf16.msra.mxu1 %v5659_v47 }
 0x22d   : > { %v2373_v38 = vpop.f32.mrb[12].mxu0  ;;  %v2599_v54 = vpop.f32.mrb[12].mxu1  ;;  %2977 = vmatmul.mubr.bf16.gmra.mrb[60].mxu1 %v6864_v49  ;;  %v7838_v49 = vadd.f32 %v7690_v61, %v7658_v26  ;;  %v7853_v61 = vadd.f32 %v7706_v8, %v7671_v53  ;;  %v7871_v8 = vadd.f32 %v7692_v0, %v7671_v53  ;;  %v7888_v0 = vadd.f32 %v7697_v25, %v7688_v57 }
 0x22e   : > { %v7759_v56 = vadd.f32 %v2373_v38, %v7650_v24  ;;  %v2375_v27 = vpop.f32.mrb[13].mxu0  ;;  %3455 = vrot.lane.b32.xlu1 %v3422_v51, %s7111_s12  ;;  %v7769_v52 = vadd.f32 %v2599_v54, %v7658_v26  ;;  %v2601_v15 = vpop.f32.mrb[13].mxu1  ;;  %v5668_v51 = vcombine.high %v701_v40, %v705_v41  ;;  %v709_v54 = vld [vmem:[#allocation5 + $0x7d8] sm:$0xff] }
 0x22f   : > { %v7772_v14 = vadd.f32 %v2375_v27, %v7671_v53  ;;  %v2377_v18 = vpop.f32.mrb[14].mxu0  ;;  %v7775_v20 = vadd.f32 %v2601_v15, %v7688_v57  ;;  %v2603_v23 = vpop.f32.mrb[14].mxu1  ;;  %v713_v27 = vld [vmem:[#allocation5 + $0x7f8] sm:$0xff] }
 0x230   : > { %9192 = vst [vmem:[#allocation33_spill] sm:$0xff] %v7759_v56  ;;  %9193 = vst [vmem:[#allocation34_spill] sm:$0xff] %v7769_v52  ;;  %v7778_v21 = vadd.f32 %v2377_v18, %v7650_v24  ;;  %v2379_v7 = vpop.f32.mrb[15].mxu0  ;;  %3453 = vrot.lane.b32.xlu0 %v3421_v17, %s7111_s12  ;;  %v7783_v30 = vadd.f32 %v2603_v23, %v7658_v26  ;;  %v2605_v32 = vpop.f32.mrb[15].mxu1  ;;  %v6865_v17 = vld [vmem:[%s7427_s10 + $0xc] ss:$16 sps:$4 sm:$0xff]   ;;  %3015 = vmatprep.subr.bf16.mxu1 %v5668_v51 }
 0x231   : > { %9194 = vst [vmem:[#allocation35_spill] sm:$0xff] %v7772_v14  ;;  %9195 = vst [vmem:[#allocation36_spill] sm:$0xff] %v7775_v20  ;;  %v7786_v31 = vadd.f32 %v2379_v7, %v7671_v53  ;;  %v7789_v12 = vadd.f32 %v2605_v32, %v7688_v57  ;;  %3019 = vmatprep.mubr.bf16.mxu1 %v6865_v17  ;;  %v5676_v34 = vcombine.high %v709_v54, %v713_v27 }
 0x232   : > { %9196 = vst [vmem:[#allocation37_spill] sm:$0xff] %v7778_v21  ;;  %9197 = vst [vmem:[#allocation38_spill] sm:$0xff] %v7783_v30  ;;  %4033 = vrot.lane.b32.xlu1 %v4000_v59, %s7111_s12  ;;  %3016 = vmatpush1.bf16.msra.mxu1 %v5667_v50  ;;  %v5675_v41 = vcombine.low %v709_v54, %v713_v27 }
 0x233   : > { %9198 = vst [vmem:[#allocation39_spill] sm:$0xff] %v7786_v31  ;;  %9199 = vst [vmem:[#allocation40_spill] sm:$0xff] %v7789_v12  ;;  %3017 = vmatprep.subr.bf16.mxu1 %v5676_v34 }
 0x234   : > { %4031 = vrot.lane.b32.xlu0 %v3999_v36, %s7111_s12 }
 0x235   : > { %v2383_v28 = vpop.f32.mrb[16].mxu0  ;;  %v2609_v42 = vpop.f32.mrb[16].mxu1 }
 0x236   : > { %v7797_v38 = vadd.f32 %v2383_v28, %v7650_v24  ;;  %v2385_v16 = vpop.f32.mrb[17].mxu0  ;;  %3168 = vrot.lane.b32.xlu1 %v3134_v39, %s7111_s12  ;;  %v7807_v1 = vadd.f32 %v2609_v42, %v7658_v26  ;;  %v2611_v15 = vpop.f32.mrb[17].mxu1  ;;  %v7832_v28 = vadd.f32 %v7704_v4, %v7658_v26  ;;  %3018 = vmatpush1.bf16.msra.mxu1 %v5675_v41  ;;  %v6866_v41 = vld [vmem:[%s7427_s10 + $0x8] ss:$16 sps:$4 sm:$0xff]  }
 0x237   : > { %v7810_v6 = vadd.f32 %v2385_v16, %v7671_v53  ;;  %v2387_v18 = vpop.f32.mrb[18].mxu0  ;;  %v7813_v23 = vadd.f32 %v2611_v15, %v7688_v57  ;;  %v2613_v59 = vpop.f32.mrb[18].mxu1 }
 0x238   : > { %v7816_v7 = vadd.f32 %v2387_v18, %v7650_v24  ;;  %v2389_v29 = vpop.f32.mrb[19].mxu0  ;;  %3166 = vrot.lane.b32.xlu0 %v3133_v3, %s7111_s12  ;;  %v7820_v32 = vadd.f32 %v2613_v59, %v7658_v26  ;;  %v2615_v39 = vpop.f32.mrb[19].mxu1 }
 0x239   : > { %v7823_v36 = vadd.f32 %v2389_v29, %v7671_v53  ;;  %v7826_v40 = vadd.f32 %v2615_v39, %v7688_v57  ;;  %3020 = vmatmul.mubr.bf16.vlgmr.msra.gmra.mrb[32].mxu1 %v6866_v41 }
 0x23a   : > { %3234 = vrot.lane.b32.xlu1 %v7804_v33, %s7111_s12 }
 0x23c   : > { %3232 = vrot.lane.b32.xlu0 %v7766_v37, %s7111_s12 }
 0x23d   : > { %v2393_v47 = vpop.f32.mrb[20].mxu0  ;;  %v2619_v42 = vpop.f32.mrb[20].mxu1 }
 0x23e   : > { %v7841_v51 = vadd.f32 %v2393_v47, %v7650_v24  ;;  %v2395_v16 = vpop.f32.mrb[21].mxu0  ;;  %3812 = vrot.lane.b32.xlu1 %v7832_v28, %s7111_s12  ;;  %v7846_v4 = vadd.f32 %v2619_v42, %v7658_v26  ;;  %v2621_v54 = vpop.f32.mrb[21].mxu1  ;;  %v6867_v47 = vld [vmem:[%s7427_s10 + $0x2c] ss:$16 sps:$4 sm:$0xff]   ;;  %v7882_v42 = vadd.f32 %v7710_v10, %v7688_v57 }
 0x23f   : > { %v7849_v3 = vadd.f32 %v2395_v16, %v7671_v53  ;;  %v2397_v27 = vpop.f32.mrb[22].mxu0  ;;  %v7856_v17 = vadd.f32 %v2621_v54, %v7688_v57  ;;  %v2623_v18 = vpop.f32.mrb[22].mxu1  ;;  %3029 = vmatprep.mubr.bf16.mxu1 %v6867_v47 }
 0x240   : > { %v7859_v15 = vadd.f32 %v2397_v27, %v7650_v24  ;;  %v2399_v50 = vpop.f32.mrb[23].mxu0  ;;  %3810 = vrot.lane.b32.xlu0 %v7838_v49, %s7111_s12  ;;  %v7864_v59 = vadd.f32 %v2623_v18, %v7658_v26  ;;  %v2625_v34 = vpop.f32.mrb[23].mxu1 }
 0x241   : > { %9200 = vst [vmem:[#allocation41_spill] sm:$0xff] %v7856_v17  ;;  %v7867_v29 = vadd.f32 %v2399_v50, %v7671_v53  ;;  %v7874_v39 = vadd.f32 %v2625_v34, %v7688_v57 }
 0x242   : > { %3523 = vrot.lane.b32.xlu1 %v7853_v61, %s7111_s12 }
 0x243   : > { %9201 = vst [vmem:[#allocation42_spill] sm:$0xff] %v7867_v29  ;;  %9202 = vst [vmem:[#allocation43_spill] sm:$0xff] %v7874_v39  ;;  %v3713_v39 = vsub.f32 0.0, %v7832_v28 }
 0x244   : > { %3521 = vrot.lane.b32.xlu0 %v7871_v8, %s7111_s12 }
 0x245   : > { %v2403_v16 = vpop.f32.mrb[24].mxu0  ;;  %v2629_v27 = vpop.f32.mrb[24].mxu1 }
 0x246   : > { %v7891_v54 = vadd.f32 %v2403_v16, %v7650_v24  ;;  %v2405_v18 = vpop.f32.mrb[25].mxu0  ;;  %4101 = vrot.lane.b32.xlu1 %v7882_v42, %s7111_s12  ;;  %v7896_v10 = vadd.f32 %v2629_v27, %v7658_v26  ;;  %v2631_v34 = vpop.f32.mrb[25].mxu1  ;;  %v3135_v27 = vsub.f32 0.0, %v7804_v33 }
 0x247   : > { %v7899_v50 = vadd.f32 %v2405_v18, %v7671_v53  ;;  %v2407_v41 = vpop.f32.mrb[26].mxu0  ;;  %v7902_v25 = vadd.f32 %v2631_v34, %v7688_v57  ;;  %v2633_v16 = vpop.f32.mrb[26].mxu1  ;;  %v3712_v18 = vsub.f32 0.0, %v7838_v49 }
 0x248   : > { %9203 = vst [vmem:[#allocation44_spill] sm:$0xff] %v7891_v54  ;;  %9204 = vst [vmem:[#allocation45_spill] sm:$0xff] %v7896_v10  ;;  %v7905_v47 = vadd.f32 %v2407_v41, %v7650_v24  ;;  %v2409_v54 = vpop.f32.mrb[27].mxu0  ;;  %4099 = vrot.lane.b32.xlu0 %v7888_v0, %s7111_s12  ;;  %v2635_v10 = vpop.f32.mrb[27].mxu1  ;;  %v7914_v34 = vadd.f32 %v2633_v16, %v7658_v26 }
 0x249   : > { %9205 = vst [vmem:[#allocation46_spill] sm:$0xff] %v7899_v50  ;;  %9206 = vst [vmem:[#allocation47_spill] sm:$0xff] %v7902_v25  ;;  %v6868_v50 = vld [vmem:[%s7427_s10 + $0x28] ss:$16 sps:$4 sm:$0xff]   ;;  %v7917_v41 = vadd.f32 %v2409_v54, %v7671_v53  ;;  %v7920_v25 = vadd.f32 %v2635_v10, %v7688_v57  ;;  %v3423_v54 = vsub.f32 0.0, %v7871_v8 }
 0x24a   : > { %9207 = vst [vmem:[#allocation48_spill] sm:$0xff] %v7905_v47  ;;  %3170 = vrot.lane.b32.xlu1 %v3135_v27, %s7111_s12  ;;  %3030 = vmatmul.mubr.bf16.gmra.mrb[36].mxu1 %v6868_v50  ;;  %9208 = vst [vmem:[#allocation49_spill] sm:$0xff] %v7914_v34  ;;  %v6869_v47 = vld [vmem:[%s7427_s10 + $0x4c] ss:$16 sps:$4 sm:$0xff]  }
 0x24b   : > { %9209 = vst [vmem:[#allocation50_spill] sm:$0xff] %v7917_v41  ;;  %9210 = vst [vmem:[#allocation51_spill] sm:$0xff] %v7920_v25  ;;  %3039 = vmatprep.mubr.bf16.mxu1 %v6869_v47 }
 0x24c   : > { %3746 = vrot.lane.b32.xlu0 %v3712_v18, %s7111_s12 }
 0x24d   : > { %v2413_v27 = vpop.f32.mrb[28].mxu0  ;;  %v2639_v50 = vpop.f32.mrb[28].mxu1 }
 0x24e   : > { %v7926_v17 = vadd.f32 %v2413_v27, %v7650_v24  ;;  %v2415_v29 = vpop.f32.mrb[29].mxu0  ;;  %3748 = vrot.lane.b32.xlu1 %v3713_v39, %s7111_s12  ;;  %v7931_v10 = vadd.f32 %v2639_v50, %v7658_v26  ;;  %v2641_v16 = vpop.f32.mrb[29].mxu1  ;;  %v3424_v39 = vsub.f32 0.0, %v7853_v61 }
 0x24f   : > { %v7934_v47 = vadd.f32 %v2415_v29, %v7671_v53  ;;  %v2417_v18 = vpop.f32.mrb[30].mxu0  ;;  %v7937_v25 = vadd.f32 %v2641_v16, %v7688_v57  ;;  %v4001_v29 = vsub.f32 0.0, %v7888_v0 }
 0x250   : > { %9211 = vst [vmem:[#allocation52_spill] sm:$0xff] %v7926_v17  ;;  %9212 = vst [vmem:[#allocation53_spill] sm:$0xff] %v7931_v10  ;;  %v7940_v27 = vadd.f32 %v2417_v18, %v7650_v24  ;;  %v2643_v17 = vpop.f32.mrb[30].mxu1  ;;  %v2419_v41 = vpop.f32.mrb[31].mxu0  ;;  %3457 = vrot.lane.b32.xlu0 %v3423_v54, %s7111_s12  ;;  %v6871_v54 = vld [vmem:[%s7427_s10 + $0x6c] ss:$16 sps:$4 sm:$0xff]  }
 0x251   : > { %9213 = vst [vmem:[#allocation54_spill] sm:$0xff] %v7934_v47  ;;  %9214 = vst [vmem:[#allocation55_spill] sm:$0xff] %v7937_v25  ;;  %v2645_v50 = vpop.f32.mrb[31].mxu1  ;;  %v6870_v47 = vld [vmem:[%s7427_s10 + $0x48] ss:$16 sps:$4 sm:$0xff]   ;;  %v7948_v16 = vadd.f32 %v2643_v17, %v7658_v26  ;;  %v7951_v24 = vadd.f32 %v2419_v41, %v7671_v53  ;;  %v3136_v41 = vsub.f32 0.0, %v7724_v46 }
 0x252   : > { %9215 = vst [vmem:[#allocation56_spill] sm:$0xff] %v7940_v27  ;;  %3459 = vrot.lane.b32.xlu1 %v3424_v39, %s7111_s12  ;;  %3040 = vmatmul.mubr.bf16.gmra.mrb[40].mxu1 %v6870_v47  ;;  %v7954_v18 = vadd.f32 %v2645_v50, %v7688_v57  ;;  %v4002_v39 = vsub.f32 0.0, %v7882_v42  ;;  %v6872_v26 = vld [vmem:[%s7427_s10 + $0x68] ss:$16 sps:$4 sm:$0xff]   ;;  %v6873_v53 = vld [vmem:[%s7427_s10 + $0x8c] ss:$16 sps:$4 sm:$0xff]  }
 0x253   : > { %9216 = vst [vmem:[#allocation57_spill] sm:$0xff] %v7948_v16  ;;  %9217 = vst [vmem:[#allocation58_spill] sm:$0xff] %v7951_v24  ;;  %3049 = vmatprep.mubr.bf16.mxu1 %v6871_v54  ;;  %v6874_v57 = vld [vmem:[%s7427_s10 + $0x88] ss:$16 sps:$4 sm:$0xff]   ;;  %v6875_v17 = vld [vmem:[%s7427_s10 + $0xac] ss:$16 sps:$4 sm:$0xff]  }
 0x254   : > { %9218 = vst [vmem:[#allocation59_spill] sm:$0xff] %v7954_v18  ;;  %4035 = vrot.lane.b32.xlu0 %v4001_v29, %s7111_s12  ;;  %v3137_v47 = vsub.f32 0.0, %v7740_v9  ;;  %v3714_v50 = vsub.f32 0.0, %v7731_v58  ;;  %v6876_v29 = vld [vmem:[%s7427_s10 + $0xa8] ss:$16 sps:$4 sm:$0xff]  }
 0x255   : > { %v6877_v54 = vld [vmem:[%s7427_s10 + $0xcc] ss:$16 sps:$4 sm:$0xff]  }
 0x256   : > { %4037 = vrot.lane.b32.xlu1 %v4002_v39, %s7111_s12  ;;  %v3715_v39 = vsub.f32 0.0, %v7745_v43 }
 0x258   : > { %3236 = vrot.lane.b32.xlu0 %v7724_v46, %s7111_s12 }
 0x25a   : > { %3238 = vrot.lane.b32.xlu1 %v7740_v9, %s7111_s12  ;;  %3050 = vmatmul.mubr.bf16.gmra.mrb[44].mxu1 %v6872_v26  ;;  %v3425_v26 = vsub.f32 0.0, %v7734_v62 }
 0x25b   : > { %3059 = vmatprep.mubr.bf16.mxu1 %v6873_v53  ;;  %v3426_v53 = vsub.f32 0.0, %v7748_v44 }
 0x25c   : > { %3814 = vrot.lane.b32.xlu0 %v7731_v58, %s7111_s12 }
 0x25e   : > { %3816 = vrot.lane.b32.xlu1 %v7745_v43, %s7111_s12 }
 0x260   : > { %3525 = vrot.lane.b32.xlu0 %v7734_v62, %s7111_s12 }
 0x262   : > { %3527 = vrot.lane.b32.xlu1 %v7748_v44, %s7111_s12  ;;  %3060 = vmatmul.mubr.bf16.gmra.mrb[48].mxu1 %v6874_v57  ;;  %v4003_v57 = vsub.f32 0.0, %v7737_v19 }
 0x263   : > { %3069 = vmatprep.mubr.bf16.mxu1 %v6875_v17  ;;  %v6878_v17 = vld [vmem:[%s7427_s10 + $0xc8] ss:$16 sps:$4 sm:$0xff]  }
 0x264   : > { %4103 = vrot.lane.b32.xlu0 %v7737_v19, %s7111_s12 }
 0x266   : > { %4105 = vrot.lane.b32.xlu1 %v7751_v22, %s7111_s12 }
 0x268   : > { %3172 = vrot.lane.b32.xlu0 %v3136_v41, %s7111_s12  ;;  %v6879_v41 = vld [vmem:[%s7427_s10 + $0xec] ss:$16 sps:$4 sm:$0xff]  }
 0x26a   : > { %3174 = vrot.lane.b32.xlu1 %v3137_v47, %s7111_s12  ;;  %3070 = vmatmul.mubr.bf16.gmra.mrb[52].mxu1 %v6876_v29  ;;  %v4004_v47 = vsub.f32 0.0, %v7751_v22  ;;  %v3138_v29 = vsub.f32 0.0, %v7759_v56 }
 0x26b   : > { %3079 = vmatprep.mubr.bf16.mxu1 %v6877_v54  ;;  %v3139_v54 = vsub.f32 0.0, %v7778_v21 }
 0x26c   : > { %3750 = vrot.lane.b32.xlu0 %v3714_v50, %s7111_s12  ;;  %v6880_v50 = vld [vmem:[%s7427_s10 + $0xe8] ss:$16 sps:$4 sm:$0xff]  }
 0x26e   : > { %3752 = vrot.lane.b32.xlu1 %v3715_v39, %s7111_s12 }
 0x270   : > { %3461 = vrot.lane.b32.xlu0 %v3425_v26, %s7111_s12  ;;  %v3716_v26 = vsub.f32 0.0, %v7769_v52 }
 0x272   : > { %3463 = vrot.lane.b32.xlu1 %v3426_v53, %s7111_s12  ;;  %3080 = vmatmul.mubr.bf16.gmra.mrb[56].mxu1 %v6878_v17 }
 0x273   : > { %3089 = vmatprep.mubr.bf16.mxu1 %v6879_v41  ;;  %v3427_v41 = vsub.f32 0.0, %v7772_v14 }
 0x274   : > { %4039 = vrot.lane.b32.xlu0 %v4003_v57, %s7111_s12  ;;  %v3717_v57 = vsub.f32 0.0, %v7783_v30 }
 0x276   : > { %4041 = vrot.lane.b32.xlu1 %v4004_v47, %s7111_s12 }
 0x278   : > { %3240 = vrot.lane.b32.xlu0 %v7759_v56, %s7111_s12 }
 0x27a   : > { %3242 = vrot.lane.b32.xlu1 %v7778_v21, %s7111_s12  ;;  %3090 = vmatmul.mubr.bf16.gmra.mrb[60].mxu1 %v6880_v50  ;;  %v3428_v50 = vsub.f32 0.0, %v7786_v31 }
 0x27c   : > { %3818 = vrot.lane.b32.xlu0 %v7769_v52, %s7111_s12 }
 0x27e   : > { %3820 = vrot.lane.b32.xlu1 %v7783_v30, %s7111_s12  ;;  %v3116_v30 = vld [vmem:[%s8050_s16] sm:$0xff] }
 0x280   : > { %3529 = vrot.lane.b32.xlu0 %v7772_v14, %s7111_s12 }
 0x282   : > { %3531 = vrot.lane.b32.xlu1 %v7786_v31, %s7111_s12 }
 0x284   : > { %4107 = vrot.lane.b32.xlu0 %v7775_v20, %s7111_s12 }
 0x286   : > { %4109 = vrot.lane.b32.xlu1 %v7789_v12, %s7111_s12 }
 0x288   : > { %3176 = vrot.lane.b32.xlu0 %v3138_v29, %s7111_s12 }
 0x28a   : > { %3178 = vrot.lane.b32.xlu1 %v3139_v54, %s7111_s12  ;;  %v8021_v39 = vpop.permute.xlu0 %3228  ;;  %v4005_v54 = vsub.f32 0.0, %v7775_v20 }
 0x28c   : > { %v8024_v53 = vpop.permute.xlu1 %3230  ;;  %3754 = vrot.lane.b32.xlu0 %v3716_v26, %s7111_s12  ;;  %v4006_v26 = vsub.f32 0.0, %v7789_v12  ;;  %v3101_v12 = vld [vmem:[%s7444_s29 + $0x8] sm:$0xff] }
 0x28d   : > { %v3871_v56 = vmul.f32 %v7677_v55, %v3101_v12 }
 0x28e   : > { %3756 = vrot.lane.b32.xlu1 %v3717_v57, %s7111_s12  ;;  %v3807_v17 = vpop.permute.xlu0 %3806 }
 0x290   : > { %v3809_v47 = vpop.permute.xlu1 %3808  ;;  %3465 = vrot.lane.b32.xlu0 %v3427_v41, %s7111_s12 }
 0x292   : > { %3467 = vrot.lane.b32.xlu1 %v3428_v50, %s7111_s12  ;;  %v3518_v29 = vpop.permute.xlu0 %3517 }
 0x294   : > { %v3520_v18 = vpop.permute.xlu1 %3519  ;;  %4043 = vrot.lane.b32.xlu0 %v4005_v54, %s7111_s12 }
 0x296   : > { %4045 = vrot.lane.b32.xlu1 %v4006_v26, %s7111_s12  ;;  %v4096_v57 = vpop.permute.xlu0 %4095  ;;  %v8037_v14 = vpop.f32.mrb[32].mxu0  ;;  %v8053_v26 = vld [vmem:[%s8050_s16 + $0x8] sm:$0xff] }
 0x297   : > { %9219 = vst [vmem:[#allocation60_spill] sm:$0xff] %v8037_v14  ;;  %v8039_v41 = vpop.f32.mrb[33].mxu0  ;;  %v3100_v14 = vld [vmem:[%s7444_s29] sm:$0xff] }
 0x298   : > { %9220 = vst [vmem:[#allocation61_spill] sm:$0xff] %v8039_v41  ;;  %v4098_v31 = vpop.permute.xlu1 %4097  ;;  %3244 = vrot.lane.b32.xlu0 %v7797_v38, %s7111_s12  ;;  %v8043_v50 = vpop.f32.mrb[34].mxu0  ;;  %v3870_v21 = vmul.f32 %v7668_v5, %v3100_v14 }
 0x299   : > { %9221 = vst [vmem:[#allocation62_spill] sm:$0xff] %v8043_v50  ;;  %v8045_v20 = vpop.f32.mrb[35].mxu0 }
 0x29a   : > { %9222 = vst [vmem:[#allocation63_spill] sm:$0xff] %v8045_v20  ;;  %3246 = vrot.lane.b32.xlu1 %v7816_v7, %s7111_s12  ;;  %v3165_v54 = vpop.permute.xlu0 %3164 }
 0x29c   : > { %v3745_v41 = vpop.permute.xlu1 %3744  ;;  %3822 = vrot.lane.b32.xlu0 %v7807_v1, %s7111_s12 }
 0x29d   : > { %v3855_v50 = vsel %vm3276_vm0, %v3745_v41, %v3809_v47 }
 0x29e   : > { %v3887_v20 = vmul.f32 %v3855_v50, %v8053_v26  ;;  %3824 = vrot.lane.b32.xlu1 %v7820_v32, %s7111_s12  ;;  %v3743_v25 = vpop.permute.xlu0 %3742  ;;  %v8063_v24 = vpop.f32.mrb[36].mxu0 }
 0x29f   : > { %9223 = vst [vmem:[#allocation64_spill] sm:$0xff] %v8063_v24  ;;  %v3854_v52 = vsel %vm3276_vm0, %v3743_v25, %v3807_v17  ;;  %v8067_v16 = vpop.f32.mrb[37].mxu0 }
 0x2a0   : > { %9224 = vst [vmem:[#allocation65_spill] sm:$0xff] %v8067_v16  ;;  %v3886_v10 = vmul.f32 %v3854_v52, %v3116_v30  ;;  %v3456_v27 = vpop.permute.xlu1 %3455  ;;  %3533 = vrot.lane.b32.xlu0 %v7810_v6, %s7111_s12  ;;  %v8073_v47 = vpop.f32.mrb[38].mxu0  ;;  %v3903_v24 = vadd.f32 %v3887_v20, %v3871_v56  ;;  %v3581_v52 = vmul.f32 %v7685_v60, %v3100_v14 }
 0x2a1   : > { %9225 = vst [vmem:[#allocation66_spill] sm:$0xff] %v8073_v47  ;;  %v3566_v41 = vsel %vm3276_vm0, %v3456_v27, %v3520_v18  ;;  %v8076_v50 = vpop.f32.mrb[39].mxu0  ;;  %v3582_v16 = vmul.f32 %v7702_v2, %v3101_v12  ;;  %v3140_v2 = vsub.f32 0.0, %v7797_v38 }
 0x2a2   : > { %v3902_v25 = vadd.f32 %v3886_v10, %v3870_v21  ;;  %v3598_v17 = vmul.f32 %v3566_v41, %v8053_v26  ;;  %3535 = vrot.lane.b32.xlu1 %v7823_v36, %s7111_s12  ;;  %v3454_v5 = vpop.permute.xlu0 %3453  ;;  %v3141_v41 = vsub.f32 0.0, %v7816_v7 }
 0x2a3   : > { %v3565_v55 = vsel %vm3276_vm0, %v3454_v5, %v3518_v29  ;;  %v3293_v5 = vmul.f32 %v7655_v35, %v3100_v14 }
 0x2a4   : > { %v6114_v47 = vpack.c.bf16 %v3903_v24, %v3902_v25  ;;  %v3597_v22 = vmul.f32 %v3565_v55, %v3116_v30  ;;  %v4034_v19 = vpop.permute.xlu1 %4033  ;;  %4111 = vrot.lane.b32.xlu0 %v7813_v23, %s7111_s12  ;;  %v3614_v20 = vadd.f32 %v3598_v17, %v3582_v16 }
 0x2a5   : > { %v4144_v56 = vsel %vm3276_vm0, %v4034_v19, %v4098_v31  ;;  %v4159_v19 = vmul.f32 %v7713_v11, %v3100_v14  ;;  %v3277_v31 = vsel %vm3276_vm0, %v3165_v54, %v8021_v39  ;;  %v3429_v14 = vsub.f32 0.0, %v7810_v6 }
 0x2a6   : > { %6366 = vst [vmem:[%s8089_s26 + $0x80] sm:$0xff] %v6114_v47   ;;  %v3613_v21 = vadd.f32 %v3597_v22, %v3581_v52  ;;  %v4176_v10 = vmul.f32 %v4144_v56, %v8053_v26  ;;  %4113 = vrot.lane.b32.xlu1 %v7826_v40, %s7111_s12  ;;  %v4032_v60 = vpop.permute.xlu0 %4031  ;;  %v8096_v27 = vpop.f32.mrb[40].mxu0  ;;  %v4160_v22 = vmul.f32 %v7718_v13, %v3101_v12  ;;  %v3718_v13 = vsub.f32 0.0, %v7807_v1 }
 0x2a7   : > { %v4143_v24 = vsel %vm3276_vm0, %v4032_v60, %v4096_v57  ;;  %v8102_v16 = vpop.f32.mrb[41].mxu0  ;;  %v3309_v11 = vmul.f32 %v3277_v31, %v3116_v30  ;;  %v3294_v52 = vmul.f32 %v7663_v48, %v3101_v12  ;;  %v734_v31 = vsub.s32 4, %v7642_v45 }
 0x2a8   : > { %v6074_v18 = vpack.c.bf16 %v3614_v20, %v3613_v21  ;;  %v4175_v29 = vmul.f32 %v4143_v24, %v3116_v30  ;;  %v3169_v47 = vpop.permute.xlu1 %3168  ;;  %3180 = vrot.lane.b32.xlu0 %v3140_v2, %s7111_s12  ;;  %v8107_v25 = vpop.f32.mrb[42].mxu0  ;;  %v4192_v39 = vadd.f32 %v4176_v10, %v4160_v22  ;;  %v3719_v21 = vsub.f32 0.0, %v7820_v32 }
 0x2a9   : > { %v8109_v17 = vpop.f32.mrb[43].mxu0  ;;  %v3325_v10 = vadd.f32 %v3309_v11, %v3293_v5  ;;  %v3430_v2 = vsub.f32 0.0, %v7823_v36  ;;  %v4008_v11 = vsub.f32 0.0, %v7826_v40 }
 0x2aa   : > { %6358 = vst [vmem:[%s8089_s26 + $0x40] sm:$0xff] %v6074_v18   ;;  %v4191_v57 = vadd.f32 %v4175_v29, %v4159_v19  ;;  %3182 = vrot.lane.b32.xlu1 %v3141_v41, %s7111_s12  ;;  %v3167_v54 = vpop.permute.xlu0 %3166  ;;  %v4007_v18 = vsub.f32 0.0, %v7813_v23  ;;  %v738_v29 = vsub.s32 5, %v7642_v45 }
 0x2ab   : > { %v3278_v55 = vsel %vm3276_vm0, %v3167_v54, %v8024_v53 }
 0x2ac   : > { %v6154_v56 = vpack.c.bf16 %v4192_v39, %v4191_v57  ;;  %v3310_v20 = vmul.f32 %v3278_v55, %v8053_v26  ;;  %v3235_v30 = vpop.permute.xlu1 %3234  ;;  %3758 = vrot.lane.b32.xlu0 %v3718_v13, %s7111_s12  ;;  %v8144_v39 = vrot.slane %v7647_v63, %v734_v31  ;;  %v8148_v54 = vrot.slane %v7647_v63, %v738_v29  ;;  %v8174_v31 = vld [vmem:[%s7444_s29 + $0x18] sm:$0xff] }
 0x2ae   : > { %6374 = vst [vmem:[%s8089_s26 + $0xc0] sm:$0xff] %v6154_v56   ;;  %v3326_v60 = vadd.f32 %v3310_v20, %v3294_v52  ;;  %3760 = vrot.lane.b32.xlu1 %v3719_v21, %s7111_s12  ;;  %v3233_v35 = vpop.permute.xlu0 %3232  ;;  %v8124_v53 = vpop.f32.mrb[44].mxu0  ;;  %v8161_v21 = vld [vmem:[%s8050_s16 + $0x10] sm:$0xff] }
 0x2af   : > { %v8126_v48 = vpop.f32.mrb[45].mxu0  ;;  %v3279_v63 = vsel %vm3276_vm0, %v3169_v47, %v3233_v35 }
 0x2b0   : > { %v6034_v12 = vpack.c.bf16 %v3326_v60, %v3325_v10  ;;  %v3813_v26 = vpop.permute.xlu1 %3812  ;;  %3469 = vrot.lane.b32.xlu0 %v3429_v14, %s7111_s12  ;;  %v8130_v19 = vpop.f32.mrb[46].mxu0  ;;  %v3311_v29 = vmul.f32 %v3279_v63, %v8161_v21 }
 0x2b1   : > { %v8133_v24 = vpop.f32.mrb[47].mxu0 }
 0x2b2   : > { %6035 = vst [vmem:[%s8089_s26] sm:$0xff] %v6034_v12   ;;  %3471 = vrot.lane.b32.xlu1 %v3430_v2, %s7111_s12  ;;  %v3811_v22 = vpop.permute.xlu0 %3810  ;;  %v3102_v2 = vld [vmem:[%s7444_s29 + $0x10] sm:$0xff] }
 0x2b3   : > { %v3295_v35 = vmul.f32 %v7766_v37, %v3102_v2 }
 0x2b4   : > { %v8139_v41 = vpop.permute.xlu1 %3523  ;;  %4047 = vrot.lane.b32.xlu0 %v4007_v18, %s7111_s12  ;;  %v8177_v18 = vld [vmem:[%s8050_s16 + $0x18] sm:$0xff] }
 0x2b6   : > { %4049 = vrot.lane.b32.xlu1 %v4008_v11, %s7111_s12  ;;  %v3522_v57 = vpop.permute.xlu0 %3521  ;;  %v2835_v13 = vpop.f32.mrb[48].mxu0 }
 0x2b7   : > { %v8151_v5 = vadd.f32 %v2835_v13, %v8144_v39  ;;  %v2837_v55 = vpop.f32.mrb[49].mxu0  ;;  %v3296_v13 = vmul.f32 %v7804_v33, %v8174_v31 }
 0x2b8   : > { %v8153_v52 = vpop.permute.xlu1 %4101  ;;  %3248 = vrot.lane.b32.xlu0 %v7841_v51, %s7111_s12  ;;  %v8158_v56 = vadd.f32 %v2837_v55, %v8148_v54  ;;  %v2839_v20 = vpop.f32.mrb[50].mxu0 }
 0x2b9   : > { %9226 = vst [vmem:[#allocation67_spill] sm:$0xff] %v8151_v5  ;;  %v8165_v10 = vadd.f32 %v2839_v20, %v8144_v39  ;;  %v2841_v60 = vpop.f32.mrb[51].mxu0 }
 0x2ba   : > { %9227 = vst [vmem:[#allocation68_spill] sm:$0xff] %v8158_v56  ;;  %3250 = vrot.lane.b32.xlu1 %v7859_v15, %s7111_s12  ;;  %v4100_v14 = vpop.permute.xlu0 %4099  ;;  %v8170_v12 = vadd.f32 %v2841_v60, %v8148_v54 }
 0x2bb   : > { %9228 = vst [vmem:[#allocation69_spill] sm:$0xff] %v8165_v10  ;;  %v3327_v10 = vadd.f32 %v3311_v29, %v3295_v35  ;;  %v3872_v29 = vmul.f32 %v7838_v49, %v3102_v2  ;;  %v3873_v35 = vmul.f32 %v7832_v28, %v8174_v31  ;;  %v9234_v49 = vld [vmem:[#allocation41_spill] sm:$0xff] }
 0x2bc   : > { %9229 = vst [vmem:[#allocation70_spill] sm:$0xff] %v8170_v12  ;;  %v3171_v11 = vpop.permute.xlu1 %3170  ;;  %3826 = vrot.lane.b32.xlu0 %v7846_v4, %s7111_s12 }
 0x2bd   : > { %v3280_v47 = vsel %vm3276_vm0, %v3171_v11, %v3235_v30 }
 0x2be   : > { %v3312_v55 = vmul.f32 %v3280_v47, %v8177_v18  ;;  %3828 = vrot.lane.b32.xlu1 %v7864_v59, %s7111_s12  ;;  %v3747_v20 = vpop.permute.xlu0 %3746  ;;  %v2845_v60 = vpop.f32.mrb[52].mxu0 }
 0x2bf   : > { %v3856_v63 = vsel %vm3276_vm0, %v3747_v20, %v3811_v22  ;;  %v8191_v12 = vadd.f32 %v2845_v60, %v8144_v39  ;;  %v2847_v56 = vpop.f32.mrb[53].mxu0  ;;  %v9233_v60 = vld [vmem:[#allocation42_spill] sm:$0xff] }
 0x2c0   : > { %v3328_v30 = vadd.f32 %v3312_v55, %v3296_v13  ;;  %v3888_v37 = vmul.f32 %v3856_v63, %v8161_v21  ;;  %v3749_v11 = vpop.permute.xlu1 %3748  ;;  %3537 = vrot.lane.b32.xlu0 %v7849_v3, %s7111_s12  ;;  %v8197_v33 = vadd.f32 %v2847_v56, %v8148_v54  ;;  %v2849_v47 = vpop.f32.mrb[54].mxu0 }
 0x2c1   : > { %9230 = vst [vmem:[#allocation71_spill] sm:$0xff] %v8191_v12  ;;  %v3857_v5 = vsel %vm3276_vm0, %v3749_v11, %v3813_v26  ;;  %v8201_v22 = vadd.f32 %v2849_v47, %v8144_v39  ;;  %v2851_v20 = vpop.f32.mrb[55].mxu0 }
 0x2c2   : > { %9231 = vst [vmem:[#allocation72_spill] sm:$0xff] %v8197_v33  ;;  %v6039_v13 = vpack.c.bf16 %v3328_v30, %v3327_v10  ;;  %v3889_v55 = vmul.f32 %v3857_v5, %v8177_v18  ;;  %3539 = vrot.lane.b32.xlu1 %v9233_v60, %s7111_s12  ;;  %v3458_v56 = vpop.permute.xlu0 %3457  ;;  %v3904_v26 = vadd.f32 %v3888_v37, %v3872_v29  ;;  %v9236_v29 = vld [vmem:[#allocation43_spill] sm:$0xff] }
 0x2c3   : > { %9232 = vst [vmem:[#allocation73_spill] sm:$0xff] %v8201_v22  ;;  %v3567_v63 = vsel %vm3276_vm0, %v3458_v56, %v3522_v57  ;;  %v8215_v28 = vadd.f32 %v2851_v20, %v8148_v54  ;;  %v3583_v5 = vmul.f32 %v7871_v8, %v3102_v2  ;;  %v3584_v57 = vmul.f32 %v7853_v61, %v8174_v31  ;;  %v9249_v22 = vld [vmem:[#allocation50_spill] sm:$0xff] }
 0x2c4   : > { %6351 = vst [vmem:[%s8089_s26 + $0x8] sm:$0xff] %v6039_v13   ;;  %v3905_v11 = vadd.f32 %v3889_v55, %v3873_v35  ;;  %v3599_v47 = vmul.f32 %v3567_v63, %v8161_v21  ;;  %v3460_v33 = vpop.permute.xlu1 %3459  ;;  %4115 = vrot.lane.b32.xlu0 %v9234_v49, %s7111_s12  ;;  %v3142_v13 = vsub.f32 0.0, %v7841_v51  ;;  %v3143_v8 = vsub.f32 0.0, %v7859_v15 }
 0x2c5   : > { %9235 = vst [vmem:[#allocation42_spill] sm:$0xff] %v8215_v28  ;;  %v3568_v10 = vsel %vm3276_vm0, %v3460_v33, %v8139_v41  ;;  %v9248_v28 = vld [vmem:[#allocation46_spill] sm:$0xff] }
 0x2c6   : > { %v6119_v30 = vpack.c.bf16 %v3905_v11, %v3904_v26  ;;  %v3600_v37 = vmul.f32 %v3568_v10, %v8177_v18  ;;  %4117 = vrot.lane.b32.xlu1 %v9236_v29, %s7111_s12  ;;  %v4036_v35 = vpop.permute.xlu0 %4035  ;;  %v2855_v55 = vpop.f32.mrb[56].mxu0  ;;  %v3615_v61 = vadd.f32 %v3599_v47, %v3583_v5 }
 0x2c7   : > { %v4145_v20 = vsel %vm3276_vm0, %v4036_v35, %v4100_v14  ;;  %v8229_v56 = vadd.f32 %v2855_v55, %v8144_v39  ;;  %v2857_v41 = vpop.f32.mrb[57].mxu0  ;;  %v4161_v14 = vmul.f32 %v7888_v0, %v3102_v2 }
 0x2c8   : > { %6367 = vst [vmem:[%s8089_s26 + $0x88] sm:$0xff] %v6119_v30   ;;  %v3616_v33 = vadd.f32 %v3600_v37, %v3584_v57  ;;  %v4177_v63 = vmul.f32 %v4145_v20, %v8161_v21  ;;  %v4038_v26 = vpop.permute.xlu1 %4037  ;;  %3184 = vrot.lane.b32.xlu0 %v3142_v13, %s7111_s12  ;;  %v8235_v11 = vadd.f32 %v2857_v41, %v8148_v54  ;;  %v2859_v10 = vpop.f32.mrb[58].mxu0  ;;  %v3720_v37 = vsub.f32 0.0, %v7846_v4 }
 0x2c9   : > { %9237 = vst [vmem:[#allocation41_spill] sm:$0xff] %v8229_v56  ;;  %v4146_v35 = vsel %vm3276_vm0, %v4038_v26, %v8153_v52  ;;  %v8241_v55 = vadd.f32 %v2859_v10, %v8144_v39  ;;  %v2861_v47 = vpop.f32.mrb[59].mxu0  ;;  %v4162_v21 = vmul.f32 %v7882_v42, %v8174_v31  ;;  %v3721_v42 = vsub.f32 0.0, %v7864_v59 }
 0x2ca   : > { %9238 = vst [vmem:[#allocation43_spill] sm:$0xff] %v8235_v11  ;;  %v6079_v5 = vpack.c.bf16 %v3616_v33, %v3615_v61  ;;  %v4178_v57 = vmul.f32 %v4146_v35, %v8177_v18  ;;  %3186 = vrot.lane.b32.xlu1 %v3143_v8, %s7111_s12  ;;  %v3237_v30 = vpop.permute.xlu0 %3236  ;;  %v8249_v0 = vadd.f32 %v2861_v47, %v8148_v54  ;;  %v3431_v20 = vsub.f32 0.0, %v7849_v3 }
 0x2cb   : > { %9239 = vst [vmem:[#allocation74_spill] sm:$0xff] %v8241_v55  ;;  %v4193_v52 = vadd.f32 %v4177_v63, %v4161_v14  ;;  %v3432_v63 = vsub.f32 0.0, %v9233_v60 }
 0x2cc   : > { %9240 = vst [vmem:[#allocation75_spill] sm:$0xff] %v8249_v0  ;;  %6359 = vst [vmem:[%s8089_s26 + $0x48] sm:$0xff] %v6079_v5   ;;  %v4194_v2 = vadd.f32 %v4178_v57, %v4162_v21  ;;  %v3239_v13 = vpop.permute.xlu1 %3238  ;;  %3762 = vrot.lane.b32.xlu0 %v3720_v37, %s7111_s12  ;;  %v4009_v21 = vsub.f32 0.0, %v9234_v49  ;;  %v4010_v37 = vsub.f32 0.0, %v9236_v29 }
 0x2ce   : > { %v6159_v31 = vpack.c.bf16 %v4194_v2, %v4193_v52  ;;  %3764 = vrot.lane.b32.xlu1 %v3721_v42, %s7111_s12  ;;  %v3815_v18 = vpop.permute.xlu0 %3814  ;;  %v2865_v8 = vpop.f32.mrb[60].mxu0  ;;  %v9245_v42 = vld [vmem:[#allocation44_spill] sm:$0xff] }
 0x2cf   : > { %v8257_v41 = vadd.f32 %v2865_v8, %v8144_v39  ;;  %v2867_v61 = vpop.f32.mrb[61].mxu0 }
 0x2d0   : > { %6375 = vst [vmem:[%s8089_s26 + $0xc8] sm:$0xff] %v6159_v31   ;;  %v3817_v33 = vpop.permute.xlu1 %3816  ;;  %3473 = vrot.lane.b32.xlu0 %v3431_v20, %s7111_s12  ;;  %v8263_v26 = vadd.f32 %v2867_v61, %v8148_v54  ;;  %v2869_v10 = vpop.f32.mrb[62].mxu0  ;;  %v3120_v31 = vld [vmem:[%s8050_s16 + $0x20] sm:$0xff]  ;;  %v9246_v20 = vld [vmem:[#allocation48_spill] sm:$0xff] }
 0x2d1   : > { %9241 = vst [vmem:[#allocation76_spill] sm:$0xff] %v8257_v41  ;;  %v8266_v14 = vadd.f32 %v2869_v10, %v8144_v39  ;;  %v2871_v35 = vpop.f32.mrb[63].mxu0  ;;  %v3104_v61 = vld [vmem:[%s7444_s29 + $0x20] sm:$0xff] }
 0x2d2   : > { %9242 = vst [vmem:[#allocation77_spill] sm:$0xff] %v8263_v26  ;;  %3475 = vrot.lane.b32.xlu1 %v3432_v63, %s7111_s12  ;;  %v3526_v47 = vpop.permute.xlu0 %3525  ;;  %v8271_v5 = vadd.f32 %v2871_v35, %v8148_v54  ;;  %v3105_v63 = vld [vmem:[%s7444_s29 + $0x28] sm:$0xff]  ;;  %v9247_v26 = vld [vmem:[#allocation45_spill] sm:$0xff] }
 0x2d3   : > { %9243 = vst [vmem:[#allocation78_spill] sm:$0xff] %v8266_v14  ;;  %v3121_v35 = vld [vmem:[%s8050_s16 + $0x28] sm:$0xff]  ;;  %v3297_v14 = vmul.f32 %v7724_v46, %v3104_v61  ;;  %v3298_v41 = vmul.f32 %v7740_v9, %v3105_v63  ;;  %v3874_v46 = vmul.f32 %v7731_v58, %v3104_v61  ;;  %v3875_v9 = vmul.f32 %v7745_v43, %v3105_v63 }
 0x2d4   : > { %9244 = vst [vmem:[#allocation79_spill] sm:$0xff] %v8271_v5  ;;  %v3528_v57 = vpop.permute.xlu1 %3527  ;;  %4051 = vrot.lane.b32.xlu0 %v4009_v21, %s7111_s12  ;;  %v3585_v58 = vmul.f32 %v7734_v62, %v3104_v61 }
 0x2d6   : > { %4053 = vrot.lane.b32.xlu1 %v4010_v37, %s7111_s12  ;;  %v4104_v52 = vpop.permute.xlu0 %4103 }
 0x2d8   : > { %v4106_v2 = vpop.permute.xlu1 %4105  ;;  %3252 = vrot.lane.b32.xlu0 %v9245_v42, %s7111_s12 }
 0x2da   : > { %3254 = vrot.lane.b32.xlu1 %v9246_v20, %s7111_s12  ;;  %v3173_v8 = vpop.permute.xlu0 %3172 }
 0x2db   : > { %v3281_v10 = vsel %vm3276_vm0, %v3173_v8, %v3237_v30 }
 0x2dc   : > { %v3313_v21 = vmul.f32 %v3281_v10, %v3120_v31  ;;  %v3175_v5 = vpop.permute.xlu1 %3174  ;;  %3830 = vrot.lane.b32.xlu0 %v9247_v26, %s7111_s12 }
 0x2dd   : > { %v3282_v37 = vsel %vm3276_vm0, %v3175_v5, %v3239_v13 }
 0x2de   : > { %v3314_v0 = vmul.f32 %v3282_v37, %v3121_v35  ;;  %3832 = vrot.lane.b32.xlu1 %v7914_v34, %s7111_s12  ;;  %v3751_v11 = vpop.permute.xlu0 %3750  ;;  %v3329_v8 = vadd.f32 %v3313_v21, %v3297_v14  ;;  %v3144_v21 = vsub.f32 0.0, %v9245_v42 }
 0x2df   : > { %v3858_v30 = vsel %vm3276_vm0, %v3751_v11, %v3815_v18 }
 0x2e0   : > { %v3330_v10 = vadd.f32 %v3314_v0, %v3298_v41  ;;  %v3890_v55 = vmul.f32 %v3858_v30, %v3120_v31  ;;  %v3753_v56 = vpop.permute.xlu1 %3752  ;;  %3541 = vrot.lane.b32.xlu0 %v9248_v28, %s7111_s12 }
 0x2e1   : > { %v3859_v13 = vsel %vm3276_vm0, %v3753_v56, %v3817_v33  ;;  %v9250_v56 = vld [vmem:[#allocation47_spill] sm:$0xff]  ;;  %v3586_v33 = vmul.f32 %v7748_v44, %v3105_v63 }
 0x2e2   : > { %v6044_v5 = vpack.c.bf16 %v3330_v10, %v3329_v8  ;;  %v3891_v37 = vmul.f32 %v3859_v13, %v3121_v35  ;;  %3543 = vrot.lane.b32.xlu1 %v9249_v22, %s7111_s12  ;;  %v3462_v12 = vpop.permute.xlu0 %3461  ;;  %v3906_v0 = vadd.f32 %v3890_v55, %v3874_v46  ;;  %v3145_v10 = vsub.f32 0.0, %v9246_v20  ;;  %v9252_v44 = vld [vmem:[#allocation31_spill] sm:$0xff] }
 0x2e3   : > { %v3569_v11 = vsel %vm3276_vm0, %v3462_v12, %v3526_v47  ;;  %v9251_v12 = vld [vmem:[#allocation51_spill] sm:$0xff] }
 0x2e4   : > { %6352 = vst [vmem:[%s8089_s26 + $0x10] sm:$0xff] %v6044_v5   ;;  %v3907_v18 = vadd.f32 %v3891_v37, %v3875_v9  ;;  %v3601_v41 = vmul.f32 %v3569_v11, %v3120_v31  ;;  %v3464_v14 = vpop.permute.xlu1 %3463  ;;  %4119 = vrot.lane.b32.xlu0 %v9250_v56, %s7111_s12  ;;  %v4163_v9 = vmul.f32 %v9252_v44, %v3104_v61  ;;  %v9253_v37 = vld [vmem:[#allocation32_spill] sm:$0xff]  ;;  %v3106_v44 = vld [vmem:[%s7444_s29 + $0x30] sm:$0xff] }
 0x2e5   : > { %v3570_v43 = vsel %vm3276_vm0, %v3464_v14, %v3528_v57  ;;  %v4164_v11 = vmul.f32 %v9253_v37, %v3105_v63  ;;  %v3123_v37 = vld [vmem:[%s8050_s16 + $0x38] sm:$0xff] }
 0x2e6   : > { %v6124_v30 = vpack.c.bf16 %v3907_v18, %v3906_v0  ;;  %v3602_v8 = vmul.f32 %v3570_v43, %v3121_v35  ;;  %4121 = vrot.lane.b32.xlu1 %v9251_v12, %s7111_s12  ;;  %v4040_v55 = vpop.permute.xlu0 %4039  ;;  %v3617_v13 = vadd.f32 %v3601_v41, %v3585_v58  ;;  %v3722_v0 = vsub.f32 0.0, %v9247_v26 }
 0x2e7   : > { %v4147_v47 = vsel %vm3276_vm0, %v4040_v55, %v4104_v52  ;;  %v3723_v41 = vsub.f32 0.0, %v7914_v34  ;;  %v9263_v34 = vld [vmem:[#allocation58_spill] sm:$0xff] }
 0x2e8   : > { %6368 = vst [vmem:[%s8089_s26 + $0x90] sm:$0xff] %v6124_v30   ;;  %v3618_v62 = vadd.f32 %v3602_v8, %v3586_v33  ;;  %v4179_v46 = vmul.f32 %v4147_v47, %v3120_v31  ;;  %v4042_v57 = vpop.permute.xlu1 %4041  ;;  %3188 = vrot.lane.b32.xlu0 %v3144_v21, %s7111_s12  ;;  %v4011_v21 = vsub.f32 0.0, %v9250_v56  ;;  %v4012_v8 = vsub.f32 0.0, %v9251_v12  ;;  %v9260_v56 = vld [vmem:[#allocation54_spill] sm:$0xff] }
 0x2e9   : > { %v4148_v5 = vsel %vm3276_vm0, %v4042_v57, %v4106_v2  ;;  %v3433_v2 = vsub.f32 0.0, %v9248_v28 }
 0x2ea   : > { %v6084_v52 = vpack.c.bf16 %v3618_v62, %v3617_v13  ;;  %v4180_v18 = vmul.f32 %v4148_v5, %v3121_v35  ;;  %3190 = vrot.lane.b32.xlu1 %v3145_v10, %s7111_s12  ;;  %v3241_v14 = vpop.permute.xlu0 %3240  ;;  %v4195_v31 = vadd.f32 %v4179_v46, %v4163_v9  ;;  %v3434_v35 = vsub.f32 0.0, %v9249_v22  ;;  %v9254_v13 = vld [vmem:[#allocation52_spill] sm:$0xff]  ;;  %v3122_v62 = vld [vmem:[%s8050_s16 + $0x30] sm:$0xff]  ;;  %v3107_v9 = vld [vmem:[%s7444_s29 + $0x38] sm:$0xff] }
 0x2eb   : > { %v9255_v46 = vld [vmem:[#allocation56_spill] sm:$0xff] }
 0x2ec   : > { %6360 = vst [vmem:[%s8089_s26 + $0x50] sm:$0xff] %v6084_v52   ;;  %v4196_v58 = vadd.f32 %v4180_v18, %v4164_v11  ;;  %v3243_v43 = vpop.permute.xlu1 %3242  ;;  %3766 = vrot.lane.b32.xlu0 %v3722_v0, %s7111_s12  ;;  %v9256_v52 = vld [vmem:[#allocation53_spill] sm:$0xff] }
 0x2ee   : > { %v6164_v61 = vpack.c.bf16 %v4196_v58, %v4195_v31  ;;  %3768 = vrot.lane.b32.xlu1 %v3723_v41, %s7111_s12  ;;  %v3819_v63 = vpop.permute.xlu0 %3818  ;;  %v9257_v41 = vld [vmem:[#allocation33_spill] sm:$0xff] }
 0x2ef   : > { %v3299_v31 = vmul.f32 %v9257_v41, %v3106_v44  ;;  %v9258_v58 = vld [vmem:[#allocation37_spill] sm:$0xff] }
 0x2f0   : > { %6376 = vst [vmem:[%s8089_s26 + $0xd0] sm:$0xff] %v6164_v61   ;;  %v3821_v33 = vpop.permute.xlu1 %3820  ;;  %3477 = vrot.lane.b32.xlu0 %v3433_v2, %s7111_s12  ;;  %v3300_v2 = vmul.f32 %v9258_v58, %v3107_v9  ;;  %v9262_v58 = vld [vmem:[#allocation38_spill] sm:$0xff] }
 0x2f2   : > { %3479 = vrot.lane.b32.xlu1 %v3434_v35, %s7111_s12  ;;  %v3530_v30 = vpop.permute.xlu0 %3529  ;;  %v9259_v35 = vld [vmem:[#allocation57_spill] sm:$0xff] }
 0x2f4   : > { %v3532_v55 = vpop.permute.xlu1 %3531  ;;  %4055 = vrot.lane.b32.xlu0 %v4011_v21, %s7111_s12 }
 0x2f6   : > { %4057 = vrot.lane.b32.xlu1 %v4012_v8, %s7111_s12  ;;  %v4108_v47 = vpop.permute.xlu0 %4107 }
 0x2f8   : > { %v4110_v10 = vpop.permute.xlu1 %4109  ;;  %3256 = vrot.lane.b32.xlu0 %v9254_v13, %s7111_s12 }
 0x2fa   : > { %3258 = vrot.lane.b32.xlu1 %v9255_v46, %s7111_s12  ;;  %v3177_v57 = vpop.permute.xlu0 %3176 }
 0x2fb   : > { %v3283_v5 = vsel %vm3276_vm0, %v3177_v57, %v3241_v14 }
 0x2fc   : > { %v3315_v11 = vmul.f32 %v3283_v5, %v3122_v62  ;;  %v3179_v0 = vpop.permute.xlu1 %3178  ;;  %3834 = vrot.lane.b32.xlu0 %v9256_v52, %s7111_s12 }
 0x2fd   : > { %v3284_v18 = vsel %vm3276_vm0, %v3179_v0, %v3243_v43  ;;  %v9261_v0 = vld [vmem:[#allocation34_spill] sm:$0xff] }
 0x2fe   : > { %v3316_v61 = vmul.f32 %v3284_v18, %v3123_v37  ;;  %3836 = vrot.lane.b32.xlu1 %v9259_v35, %s7111_s12  ;;  %v3755_v21 = vpop.permute.xlu0 %3754  ;;  %v3331_v8 = vadd.f32 %v3315_v11, %v3299_v31  ;;  %v3876_v41 = vmul.f32 %v9261_v0, %v3106_v44  ;;  %v3877_v18 = vmul.f32 %v9262_v58, %v3107_v9 }
 0x2ff   : > { %v3860_v14 = vsel %vm3276_vm0, %v3755_v21, %v3819_v63 }
 0x300   : > { %v3332_v57 = vadd.f32 %v3316_v61, %v3300_v2  ;;  %v3892_v5 = vmul.f32 %v3860_v14, %v3122_v62  ;;  %v3757_v12 = vpop.permute.xlu1 %3756  ;;  %3545 = vrot.lane.b32.xlu0 %v9260_v56, %s7111_s12 }
 0x301   : > { %v3861_v43 = vsel %vm3276_vm0, %v3757_v12, %v3821_v33  ;;  %v9264_v12 = vld [vmem:[#allocation55_spill] sm:$0xff] }
 0x302   : > { %v6049_v22 = vpack.c.bf16 %v3332_v57, %v3331_v8  ;;  %v3893_v28 = vmul.f32 %v3861_v43, %v3123_v37  ;;  %3547 = vrot.lane.b32.xlu1 %v9263_v34, %s7111_s12  ;;  %v3466_v26 = vpop.permute.xlu0 %3465  ;;  %v3908_v11 = vadd.f32 %v3892_v5, %v3876_v41  ;;  %v9265_v33 = vld [vmem:[#allocation35_spill] sm:$0xff]  ;;  %v3146_v43 = vsub.f32 0.0, %v9254_v13 }
 0x303   : > { %v3571_v63 = vsel %vm3276_vm0, %v3466_v26, %v3530_v30  ;;  %v3587_v21 = vmul.f32 %v9265_v33, %v3106_v44  ;;  %v9266_v8 = vld [vmem:[#allocation39_spill] sm:$0xff]  ;;  %v3147_v30 = vsub.f32 0.0, %v9255_v46 }
 0x304   : > { %6353 = vst [vmem:[%s8089_s26 + $0x18] sm:$0xff] %v6049_v22   ;;  %v3909_v31 = vadd.f32 %v3893_v28, %v3877_v18  ;;  %v3603_v2 = vmul.f32 %v3571_v63, %v3122_v62  ;;  %v3468_v61 = vpop.permute.xlu1 %3467  ;;  %4123 = vrot.lane.b32.xlu0 %v9264_v12, %s7111_s12  ;;  %v3588_v57 = vmul.f32 %v9266_v8, %v3107_v9  ;;  %v9267_v22 = vld [vmem:[#allocation59_spill] sm:$0xff]  ;;  %v9268_v63 = vld [vmem:[#allocation36_spill] sm:$0xff] }
 0x305   : > { %v3572_v14 = vsel %vm3276_vm0, %v3468_v61, %v3532_v55  ;;  %v4165_v61 = vmul.f32 %v9268_v63, %v3106_v44 }
 0x306   : > { %v6129_v0 = vpack.c.bf16 %v3909_v31, %v3908_v11  ;;  %v3604_v58 = vmul.f32 %v3572_v14, %v3123_v37  ;;  %4125 = vrot.lane.b32.xlu1 %v9267_v22, %s7111_s12  ;;  %v4044_v26 = vpop.permute.xlu0 %4043  ;;  %v3619_v5 = vadd.f32 %v3603_v2, %v3587_v21  ;;  %v9269_v31 = vld [vmem:[#allocation40_spill] sm:$0xff]  ;;  %v3724_v14 = vsub.f32 0.0, %v9256_v52 }
 0x307   : > { %v4149_v28 = vsel %vm3276_vm0, %v4044_v26, %v4108_v47  ;;  %v4166_v33 = vmul.f32 %v9269_v31, %v3107_v9  ;;  %v3725_v2 = vsub.f32 0.0, %v9259_v35  ;;  %v746_v26 = vsub.s32 7, %v7642_v45 }
 0x308   : > { %6369 = vst [vmem:[%s8089_s26 + $0x98] sm:$0xff] %v6129_v0   ;;  %v3620_v41 = vadd.f32 %v3604_v58, %v3588_v57  ;;  %v4181_v18 = vmul.f32 %v4149_v28, %v3122_v62  ;;  %v4046_v55 = vpop.permute.xlu1 %4045  ;;  %3192 = vrot.lane.b32.xlu0 %v3146_v43, %s7111_s12  ;;  %v3436_v43 = vsub.f32 0.0, %v9263_v34  ;;  %v742_v58 = vsub.s32 6, %v7642_v45 }
 0x309   : > { %v4150_v11 = vsel %vm3276_vm0, %v4046_v55, %v4110_v10  ;;  %v3435_v10 = vsub.f32 0.0, %v9260_v56  ;;  %v4013_v28 = vsub.f32 0.0, %v9264_v12  ;;  %v4014_v55 = vsub.f32 0.0, %v9267_v22 }
 0x30a   : > { %v6089_v47 = vpack.c.bf16 %v3620_v41, %v3619_v5  ;;  %v4182_v8 = vmul.f32 %v4150_v11, %v3123_v37  ;;  %3194 = vrot.lane.b32.xlu1 %v3147_v30, %s7111_s12  ;;  %v3245_v0 = vpop.permute.xlu0 %3244  ;;  %v4197_v62 = vadd.f32 %v4181_v18, %v4165_v61  ;;  %v6881_v5 = vld [vmem:[#allocation7] sm:$0xff]  ;;  %v9270_v61 = vld [vmem:[#allocation60_spill] sm:$0xff] }
 0x30b   : > { %v8391_v41 = vrot.slane %v6881_v5, %v742_v58  ;;  %v8393_v18 = vrot.slane %v6881_v5, %v746_v26  ;;  %v8401_v11 = vadd.f32 %v9270_v61, %v8144_v39  ;;  %v8422_v26 = vld [vmem:[%s7444_s29 + $0x40] sm:$0xff]  ;;  %v8431_v61 = vld [vmem:[%s7444_s29 + $0x48] sm:$0xff] }
 0x30c   : > { %6361 = vst [vmem:[%s8089_s26 + $0x58] sm:$0xff] %v6089_v47   ;;  %v4198_v21 = vadd.f32 %v4182_v8, %v4166_v33  ;;  %v3247_v57 = vpop.permute.xlu1 %3246  ;;  %3770 = vrot.lane.b32.xlu0 %v3724_v14, %s7111_s12  ;;  %v3021_v45 = vpop.f32.mrb[32].mxu1 }
 0x30d   : > { %9271 = vst [vmem:[#allocation44_spill] sm:$0xff] %v8401_v11  ;;  %v6508_v33 = vadd.f32 %v3021_v45, %v8391_v41  ;;  %v3023_v14 = vpop.f32.mrb[33].mxu1 }
 0x30e   : > { %v6169_v44 = vpack.c.bf16 %v4198_v21, %v4197_v62  ;;  %3772 = vrot.lane.b32.xlu1 %v3725_v2, %s7111_s12  ;;  %v3823_v9 = vpop.permute.xlu0 %3822  ;;  %v6509_v47 = vadd.f32 %v3023_v14, %v8393_v18  ;;  %v3025_v8 = vpop.f32.mrb[34].mxu1  ;;  %v9272_v2 = vld [vmem:[#allocation62_spill] sm:$0xff] }
 0x30f   : > { %v8410_v62 = vadd.f32 %v9272_v2, %v8144_v39 }
 0x310   : > { %6377 = vst [vmem:[%s8089_s26 + $0xd8] sm:$0xff] %v6169_v44   ;;  %v8382_v37 = vpop.permute.xlu1 %3824  ;;  %3481 = vrot.lane.b32.xlu0 %v3435_v10, %s7111_s12  ;;  %v6510_v10 = vadd.f32 %v3025_v8, %v8391_v41  ;;  %v3027_v44 = vpop.f32.mrb[35].mxu1  ;;  %v8435_v8 = vld [vmem:[%s8050_s16 + $0x48] sm:$0xff] }
 0x311   : > { %v6511_v58 = vadd.f32 %v3027_v44, %v8393_v18  ;;  %v9274_v44 = vld [vmem:[#allocation63_spill] sm:$0xff] }
 0x312   : > { %3483 = vrot.lane.b32.xlu1 %v3436_v43, %s7111_s12  ;;  %v8389_v30 = vpop.permute.xlu0 %3533  ;;  %v8418_v43 = vld [vmem:[%s8050_s16 + $0x40] sm:$0xff]  ;;  %v6234_v45 = vpack.c.bf16 %v6510_v10, %v6508_v33  ;;  %v8439_v22 = vadd.f32 %v9274_v44, %v8148_v54  ;;  %v3302_v10 = vmul.f32 %v7816_v7, %v8431_v61 }
 0x313   : > { %v6314_v2 = vpack.c.bf16 %v6511_v58, %v6509_v47  ;;  %v4288_v58 = vsub.f32 0.0, %v8401_v11 }
 0x314   : > { %v8396_v63 = vpop.permute.xlu1 %3535  ;;  %4059 = vrot.lane.b32.xlu0 %v4013_v28, %s7111_s12  ;;  %v9273_v28 = vld [vmem:[#allocation61_spill] sm:$0xff]  ;;  %6235 = vst [vmem:[%s8445_s23] sm:$0xff] %v6234_v45  }
 0x315   : > { %v8426_v5 = vadd.f32 %v9273_v28, %v8148_v54  ;;  %6404 = vst [vmem:[%s8445_s23 + $0x40] sm:$0xff] %v6314_v2  }
 0x316   : > { %4061 = vrot.lane.b32.xlu1 %v4014_v55, %s7111_s12  ;;  %v8404_v31 = vpop.permute.xlu0 %4111 }
 0x318   : > { %v8412_v21 = vpop.permute.xlu1 %4113  ;;  %4384 = vrot.lane.b32.xlu0 %v8401_v11, %s7111_s12 }
 0x31a   : > { %4386 = vrot.lane.b32.xlu1 %v8410_v62, %s7111_s12  ;;  %v3181_v55 = vpop.permute.xlu0 %3180 }
 0x31b   : > { %v3285_v14 = vsel %vm3276_vm0, %v3181_v55, %v3245_v0  ;;  %v3301_v0 = vmul.f32 %v7797_v38, %v8422_v26  ;;  %v4289_v38 = vsub.f32 0.0, %v8410_v62 }
 0x31c   : > { %v3317_v12 = vmul.f32 %v3285_v14, %v8418_v43  ;;  %v3183_v28 = vpop.permute.xlu1 %3182  ;;  %4752 = vrot.lane.b32.xlu0 %v8426_v5, %s7111_s12 }
 0x31d   : > { %v3286_v33 = vsel %vm3276_vm0, %v3183_v28, %v3247_v57  ;;  %v3031_v47 = vpop.f32.mrb[36].mxu1 }
 0x31e   : > { %v3318_v55 = vmul.f32 %v3286_v33, %v8435_v8  ;;  %4754 = vrot.lane.b32.xlu1 %v8439_v22, %s7111_s12  ;;  %v3759_v14 = vpop.permute.xlu0 %3758  ;;  %v6512_v45 = vadd.f32 %v3031_v47, %v8391_v41  ;;  %v3033_v44 = vpop.f32.mrb[37].mxu1  ;;  %v3333_v34 = vadd.f32 %v3317_v12, %v3301_v0  ;;  %v3878_v47 = vmul.f32 %v7807_v1, %v8422_v26 }
 0x31f   : > { %v3862_v57 = vsel %vm3276_vm0, %v3759_v14, %v3823_v9  ;;  %v6513_v2 = vadd.f32 %v3033_v44, %v8393_v18  ;;  %v3035_v28 = vpop.f32.mrb[38].mxu1  ;;  %v3879_v9 = vmul.f32 %v7820_v32, %v8431_v61  ;;  %v4656_v0 = vsub.f32 0.0, %v8426_v5 }
 0x320   : > { %v3334_v7 = vadd.f32 %v3318_v55, %v3302_v10  ;;  %v3894_v11 = vmul.f32 %v3862_v57, %v8418_v43  ;;  %v3761_v56 = vpop.permute.xlu1 %3760  ;;  %4320 = vrot.lane.b32.xlu0 %v4288_v58, %s7111_s12  ;;  %v6514_v33 = vadd.f32 %v3035_v28, %v8391_v41  ;;  %v3037_v35 = vpop.f32.mrb[39].mxu1  ;;  %v4657_v57 = vsub.f32 0.0, %v8439_v22 }
 0x321   : > { %v3863_v14 = vsel %vm3276_vm0, %v3761_v56, %v8382_v37  ;;  %v6515_v12 = vadd.f32 %v3037_v35, %v8393_v18 }
 0x322   : > { %v6054_v10 = vpack.c.bf16 %v3334_v7, %v3333_v34  ;;  %v3895_v58 = vmul.f32 %v3863_v14, %v8435_v8  ;;  %4322 = vrot.lane.b32.xlu1 %v4289_v38, %s7111_s12  ;;  %v3470_v55 = vpop.permute.xlu0 %3469  ;;  %v6239_v44 = vpack.c.bf16 %v6514_v33, %v6512_v45  ;;  %v3910_v56 = vadd.f32 %v3894_v11, %v3878_v47  ;;  %v9275_v11 = vld [vmem:[#allocation64_spill] sm:$0xff] }
 0x323   : > { %v3573_v1 = vsel %vm3276_vm0, %v3470_v55, %v8389_v30  ;;  %v6319_v32 = vpack.c.bf16 %v6515_v12, %v6513_v2  ;;  %v3589_v34 = vmul.f32 %v7810_v6, %v8422_v26  ;;  %v3590_v45 = vmul.f32 %v7823_v36, %v8431_v61  ;;  %v9276_v36 = vld [vmem:[#allocation66_spill] sm:$0xff] }
 0x324   : > { %6354 = vst [vmem:[%s8089_s26 + $0x20] sm:$0xff] %v6054_v10   ;;  %v3911_v35 = vadd.f32 %v3895_v58, %v3879_v9  ;;  %v3605_v37 = vmul.f32 %v3573_v1, %v8418_v43  ;;  %v3472_v28 = vpop.permute.xlu1 %3471  ;;  %4688 = vrot.lane.b32.xlu0 %v4656_v0, %s7111_s12  ;;  %6389 = vst [vmem:[%s8445_s23 + $0x8] sm:$0xff] %v6239_v44   ;;  %v8491_v2 = vadd.f32 %v9275_v11, %v8144_v39 }
 0x325   : > { %v3574_v30 = vsel %vm3276_vm0, %v3472_v28, %v8396_v63  ;;  %6405 = vst [vmem:[%s8445_s23 + $0x48] sm:$0xff] %v6319_v32   ;;  %v3041_v38 = vpop.f32.mrb[40].mxu1  ;;  %v8498_v14 = vadd.f32 %v9276_v36, %v8144_v39 }
 0x326   : > { %v6134_v7 = vpack.c.bf16 %v3911_v35, %v3910_v56  ;;  %v3606_v33 = vmul.f32 %v3574_v30, %v8435_v8  ;;  %4690 = vrot.lane.b32.xlu1 %v4657_v57, %s7111_s12  ;;  %v4048_v47 = vpop.permute.xlu0 %4047  ;;  %v6516_v6 = vadd.f32 %v3041_v38, %v8391_v41  ;;  %v3043_v9 = vpop.f32.mrb[41].mxu1  ;;  %v3621_v10 = vadd.f32 %v3605_v37, %v3589_v34  ;;  %v9277_v35 = vld [vmem:[#allocation65_spill] sm:$0xff] }
 0x327   : > { %v4151_v63 = vsel %vm3276_vm0, %v4048_v47, %v8404_v31  ;;  %v6517_v12 = vadd.f32 %v3043_v9, %v8393_v18  ;;  %v3045_v0 = vpop.f32.mrb[42].mxu1  ;;  %v4167_v57 = vmul.f32 %v7813_v23, %v8422_v26  ;;  %v4168_v31 = vmul.f32 %v7826_v40, %v8431_v61 }
 0x328   : > { %6370 = vst [vmem:[%s8089_s26 + $0xa0] sm:$0xff] %v6134_v7   ;;  %v3622_v58 = vadd.f32 %v3606_v33, %v3590_v45  ;;  %v4183_v55 = vmul.f32 %v4151_v63, %v8418_v43  ;;  %v4050_v44 = vpop.permute.xlu1 %4049  ;;  %4388 = vrot.lane.b32.xlu0 %v8491_v2, %s7111_s12  ;;  %v6518_v1 = vadd.f32 %v3045_v0, %v8391_v41  ;;  %v3047_v32 = vpop.f32.mrb[43].mxu1  ;;  %v4290_v38 = vsub.f32 0.0, %v8491_v2 }
 0x329   : > { %v4152_v56 = vsel %vm3276_vm0, %v4050_v44, %v8412_v21  ;;  %v6519_v43 = vadd.f32 %v3047_v32, %v8393_v18  ;;  %v8517_v37 = vadd.f32 %v9277_v35, %v8148_v54  ;;  %v8524_v61 = vadd.f32 %v8076_v50, %v8148_v54 }
 0x32a   : > { %v6094_v28 = vpack.c.bf16 %v3622_v58, %v3621_v10  ;;  %v4184_v34 = vmul.f32 %v4152_v56, %v8435_v8  ;;  %4390 = vrot.lane.b32.xlu1 %v8498_v14, %s7111_s12  ;;  %v3249_v23 = vpop.permute.xlu0 %3248  ;;  %v6244_v26 = vpack.c.bf16 %v6518_v1, %v6516_v6  ;;  %v4199_v21 = vadd.f32 %v4183_v55, %v4167_v57 }
 0x32b   : > { %v6324_v40 = vpack.c.bf16 %v6519_v43, %v6517_v12  ;;  %v4291_v9 = vsub.f32 0.0, %v8498_v14  ;;  %v4658_v10 = vsub.f32 0.0, %v8517_v37  ;;  %v4659_v1 = vsub.f32 0.0, %v8524_v61 }
 0x32c   : > { %6362 = vst [vmem:[%s8089_s26 + $0x60] sm:$0xff] %v6094_v28   ;;  %v4200_v45 = vadd.f32 %v4184_v34, %v4168_v31  ;;  %v3251_v30 = vpop.permute.xlu1 %3250  ;;  %4756 = vrot.lane.b32.xlu0 %v8517_v37, %s7111_s12  ;;  %6390 = vst [vmem:[%s8445_s23 + $0x10] sm:$0xff] %v6244_v26   ;;  %v8557_v31 = vadd.f32 %v8096_v27, %v8144_v39  ;;  %v8566_v26 = vadd.f32 %v8107_v25, %v8144_v39 }
 0x32d   : > { %6406 = vst [vmem:[%s8445_s23 + $0x50] sm:$0xff] %v6324_v40   ;;  %v3051_v8 = vpop.f32.mrb[44].mxu1  ;;  %v8582_v25 = vadd.f32 %v8102_v16, %v8148_v54 }
 0x32e   : > { %v6174_v11 = vpack.c.bf16 %v4200_v45, %v4199_v21  ;;  %4758 = vrot.lane.b32.xlu1 %v8524_v61, %s7111_s12  ;;  %v8534_v7 = vpop.permute.xlu0 %3826  ;;  %v6520_v50 = vadd.f32 %v3051_v8, %v8391_v41  ;;  %v3053_v33 = vpop.f32.mrb[45].mxu1  ;;  %v8574_v45 = vld [vmem:[%s8050_s16 + $0x50] sm:$0xff] }
 0x32f   : > { %v6521_v47 = vadd.f32 %v3053_v33, %v8393_v18  ;;  %v3055_v6 = vpop.f32.mrb[46].mxu1  ;;  %v8587_v33 = vld [vmem:[%s7444_s29 + $0x58] sm:$0xff] }
 0x330   : > { %6378 = vst [vmem:[%s8089_s26 + $0xe0] sm:$0xff] %v6174_v11   ;;  %v8540_v36 = vpop.permute.xlu1 %3828  ;;  %4324 = vrot.lane.b32.xlu0 %v4290_v38, %s7111_s12  ;;  %v6522_v63 = vadd.f32 %v3055_v6, %v8391_v41  ;;  %v3057_v12 = vpop.f32.mrb[47].mxu1  ;;  %v8578_v38 = vld [vmem:[%s7444_s29 + $0x50] sm:$0xff]  ;;  %v8591_v6 = vld [vmem:[%s8050_s16 + $0x58] sm:$0xff] }
 0x331   : > { %v6523_v0 = vadd.f32 %v3057_v12, %v8393_v18 }
 0x332   : > { %4326 = vrot.lane.b32.xlu1 %v4291_v9, %s7111_s12  ;;  %v8547_v58 = vpop.permute.xlu0 %3537  ;;  %v6249_v55 = vpack.c.bf16 %v6522_v63, %v6520_v50  ;;  %v8595_v63 = vadd.f32 %v8109_v17, %v8148_v54  ;;  %v4292_v17 = vsub.f32 0.0, %v8557_v31 }
 0x333   : > { %v6329_v44 = vpack.c.bf16 %v6523_v0, %v6521_v47  ;;  %v3303_v0 = vmul.f32 %v7841_v51, %v8578_v38  ;;  %v4293_v51 = vsub.f32 0.0, %v8566_v26 }
 0x334   : > { %v8550_v32 = vpop.permute.xlu1 %3539  ;;  %4692 = vrot.lane.b32.xlu0 %v4658_v10, %s7111_s12  ;;  %6391 = vst [vmem:[%s8445_s23 + $0x18] sm:$0xff] %v6249_v55   ;;  %v3304_v55 = vmul.f32 %v7859_v15, %v8587_v33 }
 0x335   : > { %6407 = vst [vmem:[%s8445_s23 + $0x58] sm:$0xff] %v6329_v44   ;;  %v3061_v57 = vpop.f32.mrb[48].mxu1 }
 0x336   : > { %4694 = vrot.lane.b32.xlu1 %v4659_v1, %s7111_s12  ;;  %v8560_v56 = vpop.permute.xlu0 %4115  ;;  %v6524_v43 = vadd.f32 %v3061_v57, %v8391_v41  ;;  %v3063_v35 = vpop.f32.mrb[49].mxu1 }
 0x337   : > { %v6525_v28 = vadd.f32 %v3063_v35, %v8393_v18  ;;  %v3065_v34 = vpop.f32.mrb[50].mxu1 }
 0x338   : > { %v8568_v40 = vpop.permute.xlu1 %4117  ;;  %4392 = vrot.lane.b32.xlu0 %v8557_v31, %s7111_s12  ;;  %v6526_v27 = vadd.f32 %v3065_v34, %v8391_v41  ;;  %v3067_v21 = vpop.f32.mrb[51].mxu1 }
 0x339   : > { %v6527_v8 = vadd.f32 %v3067_v21, %v8393_v18 }
 0x33a   : > { %4394 = vrot.lane.b32.xlu1 %v8566_v26, %s7111_s12  ;;  %v3185_v11 = vpop.permute.xlu0 %3184  ;;  %v6254_v50 = vpack.c.bf16 %v6526_v27, %v6524_v43 }
 0x33b   : > { %v3287_v47 = vsel %vm3276_vm0, %v3185_v11, %v3249_v23  ;;  %v6334_v9 = vpack.c.bf16 %v6527_v8, %v6525_v28 }
 0x33c   : > { %v3319_v12 = vmul.f32 %v3287_v47, %v8574_v45  ;;  %v3187_v16 = vpop.permute.xlu1 %3186  ;;  %4760 = vrot.lane.b32.xlu0 %v8582_v25, %s7111_s12  ;;  %6392 = vst [vmem:[%s8445_s23 + $0x20] sm:$0xff] %v6254_v50   ;;  %v3880_v50 = vmul.f32 %v7846_v4, %v8578_v38 }
 0x33d   : > { %v3288_v10 = vsel %vm3276_vm0, %v3187_v16, %v3251_v30  ;;  %6408 = vst [vmem:[%s8445_s23 + $0x60] sm:$0xff] %v6334_v9   ;;  %v3071_v23 = vpop.f32.mrb[52].mxu1 }
 0x33e   : > { %v3320_v44 = vmul.f32 %v3288_v10, %v8591_v6  ;;  %4762 = vrot.lane.b32.xlu1 %v8595_v63, %s7111_s12  ;;  %v3763_v1 = vpop.permute.xlu0 %3762  ;;  %v6528_v57 = vadd.f32 %v3071_v23, %v8391_v41  ;;  %v3073_v43 = vpop.f32.mrb[53].mxu1  ;;  %v3335_v15 = vadd.f32 %v3319_v12, %v3303_v0  ;;  %v4660_v12 = vsub.f32 0.0, %v8582_v25 }
 0x33f   : > { %v3864_v30 = vsel %vm3276_vm0, %v3763_v1, %v8534_v7  ;;  %v6529_v35 = vadd.f32 %v3073_v43, %v8393_v18  ;;  %v3075_v28 = vpop.f32.mrb[54].mxu1  ;;  %v3881_v7 = vmul.f32 %v7864_v59, %v8587_v33  ;;  %v3591_v43 = vmul.f32 %v7849_v3, %v8578_v38 }
 0x340   : > { %v3336_v34 = vadd.f32 %v3320_v44, %v3304_v55  ;;  %v3896_v27 = vmul.f32 %v3864_v30, %v8574_v45  ;;  %v3765_v21 = vpop.permute.xlu1 %3764  ;;  %4328 = vrot.lane.b32.xlu0 %v4292_v17, %s7111_s12  ;;  %v6530_v8 = vadd.f32 %v3075_v28, %v8391_v41  ;;  %v3077_v11 = vpop.f32.mrb[55].mxu1  ;;  %v4661_v55 = vsub.f32 0.0, %v8595_v63 }
 0x341   : > { %v3865_v47 = vsel %vm3276_vm0, %v3765_v21, %v8540_v36  ;;  %v6531_v9 = vadd.f32 %v3077_v11, %v8393_v18  ;;  %v8645_v30 = vadd.f32 %v8124_v53, %v8144_v39 }
 0x342   : > { %v6059_v16 = vpack.c.bf16 %v3336_v34, %v3335_v15  ;;  %v3897_v0 = vmul.f32 %v3865_v47, %v8591_v6  ;;  %4330 = vrot.lane.b32.xlu1 %v4293_v51, %s7111_s12  ;;  %v3474_v10 = vpop.permute.xlu0 %3473  ;;  %v6259_v23 = vpack.c.bf16 %v6530_v8, %v6528_v57  ;;  %v3912_v36 = vadd.f32 %v3896_v27, %v3880_v50 }
 0x343   : > { %v3575_v4 = vsel %vm3276_vm0, %v3474_v10, %v8547_v58  ;;  %v6339_v59 = vpack.c.bf16 %v6531_v9, %v6529_v35  ;;  %v3592_v57 = vmul.f32 %v9233_v60, %v8587_v33  ;;  %v8652_v60 = vadd.f32 %v8130_v19, %v8144_v39 }
 0x344   : > { %6355 = vst [vmem:[%s8089_s26 + $0x28] sm:$0xff] %v6059_v16   ;;  %v3913_v17 = vadd.f32 %v3897_v0, %v3881_v7  ;;  %v3607_v44 = vmul.f32 %v3575_v4, %v8574_v45  ;;  %v3476_v1 = vpop.permute.xlu1 %3475  ;;  %4696 = vrot.lane.b32.xlu0 %v4660_v12, %s7111_s12  ;;  %6393 = vst [vmem:[%s8445_s23 + $0x28] sm:$0xff] %v6259_v23   ;;  %v4169_v39 = vmul.f32 %v9234_v49, %v8578_v38 }
 0x345   : > { %v3576_v58 = vsel %vm3276_vm0, %v3476_v1, %v8550_v32  ;;  %6409 = vst [vmem:[%s8445_s23 + $0x68] sm:$0xff] %v6339_v59   ;;  %v3081_v51 = vpop.f32.mrb[56].mxu1  ;;  %v8671_v12 = vadd.f32 %v8126_v48, %v8148_v54  ;;  %v8678_v23 = vadd.f32 %v8133_v24, %v8148_v54 }
 0x346   : > { %v6139_v35 = vpack.c.bf16 %v3913_v17, %v3912_v36  ;;  %v3608_v28 = vmul.f32 %v3576_v58, %v8591_v6  ;;  %4698 = vrot.lane.b32.xlu1 %v4661_v55, %s7111_s12  ;;  %v4052_v15 = vpop.permute.xlu0 %4051  ;;  %v6532_v3 = vadd.f32 %v3081_v51, %v8391_v41  ;;  %v3083_v34 = vpop.f32.mrb[57].mxu1  ;;  %v3623_v21 = vadd.f32 %v3607_v44, %v3591_v43 }
 0x347   : > { %v4153_v32 = vsel %vm3276_vm0, %v4052_v15, %v8560_v56  ;;  %v6533_v27 = vadd.f32 %v3083_v34, %v8393_v18  ;;  %v3085_v53 = vpop.f32.mrb[58].mxu1  ;;  %v4170_v56 = vmul.f32 %v9236_v29, %v8587_v33  ;;  %v4294_v55 = vsub.f32 0.0, %v8645_v30 }
 0x348   : > { %6371 = vst [vmem:[%s8089_s26 + $0xa8] sm:$0xff] %v6139_v35   ;;  %v3624_v8 = vadd.f32 %v3608_v28, %v3592_v57  ;;  %v4185_v11 = vmul.f32 %v4153_v32, %v8574_v45  ;;  %v4054_v50 = vpop.permute.xlu1 %4053  ;;  %4396 = vrot.lane.b32.xlu0 %v8645_v30, %s7111_s12  ;;  %v6534_v7 = vadd.f32 %v3085_v53, %v8391_v41  ;;  %v3087_v19 = vpop.f32.mrb[59].mxu1  ;;  %v4295_v43 = vsub.f32 0.0, %v8652_v60  ;;  %v9278_v53 = vld [vmem:[#allocation67_spill] sm:$0xff] }
 0x349   : > { %v4154_v47 = vsel %vm3276_vm0, %v4054_v50, %v8568_v40  ;;  %v6535_v9 = vadd.f32 %v3087_v19, %v8393_v18  ;;  %v4662_v28 = vsub.f32 0.0, %v8671_v12  ;;  %v4663_v32 = vsub.f32 0.0, %v8678_v23  ;;  %v8710_v50 = vld [vmem:[%s7444_s29 + $0x60] sm:$0xff] }
 0x34a   : > { %v6099_v16 = vpack.c.bf16 %v3624_v8, %v3623_v21  ;;  %v4186_v0 = vmul.f32 %v4154_v47, %v8591_v6  ;;  %4398 = vrot.lane.b32.xlu1 %v8652_v60, %s7111_s12  ;;  %v3253_v49 = vpop.permute.xlu0 %3252  ;;  %v6264_v10 = vpack.c.bf16 %v6534_v7, %v6532_v3  ;;  %v4201_v40 = vadd.f32 %v4185_v11, %v4169_v39  ;;  %v8705_v21 = vld [vmem:[%s8050_s16 + $0x60] sm:$0xff]  ;;  %v9279_v8 = vld [vmem:[#allocation69_spill] sm:$0xff]  ;;  %v8713_v7 = vld [vmem:[%s7444_s29 + $0x68] sm:$0xff] }
 0x34b   : > { %v6344_v29 = vpack.c.bf16 %v6535_v9, %v6533_v27  ;;  %v8717_v39 = vld [vmem:[%s8050_s16 + $0x68] sm:$0xff] }
 0x34c   : > { %6363 = vst [vmem:[%s8089_s26 + $0x68] sm:$0xff] %v6099_v16   ;;  %v4202_v4 = vadd.f32 %v4186_v0, %v4170_v56  ;;  %v3255_v59 = vpop.permute.xlu1 %3254  ;;  %4764 = vrot.lane.b32.xlu0 %v8671_v12, %s7111_s12  ;;  %6394 = vst [vmem:[%s8445_s23 + $0x30] sm:$0xff] %v6264_v10   ;;  %v9280_v9 = vld [vmem:[#allocation68_spill] sm:$0xff]  ;;  %v3305_v0 = vmul.f32 %v9245_v42, %v8710_v50  ;;  %v3306_v10 = vmul.f32 %v9246_v20, %v8713_v7  ;;  %v9282_v20 = vld [vmem:[#allocation45_spill] sm:$0xff] }
 0x34d   : > { %6410 = vst [vmem:[%s8445_s23 + $0x70] sm:$0xff] %v6344_v29   ;;  %v3091_v48 = vpop.f32.mrb[60].mxu1  ;;  %v4296_v29 = vsub.f32 0.0, %v9278_v53 }
 0x34e   : > { %v6179_v36 = vpack.c.bf16 %v4202_v4, %v4201_v40  ;;  %4766 = vrot.lane.b32.xlu1 %v8678_v23, %s7111_s12  ;;  %v3831_v17 = vpop.permute.xlu0 %3830  ;;  %v6536_v24 = vadd.f32 %v3091_v48, %v8391_v41  ;;  %v3093_v54 = vpop.f32.mrb[61].mxu1  ;;  %v9281_v40 = vld [vmem:[#allocation70_spill] sm:$0xff] }
 0x34f   : > { %v6537_v44 = vadd.f32 %v3093_v54, %v8393_v18  ;;  %v3095_v1 = vpop.f32.mrb[62].mxu1  ;;  %v3882_v54 = vmul.f32 %v9282_v20, %v8710_v50  ;;  %v9288_v20 = vld [vmem:[#allocation51_spill] sm:$0xff] }
 0x350   : > { %6379 = vst [vmem:[%s8089_s26 + $0xe8] sm:$0xff] %v6179_v36   ;;  %v3833_v57 = vpop.permute.xlu1 %3832  ;;  %4332 = vrot.lane.b32.xlu0 %v4294_v55, %s7111_s12  ;;  %v6538_v58 = vadd.f32 %v3095_v1, %v8391_v41  ;;  %v3097_v51 = vpop.f32.mrb[63].mxu1  ;;  %v4297_v55 = vsub.f32 0.0, %v9279_v8  ;;  %v9283_v1 = vld [vmem:[#allocation49_spill] sm:$0xff] }
 0x351   : > { %v6539_v35 = vadd.f32 %v3097_v51, %v8393_v18 }
 0x352   : > { %4334 = vrot.lane.b32.xlu1 %v4295_v43, %s7111_s12  ;;  %v3542_v15 = vpop.permute.xlu0 %3541  ;;  %v6269_v3 = vpack.c.bf16 %v6538_v58, %v6536_v24  ;;  %v3883_v43 = vmul.f32 %v9283_v1, %v8713_v7  ;;  %v9289_v1 = vld [vmem:[#allocation73_spill] sm:$0xff] }
 0x353   : > { %v6349_v34 = vpack.c.bf16 %v6539_v35, %v6537_v44 }
 0x354   : > { %v3544_v27 = vpop.permute.xlu1 %3543  ;;  %4700 = vrot.lane.b32.xlu0 %v4662_v28, %s7111_s12  ;;  %6395 = vst [vmem:[%s8445_s23 + $0x38] sm:$0xff] %v6269_v3   ;;  %v4665_v3 = vsub.f32 0.0, %v9281_v40 }
 0x355   : > { %6411 = vst [vmem:[%s8445_s23 + $0x78] sm:$0xff] %v6349_v34  }
 0x356   : > { %4702 = vrot.lane.b32.xlu1 %v4663_v32, %s7111_s12  ;;  %v4120_v41 = vpop.permute.xlu0 %4119 }
 0x358   : > { %v4122_v18 = vpop.permute.xlu1 %4121  ;;  %4400 = vrot.lane.b32.xlu0 %v9278_v53, %s7111_s12 }
 0x35a   : > { %4402 = vrot.lane.b32.xlu1 %v9279_v8, %s7111_s12  ;;  %v3189_v11 = vpop.permute.xlu0 %3188 }
 0x35b   : > { %v3289_v19 = vsel %vm3276_vm0, %v3189_v11, %v3253_v49 }
 0x35c   : > { %v3321_v56 = vmul.f32 %v3289_v19, %v8705_v21  ;;  %v3191_v47 = vpop.permute.xlu1 %3190  ;;  %4768 = vrot.lane.b32.xlu0 %v9280_v9, %s7111_s12 }
 0x35d   : > { %v3290_v16 = vsel %vm3276_vm0, %v3191_v47, %v3255_v59 }
 0x35e   : > { %v3322_v49 = vmul.f32 %v3290_v16, %v8717_v39  ;;  %4770 = vrot.lane.b32.xlu1 %v9281_v40, %s7111_s12  ;;  %v3767_v4 = vpop.permute.xlu0 %3766  ;;  %v3337_v59 = vadd.f32 %v3321_v56, %v3305_v0  ;;  %v9284_v56 = vld [vmem:[#allocation46_spill] sm:$0xff] }
 0x35f   : > { %v3866_v48 = vsel %vm3276_vm0, %v3767_v4, %v3831_v17  ;;  %v4664_v17 = vsub.f32 0.0, %v9280_v9  ;;  %v3593_v47 = vmul.f32 %v9284_v56, %v8710_v50  ;;  %v9285_v16 = vld [vmem:[#allocation50_spill] sm:$0xff] }
 0x360   : > { %v3338_v36 = vadd.f32 %v3322_v49, %v3306_v10  ;;  %v3898_v42 = vmul.f32 %v3866_v48, %v8705_v21  ;;  %v3769_v24 = vpop.permute.xlu1 %3768  ;;  %4336 = vrot.lane.b32.xlu0 %v4296_v29, %s7111_s12  ;;  %v3594_v0 = vmul.f32 %v9285_v16, %v8713_v7 }
 0x361   : > { %v3867_v44 = vsel %vm3276_vm0, %v3769_v24, %v3833_v57 }
 0x362   : > { %v6064_v58 = vpack.c.bf16 %v3338_v36, %v3337_v59  ;;  %v3899_v51 = vmul.f32 %v3867_v44, %v8717_v39  ;;  %4338 = vrot.lane.b32.xlu1 %v4297_v55, %s7111_s12  ;;  %v3478_v35 = vpop.permute.xlu0 %3477  ;;  %v3914_v34 = vadd.f32 %v3898_v42, %v3882_v54  ;;  %v9286_v59 = vld [vmem:[#allocation71_spill] sm:$0xff]  ;;  %v4172_v54 = vmul.f32 %v9288_v20, %v8713_v7 }
 0x363   : > { %v3577_v28 = vsel %vm3276_vm0, %v3478_v35, %v3542_v15  ;;  %v9287_v42 = vld [vmem:[#allocation47_spill] sm:$0xff]  ;;  %v4298_v35 = vsub.f32 0.0, %v9286_v59 }
 0x364   : > { %6356 = vst [vmem:[%s8089_s26 + $0x30] sm:$0xff] %v6064_v58   ;;  %v3915_v32 = vadd.f32 %v3899_v51, %v3883_v43  ;;  %v3609_v57 = vmul.f32 %v3577_v28, %v8705_v21  ;;  %v3480_v11 = vpop.permute.xlu1 %3479  ;;  %4704 = vrot.lane.b32.xlu0 %v4664_v17, %s7111_s12  ;;  %v4171_v24 = vmul.f32 %v9287_v42, %v8710_v50 }
 0x365   : > { %v3578_v19 = vsel %vm3276_vm0, %v3480_v11, %v3544_v27 }
 0x366   : > { %v6144_v15 = vpack.c.bf16 %v3915_v32, %v3914_v34  ;;  %v3610_v10 = vmul.f32 %v3578_v19, %v8717_v39  ;;  %4706 = vrot.lane.b32.xlu1 %v4665_v3, %s7111_s12  ;;  %v4056_v29 = vpop.permute.xlu0 %4055  ;;  %v3625_v4 = vadd.f32 %v3609_v57, %v3593_v47  ;;  %v9291_v3 = vld [vmem:[#allocation42_spill] sm:$0xff]  ;;  %v4299_v32 = vsub.f32 0.0, %v9289_v1 }
 0x367   : > { %v4155_v49 = vsel %vm3276_vm0, %v4056_v29, %v4120_v41  ;;  %v4667_v56 = vsub.f32 0.0, %v9291_v3  ;;  %v9293_v29 = vld [vmem:[#allocation74_spill] sm:$0xff] }
 0x368   : > { %6372 = vst [vmem:[%s8089_s26 + $0xb0] sm:$0xff] %v6144_v15   ;;  %v3626_v48 = vadd.f32 %v3610_v10, %v3594_v0  ;;  %v4187_v27 = vmul.f32 %v4155_v49, %v8705_v21  ;;  %v4058_v55 = vpop.permute.xlu1 %4057  ;;  %4404 = vrot.lane.b32.xlu0 %v9286_v59, %s7111_s12  ;;  %v9292_v15 = vld [vmem:[#allocation41_spill] sm:$0xff] }
 0x369   : > { %v4156_v36 = vsel %vm3276_vm0, %v4058_v55, %v4122_v18  ;;  %v9290_v18 = vld [vmem:[#allocation72_spill] sm:$0xff]  ;;  %v8785_v10 = vld [vmem:[%s8050_s16 + $0x70] sm:$0xff]  ;;  %v8797_v55 = vld [vmem:[%s8050_s16 + $0x78] sm:$0xff] }
 0x36a   : > { %v6104_v44 = vpack.c.bf16 %v3626_v48, %v3625_v4  ;;  %v4188_v41 = vmul.f32 %v4156_v36, %v8717_v39  ;;  %4406 = vrot.lane.b32.xlu1 %v9289_v1, %s7111_s12  ;;  %v3257_v43 = vpop.permute.xlu0 %3256  ;;  %v4203_v17 = vadd.f32 %v4187_v27, %v4171_v24  ;;  %v4666_v11 = vsub.f32 0.0, %v9290_v18  ;;  %v8790_v4 = vld [vmem:[%s7444_s29 + $0x70] sm:$0xff]  ;;  %v8793_v48 = vld [vmem:[%s7444_s29 + $0x78] sm:$0xff]  ;;  %v9294_v24 = vld [vmem:[#allocation43_spill] sm:$0xff] }
 0x36c   : > { %6364 = vst [vmem:[%s8089_s26 + $0x70] sm:$0xff] %v6104_v44   ;;  %v4204_v58 = vadd.f32 %v4188_v41, %v4172_v54  ;;  %v3259_v51 = vpop.permute.xlu1 %3258  ;;  %4772 = vrot.lane.b32.xlu0 %v9290_v18, %s7111_s12  ;;  %v3307_v54 = vmul.f32 %v9254_v13, %v8790_v4  ;;  %v3308_v44 = vmul.f32 %v9255_v46, %v8793_v48  ;;  %v4300_v41 = vsub.f32 0.0, %v9292_v15 }
 0x36d   : > { %v3884_v46 = vmul.f32 %v9256_v52, %v8790_v4 }
 0x36e   : > { %v6184_v28 = vpack.c.bf16 %v4204_v58, %v4203_v17  ;;  %4774 = vrot.lane.b32.xlu1 %v9291_v3, %s7111_s12  ;;  %v3835_v34 = vpop.permute.xlu0 %3834  ;;  %v9295_v17 = vld [vmem:[#allocation75_spill] sm:$0xff] }
 0x370   : > { %6380 = vst [vmem:[%s8089_s26 + $0xf0] sm:$0xff] %v6184_v28   ;;  %v3837_v57 = vpop.permute.xlu1 %3836  ;;  %4340 = vrot.lane.b32.xlu0 %v4298_v35, %s7111_s12  ;;  %v4301_v28 = vsub.f32 0.0, %v9293_v29 }
 0x372   : > { %4342 = vrot.lane.b32.xlu1 %v4299_v32, %s7111_s12  ;;  %v3546_v19 = vpop.permute.xlu0 %3545 }
 0x374   : > { %v3548_v47 = vpop.permute.xlu1 %3547  ;;  %4708 = vrot.lane.b32.xlu0 %v4666_v11, %s7111_s12 }
 0x376   : > { %4710 = vrot.lane.b32.xlu1 %v4667_v56, %s7111_s12  ;;  %v4124_v16 = vpop.permute.xlu0 %4123 }
 0x378   : > { %v4126_v0 = vpop.permute.xlu1 %4125  ;;  %4408 = vrot.lane.b32.xlu0 %v9292_v15, %s7111_s12 }
 0x37a   : > { %4410 = vrot.lane.b32.xlu1 %v9293_v29, %s7111_s12  ;;  %v3193_v49 = vpop.permute.xlu0 %3192 }
 0x37b   : > { %v3291_v27 = vsel %vm3276_vm0, %v3193_v49, %v3257_v43  ;;  %v9296_v49 = vld [vmem:[#allocation57_spill] sm:$0xff] }
 0x37c   : > { %v3323_v36 = vmul.f32 %v3291_v27, %v8785_v10  ;;  %v3195_v42 = vpop.permute.xlu1 %3194  ;;  %4776 = vrot.lane.b32.xlu0 %v9294_v24, %s7111_s12  ;;  %v3885_v27 = vmul.f32 %v9296_v49, %v8793_v48 }
 0x37d   : > { %v3292_v20 = vsel %vm3276_vm0, %v3195_v42, %v3259_v51 }
 0x37e   : > { %v3324_v43 = vmul.f32 %v3292_v20, %v8797_v55  ;;  %4778 = vrot.lane.b32.xlu1 %v9295_v17, %s7111_s12  ;;  %v3771_v58 = vpop.permute.xlu0 %3770  ;;  %v3339_v51 = vadd.f32 %v3323_v36, %v3307_v54 }
 0x37f   : > { %v3868_v35 = vsel %vm3276_vm0, %v3771_v58, %v3835_v34  ;;  %v4668_v34 = vsub.f32 0.0, %v9294_v24 }
 0x380   : > { %v3340_v32 = vadd.f32 %v3324_v43, %v3308_v44  ;;  %v3900_v13 = vmul.f32 %v3868_v35, %v8785_v10  ;;  %v3773_v11 = vpop.permute.xlu1 %3772  ;;  %4344 = vrot.lane.b32.xlu0 %v4300_v41, %s7111_s12  ;;  %v4669_v44 = vsub.f32 0.0, %v9295_v17  ;;  %v9297_v35 = vld [vmem:[#allocation54_spill] sm:$0xff] }
 0x381   : > { %v3869_v56 = vsel %vm3276_vm0, %v3773_v11, %v3837_v57 }
 0x382   : > { %v6069_v42 = vpack.c.bf16 %v3340_v32, %v3339_v51  ;;  %v3901_v20 = vmul.f32 %v3869_v56, %v8797_v55  ;;  %4346 = vrot.lane.b32.xlu1 %v4301_v28, %s7111_s12  ;;  %v3482_v36 = vpop.permute.xlu0 %3481  ;;  %v3916_v52 = vadd.f32 %v3900_v13, %v3884_v46  ;;  %v3595_v51 = vmul.f32 %v9297_v35, %v8790_v4  ;;  %v9298_v28 = vld [vmem:[#allocation58_spill] sm:$0xff] }
 0x383   : > { %v3579_v54 = vsel %vm3276_vm0, %v3482_v36, %v3546_v19  ;;  %v3596_v32 = vmul.f32 %v9298_v28, %v8793_v48  ;;  %v9303_v28 = vld [vmem:[#allocation77_spill] sm:$0xff] }
 0x384   : > { %6357 = vst [vmem:[%s8089_s26 + $0x38] sm:$0xff] %v6069_v42   ;;  %v3917_v41 = vadd.f32 %v3901_v20, %v3885_v27  ;;  %v3611_v57 = vmul.f32 %v3579_v54, %v8785_v10  ;;  %v3484_v43 = vpop.permute.xlu1 %3483  ;;  %4712 = vrot.lane.b32.xlu0 %v4668_v34, %s7111_s12  ;;  %v9299_v34 = vld [vmem:[#allocation76_spill] sm:$0xff]  ;;  %v9300_v42 = vld [vmem:[#allocation55_spill] sm:$0xff] }
 0x385   : > { %v3580_v58 = vsel %vm3276_vm0, %v3484_v43, %v3548_v47  ;;  %v4173_v20 = vmul.f32 %v9300_v42, %v8790_v4  ;;  %v9301_v54 = vld [vmem:[#allocation59_spill] sm:$0xff] }
 0x386   : > { %v6149_v19 = vpack.c.bf16 %v3917_v41, %v3916_v52  ;;  %v3612_v11 = vmul.f32 %v3580_v58, %v8797_v55  ;;  %4714 = vrot.lane.b32.xlu1 %v4669_v44, %s7111_s12  ;;  %v4060_v13 = vpop.permute.xlu0 %4059  ;;  %v3627_v56 = vadd.f32 %v3611_v57, %v3595_v51  ;;  %v4174_v44 = vmul.f32 %v9301_v54, %v8793_v48  ;;  %v9302_v57 = vld [vmem:[#allocation78_spill] sm:$0xff]  ;;  %v6883_v54 = vld [vmem:[%s7444_s29] sm:$0xff] }
 0x387   : > { %v4157_v46 = vsel %vm3276_vm0, %v4060_v13, %v4124_v16  ;;  %v4302_v16 = vsub.f32 0.0, %v9299_v34  ;;  %v4303_v58 = vsub.f32 0.0, %v9302_v57  ;;  %v9304_v13 = vld [vmem:[#allocation79_spill] sm:$0xff] }
 0x388   : > { %6373 = vst [vmem:[%s8089_s26 + $0xb8] sm:$0xff] %v6149_v19   ;;  %v3628_v49 = vadd.f32 %v3612_v11, %v3596_v32  ;;  %v4189_v47 = vmul.f32 %v4157_v46, %v8785_v10  ;;  %v4062_v27 = vpop.permute.xlu1 %4061  ;;  %4412 = vrot.lane.b32.xlu0 %v9299_v34, %s7111_s12  ;;  %v4670_v32 = vsub.f32 0.0, %v9303_v28  ;;  %v4671_v46 = vsub.f32 0.0, %v9304_v13 }
 0x389   : > { %v4158_v36 = vsel %vm3276_vm0, %v4062_v27, %v4126_v0  ;;  %v6882_v27 = vld [vmem:[%s8050_s16] sm:$0xff] }
 0x38a   : > { %v6109_v52 = vpack.c.bf16 %v3628_v49, %v3627_v56  ;;  %v4190_v41 = vmul.f32 %v4158_v36, %v8797_v55  ;;  %4414 = vrot.lane.b32.xlu1 %v9302_v57, %s7111_s12  ;;  %v4385_v43 = vpop.permute.xlu0 %4384  ;;  %v4205_v35 = vadd.f32 %v4189_v47, %v4173_v20 }
 0x38c   : > { %6365 = vst [vmem:[%s8089_s26 + $0x78] sm:$0xff] %v6109_v52   ;;  %v4206_v51 = vadd.f32 %v4190_v41, %v4174_v44  ;;  %v4387_v0 = vpop.permute.xlu1 %4386  ;;  %4348 = vrot.lane.b32.xlu0 %v4302_v16, %s7111_s12  ;;  %v9305_v44 = vld [vmem:[#allocation44_spill] sm:$0xff] }
 0x38d   : > { %v4448_v16 = vmul.f32 %v6883_v54, %v9305_v44  ;;  %v6884_v52 = vld [vmem:[%s7444_s29 + $0x8] sm:$0xff] }
 0x38e   : > { %v6189_v19 = vpack.c.bf16 %v4206_v51, %v4205_v35  ;;  %4350 = vrot.lane.b32.xlu1 %v4303_v58, %s7111_s12  ;;  %v4753_v11 = vpop.permute.xlu0 %4752  ;;  %v4449_v41 = vmul.f32 %v6884_v52, %v8410_v62  ;;  %v6885_v58 = vld [vmem:[%s8050_s16 + $0x8] sm:$0xff]  ;;  %v4817_v62 = vmul.f32 %v6884_v52, %v8439_v22  ;;  %v6886_v52 = vld [vmem:[%s8050_s16 + $0x10] sm:$0xff] }
 0x390   : > { %6381 = vst [vmem:[%s8089_s26 + $0xf8] sm:$0xff] %v6189_v19   ;;  %v4755_v56 = vpop.permute.xlu1 %4754  ;;  %4716 = vrot.lane.b32.xlu0 %v4670_v32, %s7111_s12 }
 0x392   : > { %4718 = vrot.lane.b32.xlu1 %v4671_v46, %s7111_s12  ;;  %v4321_v49 = vpop.permute.xlu0 %4320 }
 0x393   : > { %v4432_v47 = vsel %vm3276_vm0, %v4321_v49, %v4385_v43 }
 0x394   : > { %v4464_v42 = vmul.f32 %v6882_v27, %v4432_v47  ;;  %v4323_v20 = vpop.permute.xlu1 %4322  ;;  %4780 = vrot.lane.b32.xlu0 %v9303_v28, %s7111_s12  ;;  %v4816_v47 = vmul.f32 %v6883_v54, %v8426_v5 }
 0x395   : > { %v4433_v36 = vsel %vm3276_vm0, %v4323_v20, %v4387_v0 }
 0x396   : > { %v4465_v35 = vmul.f32 %v6885_v58, %v4433_v36  ;;  %4782 = vrot.lane.b32.xlu1 %v9304_v13, %s7111_s12  ;;  %v4689_v43 = vpop.permute.xlu0 %4688  ;;  %v4480_v32 = vadd.f32 %v4464_v42, %v4448_v16 }
 0x397   : > { %v4800_v51 = vsel %vm3276_vm0, %v4689_v43, %v4753_v11  ;;  %v6887_v43 = vld [vmem:[%s7444_s29 + $0x10] sm:$0xff] }
 0x398   : > { %v4481_v19 = vadd.f32 %v4465_v35, %v4449_v41  ;;  %v4832_v46 = vmul.f32 %v6882_v27, %v4800_v51  ;;  %v4691_v49 = vpop.permute.xlu1 %4690  ;;  %v4450_v51 = vmul.f32 %v6887_v43, %v8491_v2 }
 0x399   : > { %v4801_v0 = vsel %vm3276_vm0, %v4691_v49, %v4755_v56 }
 0x39a   : > { %v6194_v20 = vpack.c.bf16 %v4481_v19, %v4480_v32  ;;  %v4833_v44 = vmul.f32 %v6885_v58, %v4801_v0  ;;  %v4389_v36 = vpop.permute.xlu0 %4388  ;;  %v4848_v11 = vadd.f32 %v4832_v46, %v4816_v47  ;;  %v6888_v32 = vld [vmem:[%s7444_s29 + $0x18] sm:$0xff] }
 0x39b   : > { %v4451_v19 = vmul.f32 %v6888_v32, %v8498_v14  ;;  %v6889_v46 = vld [vmem:[%s8050_s16 + $0x18] sm:$0xff]  ;;  %v4819_v2 = vmul.f32 %v6888_v32, %v8524_v61  ;;  %v6891_v32 = vld [vmem:[%s7444_s29 + $0x20] sm:$0xff] }
 0x39c   : > { %6195 = vst [vmem:[%s8875_s30] sm:$0xff] %v6194_v20   ;;  %v4849_v27 = vadd.f32 %v4833_v44, %v4817_v62  ;;  %v4391_v42 = vpop.permute.xlu1 %4390 }
 0x39e   : > { %v6274_v56 = vpack.c.bf16 %v4849_v27, %v4848_v11  ;;  %v4757_v16 = vpop.permute.xlu0 %4756  ;;  %v4818_v27 = vmul.f32 %v6887_v43, %v8517_v37  ;;  %v6890_v37 = vld [vmem:[%s8050_s16 + $0x20] sm:$0xff] }
 0x3a0   : > { %6396 = vst [vmem:[%s8875_s30 + $0x40] sm:$0xff] %v6274_v56   ;;  %v4759_v5 = vpop.permute.xlu1 %4758 }
 0x3a2   : > { %v4325_v54 = vpop.permute.xlu0 %4324 }
 0x3a3   : > { %v4434_v22 = vsel %vm3276_vm0, %v4325_v54, %v4389_v36 }
 0x3a4   : > { %v4466_v41 = vmul.f32 %v6886_v52, %v4434_v22  ;;  %v4327_v58 = vpop.permute.xlu1 %4326 }
 0x3a5   : > { %v4435_v35 = vsel %vm3276_vm0, %v4327_v58, %v4391_v42 }
 0x3a6   : > { %v4467_v49 = vmul.f32 %v6889_v46, %v4435_v35  ;;  %v4693_v0 = vpop.permute.xlu0 %4692  ;;  %v4482_v62 = vadd.f32 %v4466_v41, %v4450_v51 }
 0x3a7   : > { %v4802_v47 = vsel %vm3276_vm0, %v4693_v0, %v4757_v16  ;;  %v6893_v0 = vld [vmem:[%s8050_s16 + $0x28] sm:$0xff] }
 0x3a8   : > { %v4483_v20 = vadd.f32 %v4467_v49, %v4451_v19  ;;  %v4834_v44 = vmul.f32 %v6886_v52, %v4802_v47  ;;  %v4695_v36 = vpop.permute.xlu1 %4694  ;;  %v4452_v19 = vmul.f32 %v6891_v32, %v8557_v31 }
 0x3a9   : > { %v4803_v11 = vsel %vm3276_vm0, %v4695_v36, %v4759_v5 }
 0x3aa   : > { %v6199_v42 = vpack.c.bf16 %v4483_v20, %v4482_v62  ;;  %v4835_v56 = vmul.f32 %v6889_v46, %v4803_v11  ;;  %v4393_v14 = vpop.permute.xlu0 %4392  ;;  %v4850_v54 = vadd.f32 %v4834_v44, %v4818_v27  ;;  %v6892_v46 = vld [vmem:[%s7444_s29 + $0x28] sm:$0xff] }
 0x3ab   : > { %v4453_v49 = vmul.f32 %v6892_v46, %v8566_v26  ;;  %v4821_v31 = vmul.f32 %v6892_v46, %v8595_v63  ;;  %v6897_v46 = vld [vmem:[%s8050_s16 + $0x38] sm:$0xff] }
 0x3ac   : > { %6382 = vst [vmem:[%s8875_s30 + $0x8] sm:$0xff] %v6199_v42   ;;  %v4851_v16 = vadd.f32 %v4835_v56, %v4819_v2  ;;  %v4395_v22 = vpop.permute.xlu1 %4394  ;;  %v4820_v42 = vmul.f32 %v6891_v32, %v8582_v25  ;;  %v6894_v25 = vld [vmem:[%s8050_s16 + $0x30] sm:$0xff]  ;;  %v6896_v32 = vld [vmem:[%s7444_s29 + $0x38] sm:$0xff] }
 0x3ae   : > { %v6279_v41 = vpack.c.bf16 %v4851_v16, %v4850_v54  ;;  %v4761_v52 = vpop.permute.xlu0 %4760 }
 0x3b0   : > { %6397 = vst [vmem:[%s8875_s30 + $0x48] sm:$0xff] %v6279_v41   ;;  %v4763_v58 = vpop.permute.xlu1 %4762 }
 0x3b2   : > { %v4329_v5 = vpop.permute.xlu0 %4328 }
 0x3b3   : > { %v4436_v35 = vsel %vm3276_vm0, %v4329_v5, %v4393_v14 }
 0x3b4   : > { %v4468_v43 = vmul.f32 %v6890_v37, %v4436_v35  ;;  %v4331_v61 = vpop.permute.xlu1 %4330 }
 0x3b5   : > { %v4437_v51 = vsel %vm3276_vm0, %v4331_v61, %v4395_v22  ;;  %v6895_v61 = vld [vmem:[%s7444_s29 + $0x30] sm:$0xff] }
 0x3b6   : > { %v4469_v47 = vmul.f32 %v6893_v0, %v4437_v51  ;;  %v4697_v62 = vpop.permute.xlu0 %4696  ;;  %v4484_v44 = vadd.f32 %v4468_v43, %v4452_v19  ;;  %v4454_v51 = vmul.f32 %v6895_v61, %v8645_v30  ;;  %v4455_v19 = vmul.f32 %v6896_v32, %v8652_v60 }
 0x3b7   : > { %v4804_v20 = vsel %vm3276_vm0, %v4697_v62, %v4761_v52  ;;  %v4823_v30 = vmul.f32 %v6896_v32, %v8678_v23 }
 0x3b8   : > { %v4485_v36 = vadd.f32 %v4469_v47, %v4453_v49  ;;  %v4836_v11 = vmul.f32 %v6890_v37, %v4804_v20  ;;  %v4699_v27 = vpop.permute.xlu1 %4698 }
 0x3b9   : > { %v4805_v2 = vsel %vm3276_vm0, %v4699_v27, %v4763_v58  ;;  %v4822_v27 = vmul.f32 %v6895_v61, %v8671_v12  ;;  %v6898_v12 = vld [vmem:[%s8050_s16 + $0x40] sm:$0xff] }
 0x3ba   : > { %v6204_v56 = vpack.c.bf16 %v4485_v36, %v4484_v44  ;;  %v4837_v14 = vmul.f32 %v6893_v0, %v4805_v2  ;;  %v4397_v26 = vpop.permute.xlu0 %4396  ;;  %v4852_v54 = vadd.f32 %v4836_v11, %v4820_v42 }
 0x3bc   : > { %6383 = vst [vmem:[%s8875_s30 + $0x10] sm:$0xff] %v6204_v56   ;;  %v4853_v16 = vadd.f32 %v4837_v14, %v4821_v31  ;;  %v4399_v22 = vpop.permute.xlu1 %4398 }
 0x3be   : > { %v6284_v41 = vpack.c.bf16 %v4853_v16, %v4852_v54  ;;  %v4765_v52 = vpop.permute.xlu0 %4764 }
 0x3c0   : > { %6398 = vst [vmem:[%s8875_s30 + $0x50] sm:$0xff] %v6284_v41   ;;  %v4767_v5 = vpop.permute.xlu1 %4766 }
 0x3c2   : > { %v4333_v58 = vpop.permute.xlu0 %4332 }
 0x3c3   : > { %v4438_v35 = vsel %vm3276_vm0, %v4333_v58, %v4397_v26  ;;  %v6899_v58 = vld [vmem:[%s7444_s29 + $0x40] sm:$0xff] }
 0x3c4   : > { %v4470_v37 = vmul.f32 %v6894_v25, %v4438_v35  ;;  %v4335_v63 = vpop.permute.xlu1 %4334  ;;  %v4456_v35 = vmul.f32 %v6899_v58, %v9278_v53 }
 0x3c5   : > { %v4439_v43 = vsel %vm3276_vm0, %v4335_v63, %v4399_v22  ;;  %v6901_v63 = vld [vmem:[%s8050_s16 + $0x48] sm:$0xff] }
 0x3c6   : > { %v4471_v49 = vmul.f32 %v6897_v46, %v4439_v43  ;;  %v4701_v0 = vpop.permute.xlu0 %4700  ;;  %v4486_v62 = vadd.f32 %v4470_v37, %v4454_v51 }
 0x3c7   : > { %v4806_v47 = vsel %vm3276_vm0, %v4701_v0, %v4765_v52 }
 0x3c8   : > { %v4487_v20 = vadd.f32 %v4471_v49, %v4455_v19  ;;  %v4838_v44 = vmul.f32 %v6894_v25, %v4806_v47  ;;  %v4703_v36 = vpop.permute.xlu1 %4702  ;;  %v6900_v25 = vld [vmem:[%s7444_s29 + $0x48] sm:$0xff]  ;;  %v4824_v47 = vmul.f32 %v6899_v58, %v9280_v9 }
 0x3c9   : > { %v4807_v11 = vsel %vm3276_vm0, %v4703_v36, %v4767_v5  ;;  %v4457_v37 = vmul.f32 %v6900_v25, %v9279_v8  ;;  %v4825_v53 = vmul.f32 %v6900_v25, %v9281_v40  ;;  %v4458_v40 = vmul.f32 %v9286_v59, %v8578_v38 }
 0x3ca   : > { %v6209_v2 = vpack.c.bf16 %v4487_v20, %v4486_v62  ;;  %v4839_v42 = vmul.f32 %v6897_v46, %v4807_v11  ;;  %v4401_v60 = vpop.permute.xlu0 %4400  ;;  %v4854_v31 = vadd.f32 %v4838_v44, %v4822_v27  ;;  %v4827_v59 = vmul.f32 %v9291_v3, %v8587_v33 }
 0x3cb   : > { %v4461_v3 = vmul.f32 %v9293_v29, %v8713_v7 }
 0x3cc   : > { %6384 = vst [vmem:[%s8875_s30 + $0x18] sm:$0xff] %v6209_v2   ;;  %v4855_v56 = vadd.f32 %v4839_v42, %v4823_v30  ;;  %v4403_v14 = vpop.permute.xlu1 %4402 }
 0x3ce   : > { %v6289_v26 = vpack.c.bf16 %v4855_v56, %v4854_v31  ;;  %v4769_v54 = vpop.permute.xlu0 %4768 }
 0x3d0   : > { %6399 = vst [vmem:[%s8875_s30 + $0x58] sm:$0xff] %v6289_v26   ;;  %v4771_v16 = vpop.permute.xlu1 %4770 }
 0x3d2   : > { %v4337_v22 = vpop.permute.xlu0 %4336 }
 0x3d3   : > { %v4440_v41 = vsel %vm3276_vm0, %v4337_v22, %v4401_v60 }
 0x3d4   : > { %v4472_v52 = vmul.f32 %v6898_v12, %v4440_v41  ;;  %v4339_v23 = vpop.permute.xlu1 %4338 }
 0x3d5   : > { %v4441_v5 = vsel %vm3276_vm0, %v4339_v23, %v4403_v14  ;;  %v4459_v14 = vmul.f32 %v9289_v1, %v8587_v33 }
 0x3d6   : > { %v4473_v43 = vmul.f32 %v6901_v63, %v4441_v5  ;;  %v4705_v61 = vpop.permute.xlu0 %4704  ;;  %v4488_v32 = vadd.f32 %v4472_v52, %v4456_v35  ;;  %v4826_v5 = vmul.f32 %v9290_v18, %v8578_v38 }
 0x3d7   : > { %v4808_v51 = vsel %vm3276_vm0, %v4705_v61, %v4769_v54 }
 0x3d8   : > { %v4489_v19 = vadd.f32 %v4473_v43, %v4457_v37  ;;  %v4840_v46 = vmul.f32 %v6898_v12, %v4808_v51  ;;  %v4707_v49 = vpop.permute.xlu1 %4706 }
 0x3d9   : > { %v4809_v0 = vsel %vm3276_vm0, %v4707_v49, %v4771_v16 }
 0x3da   : > { %v6214_v62 = vpack.c.bf16 %v4489_v19, %v4488_v32  ;;  %v4841_v20 = vmul.f32 %v6901_v63, %v4809_v0  ;;  %v4405_v44 = vpop.permute.xlu0 %4404  ;;  %v4856_v8 = vadd.f32 %v4840_v46, %v4824_v47 }
 0x3dc   : > { %6385 = vst [vmem:[%s8875_s30 + $0x20] sm:$0xff] %v6214_v62   ;;  %v4857_v36 = vadd.f32 %v4841_v20, %v4825_v53  ;;  %v4407_v11 = vpop.permute.xlu1 %4406 }
 0x3de   : > { %v6294_v27 = vpack.c.bf16 %v4857_v36, %v4856_v8  ;;  %v4773_v30 = vpop.permute.xlu0 %4772 }
 0x3e0   : > { %6400 = vst [vmem:[%s8875_s30 + $0x60] sm:$0xff] %v6294_v27   ;;  %v4775_v2 = vpop.permute.xlu1 %4774 }
 0x3e2   : > { %v4341_v42 = vpop.permute.xlu0 %4340 }
 0x3e3   : > { %v4442_v60 = vsel %vm3276_vm0, %v4341_v42, %v4405_v44  ;;  %v4828_v44 = vmul.f32 %v9294_v24, %v8710_v50 }
 0x3e4   : > { %v4474_v31 = vmul.f32 %v4442_v60, %v8574_v45  ;;  %v4343_v56 = vpop.permute.xlu1 %4342 }
 0x3e5   : > { %v4443_v9 = vsel %vm3276_vm0, %v4343_v56, %v4407_v11 }
 0x3e6   : > { %v4475_v26 = vmul.f32 %v4443_v9, %v8591_v6  ;;  %v4709_v54 = vpop.permute.xlu0 %4708  ;;  %v4490_v22 = vadd.f32 %v4474_v31, %v4458_v40 }
 0x3e7   : > { %v4810_v16 = vsel %vm3276_vm0, %v4709_v54, %v4773_v30 }
 0x3e8   : > { %v4491_v41 = vadd.f32 %v4475_v26, %v4459_v14  ;;  %v4842_v12 = vmul.f32 %v4810_v16, %v8574_v45  ;;  %v4711_v52 = vpop.permute.xlu1 %4710 }
 0x3e9   : > { %v4811_v23 = vsel %vm3276_vm0, %v4711_v52, %v4775_v2 }
 0x3ea   : > { %v6219_v1 = vpack.c.bf16 %v4491_v41, %v4490_v22  ;;  %v4843_v58 = vmul.f32 %v4811_v23, %v8591_v6  ;;  %v4409_v35 = vpop.permute.xlu0 %4408  ;;  %v4858_v25 = vadd.f32 %v4842_v12, %v4826_v5  ;;  %v4460_v6 = vmul.f32 %v9292_v15, %v8710_v50 }
 0x3eb   : > { %v4829_v15 = vmul.f32 %v9295_v17, %v8713_v7  ;;  %v4462_v7 = vmul.f32 %v9299_v34, %v8790_v4  ;;  %v4831_v41 = vmul.f32 %v9304_v13, %v8793_v48 }
 0x3ec   : > { %6386 = vst [vmem:[%s8875_s30 + $0x28] sm:$0xff] %v6219_v1   ;;  %v4859_v37 = vadd.f32 %v4843_v58, %v4827_v59  ;;  %v4411_v63 = vpop.permute.xlu1 %4410 }
 0x3ee   : > { %v6299_v43 = vpack.c.bf16 %v4859_v37, %v4858_v25  ;;  %v4777_v61 = vpop.permute.xlu0 %4776 }
 0x3f0   : > { %6401 = vst [vmem:[%s8875_s30 + $0x68] sm:$0xff] %v6299_v43   ;;  %v4779_v45 = vpop.permute.xlu1 %4778 }
 0x3f2   : > { %v4345_v51 = vpop.permute.xlu0 %4344 }
 0x3f3   : > { %v4444_v32 = vsel %vm3276_vm0, %v4345_v51, %v4409_v35 }
 0x3f4   : > { %v4476_v38 = vmul.f32 %v4444_v32, %v8705_v21  ;;  %v4347_v18 = vpop.permute.xlu1 %4346 }
 0x3f5   : > { %v4445_v33 = vsel %vm3276_vm0, %v4347_v18, %v4411_v63 }
 0x3f6   : > { %v4477_v19 = vmul.f32 %v4445_v33, %v8717_v39  ;;  %v4713_v46 = vpop.permute.xlu0 %4712  ;;  %v4492_v0 = vadd.f32 %v4476_v38, %v4460_v6 }
 0x3f7   : > { %v4812_v49 = vsel %vm3276_vm0, %v4713_v46, %v4777_v61 }
 0x3f8   : > { %v4493_v47 = vadd.f32 %v4477_v19, %v4461_v3  ;;  %v4844_v53 = vmul.f32 %v4812_v49, %v8705_v21  ;;  %v4715_v62 = vpop.permute.xlu1 %4714 }
 0x3f9   : > { %v4813_v20 = vsel %vm3276_vm0, %v4715_v62, %v4779_v45 }
 0x3fa   : > { %v6224_v29 = vpack.c.bf16 %v4493_v47, %v4492_v0  ;;  %v4845_v8 = vmul.f32 %v4813_v20, %v8717_v39  ;;  %v4413_v36 = vpop.permute.xlu0 %4412  ;;  %v4860_v11 = vadd.f32 %v4844_v53, %v4828_v44  ;;  %v4463_v39 = vmul.f32 %v9302_v57, %v8793_v48 }
 0x3fb   : > { %v4830_v57 = vmul.f32 %v9303_v28, %v8790_v4 }
 0x3fc   : > { %6387 = vst [vmem:[%s8875_s30 + $0x30] sm:$0xff] %v6224_v29   ;;  %v4861_v27 = vadd.f32 %v4845_v8, %v4829_v15  ;;  %v4415_v30 = vpop.permute.xlu1 %4414 }
 0x3fe   : > { %v6304_v2 = vpack.c.bf16 %v4861_v27, %v4860_v11  ;;  %v4349_v42 = vpop.permute.xlu0 %4348 }
 0x3ff   : > { %v4446_v21 = vsel %vm3276_vm0, %v4349_v42, %v4413_v36 }
 0x400   : > { %6402 = vst [vmem:[%s8875_s30 + $0x70] sm:$0xff] %v6304_v2   ;;  %v4478_v60 = vmul.f32 %v4446_v21, %v8785_v10  ;;  %v4351_v50 = vpop.permute.xlu1 %4350 }
 0x401   : > { %v4447_v24 = vsel %vm3276_vm0, %v4351_v50, %v4415_v30 }
 0x402   : > { %v4479_v17 = vmul.f32 %v4447_v24, %v8797_v55  ;;  %v4717_v31 = vpop.permute.xlu0 %4716  ;;  %v4494_v56 = vadd.f32 %v4478_v60, %v4462_v7 }
 0x404   : > { %v4495_v9 = vadd.f32 %v4479_v17, %v4463_v39  ;;  %v4719_v40 = vpop.permute.xlu1 %4718 }
 0x406   : > { %v6229_v14 = vpack.c.bf16 %v4495_v9, %v4494_v56  ;;  %v4781_v26 = vpop.permute.xlu0 %4780 }
 0x407   : > { %v4814_v54 = vsel %vm3276_vm0, %v4717_v31, %v4781_v26 }
 0x408   : > { %6388 = vst [vmem:[%s8875_s30 + $0x38] sm:$0xff] %v6229_v14   ;;  %v4846_v16 = vmul.f32 %v4814_v54, %v8785_v10  ;;  %v4783_v34 = vpop.permute.xlu1 %4782 }
 0x409   : > { %v4815_v22 = vsel %vm3276_vm0, %v4719_v40, %v4783_v34 }
 0x40a   : > { %v4847_v12 = vmul.f32 %v4815_v22, %v8797_v55  ;;  %v4862_v52 = vadd.f32 %v4846_v16, %v4830_v57 }
 0x40c   : > { %v4863_v23 = vadd.f32 %v4847_v12, %v4831_v41 }
 0x40e   : > { %v6309_v5 = vpack.c.bf16 %v4863_v23, %v4862_v52 }
 0x410   : > { %6403 = vst [vmem:[%s8875_s30 + $0x78] sm:$0xff] %v6309_v5  }
 0x411   : > { %s8995_s11 = sshll.u32 %s7194_s28, 10  ;;  %s5066_s3 = sshll.u32 %s8089_s26, 4  ;;  %s5067_s3 = int_to_ptr.vmem [resolvable:$true] %s5066_s3 }
 0x412   : > { %s9306_s24 = sld [smem:[#allocation82_spill]]  ;;  %s7112_s8 = smov 1024  }
 0x413   : > { %p9307_p13 = scmp.ne.s32.totalorder %s9169_s13, 0  ;;  %s7113_s17 = smov 2048  }
 0x414   : > { %s7114_s18 = smov 16   ;;  %s7115_s22 = smov 64  }
 0x415   : > { %6682 = sst [smem:[#allocation16]] (%p9307_p13), %s7112_s8  ;;  %s7116_s28 = smov 4  }
 0x416   : > { %6683 = sst [smem:[#allocation16 + $0x1]] (%p9307_p13), %s7113_s17  ;;  %s7117_s5 = smov [#allocation15]  }
 0x417   : > { %6684 = sst [smem:[#allocation16 + $0x2]] (%p9307_p13), %s7114_s18  ;;  %s7118_s20 = smov 0  }
 0x418   : > { %s5049_s19 = scalar_lea.hbm %s9306_s24, %s8995_s11  ;;  %6685 = sst [smem:[#allocation16 + $0x3]] (%p9307_p13), %s7115_s22 }
 0x419   : > { %6686 = sst [smem:[#allocation16 + $0x4]] (%p9307_p13), %s7115_s22 }
 0x41a   : > { %6687 = sst [smem:[#allocation16 + $0x5]] (%p9307_p13), %s7116_s28 }
 0x41b   : > { %6688 = dma.general (%p9307_p13), %s5067_s3, 4096, %s5049_s19, %s5027_s9, %s7117_s5, [#allocation16], %s7118_s20, 0  }
 0x41c   : > { %s9308_s15 = sld [smem:[#allocation83_spill]]  ;;  %s5111_s29 = sshll.u32 %s8875_s30, 4  ;;  %s5112_s29 = int_to_ptr.vmem [resolvable:$true] %s5111_s29 }
 0x41d   : > { %s7119_s12 = smov 1024   ;;  %s7120_s16 = smov 2048  }
 0x41e   : > { %6689 = sst [smem:[#allocation18]] (%p9307_p13), %s7119_s12  ;;  %s7121_s26 = smov 16  }
 0x41f   : > { %6690 = sst [smem:[#allocation18 + $0x1]] (%p9307_p13), %s7120_s16  ;;  %s7122_s9 = smov 64  }
 0x420   : > { %6691 = sst [smem:[#allocation18 + $0x2]] (%p9307_p13), %s7121_s26  ;;  %s7123_s3 = smov 4  }
 0x421   : > { %6692 = sst [smem:[#allocation18 + $0x3]] (%p9307_p13), %s7122_s9  ;;  %s7124_s6 = smov [#allocation17]  }
 0x422   : > { %s5094_s21 = scalar_lea.hbm %s9308_s15, %s8995_s11  ;;  %6693 = sst [smem:[#allocation18 + $0x4]] (%p9307_p13), %s7122_s9 }
 0x423   : > { %6694 = sst [smem:[#allocation18 + $0x5]] (%p9307_p13), %s7123_s3  ;;  %s7125_s30 = smov 0  }
 0x424   : > { %6695 = dma.general (%p9307_p13), %s5112_s29, 2048, %s5094_s21, %s8992_s14, %s7124_s6, [#allocation18], %s7125_s30, 0  }
 0x425   : > { %s9309_s19 = sld [smem:[#allocation84_spill]]  ;;  %s5156_s17 = sshll.u32 %s8445_s23, 4  ;;  %s5157_s17 = int_to_ptr.vmem [resolvable:$true] %s5156_s17 }
 0x426   : > { %s7126_s18 = smov 1024   ;;  %s7127_s22 = smov 2048  }
 0x427   : > { %6696 = sst [smem:[#allocation20]] (%p9307_p13), %s7126_s18  ;;  %s7128_s28 = smov 16  }
 0x428   : > { %6697 = sst [smem:[#allocation20 + $0x1]] (%p9307_p13), %s7127_s22  ;;  %s7129_s5 = smov 64  }
 0x429   : > { %6698 = sst [smem:[#allocation20 + $0x2]] (%p9307_p13), %s7128_s28  ;;  %s7130_s20 = smov 4  }
 0x42a   : > { %6699 = sst [smem:[#allocation20 + $0x3]] (%p9307_p13), %s7129_s5  ;;  %s7132_s23 = smov 0  }
 0x42b   : > { %s5139_s8 = scalar_lea.hbm %s9309_s19, %s8995_s11  ;;  %6700 = sst [smem:[#allocation20 + $0x4]] (%p9307_p13), %s7129_s5 }
 0x42c   : > { %6701 = sst [smem:[#allocation20 + $0x5]] (%p9307_p13), %s7130_s20  ;;  %s7131_s11 = smov [#allocation19]  }
 0x42d   : > { %6702 = dma.general (%p9307_p13), %s5157_s17, 2048, %s5139_s8, %s8992_s14, %s7131_s11, [#allocation20], %s7132_s23, 0  }
 0x42e PF: > { %s9310_s10 = sld [smem:[#allocation26_spill]]  ;;  %s9311_s1 = sld [smem:[#allocation30_spill]] }
 0x42f   : > { %p9313_p2 = scmp.ge.s32.totalorder %s7098_s27, 2 }
 0x434   : > { %s5184_s15 = sand.u32 1, %s9310_s10   ;;  %p9312_p7 = scmp.ne.s32.totalorder %s9311_s1, 0 }
 0x435   : > { %s5185_s21 = scalar_lea.sflag [#allocation4], %s5184_s15 }
 0x436   : > { %p6724_p3 = pnand %p9313_p2, %p9312_p7 }
 0x438   : > { %7077 = dma.done.wait (!%p6724_p3), %s5185_s21, 4096  }
 0x439   : > { %7079 = vsyncadd (!%p6724_p3), %s5185_s21, 4294963200  ;;  %s9314_s29 = sadd.s32 4294967294, %s7098_s27  }
 0x43a   : > { %s5193_s12 = sand.u32 1, %s9314_s29  }
 0x43b   : > { %s5194_s16 = scalar_lea.sflag [#allocation13], %s5193_s12 }
 0x43c   : > { %7081 = dma.done.wait (!%p6724_p3), %s5194_s16, 4096  }
 0x43d   : > { %7083 = vsyncadd (!%p6724_p3), %s5194_s16, 4294963200  ;;  %s9315_s27 = sld [smem:[#allocation28_spill]]  ;;  %s9316_s13 = sld [smem:[#allocation27_spill]] }
 0x43e   : > { %s9317_s26 = sld [smem:[#allocation29_spill]]  ;;  %s9318_s24 = smov %s7090_s25 }
 0x443   : > { %p28_p12 = scmp.ge.s32.totalorder %s9315_s27, 4   ;;  %s9319_s25 = smov %s9316_s13 }
 0x445   :  { %30 = sbr.rel (!%p28_p12) target bundleno = 16 (0x10), region = 169 }
 0x44c   :  { %5208 = vsyncpa [#allocation3], 1 }
 0x44d   :  { %5210 = vsyncpa [#allocation3 + $0x1], 1 }
 0x44e   :  { %5211 = vsyncpa [#allocation6], 1 }
 0x44f   :  { %5212 = vsyncpa [#allocation9], 1 }
 0x450   :  { %5214 = vsyncpa [#allocation9 + $0x1], 1 }
 0x451   :  { %5215 = vsyncpa [#allocation4], 1 }
 0x452   :  { %5217 = vsyncpa [#allocation4 + $0x1], 1 }
 0x453   :  { %5218 = vsyncpa [#allocation13], 1 }
 0x454   :  { %5220 = vsyncpa [#allocation13 + $0x1], 1 }

</bundles_post_ra>
